<compile_context>
chip_gen: v7x
topology: tpu7x:2x2x1
jax: 0.10.0
libtpu: 0.0.40
codegen_flags: <defaults>
</compile_context>

<pallas_src>
import functools
import math

import jax
import jax.numpy as jnp
from jax.experimental import pallas as pl
from jax.experimental.pallas import tpu as pltpu


# ---------------------------------------------------------------------------
# small in-kernel helpers
# ---------------------------------------------------------------------------
def _layer_norm(x, gamma, beta, eps=1e-5):
    # Single fused reduction pass: sum and sum-of-squares together (half the XLU work).
    d = x.shape[-1]
    inv_d = 1.0 / d
    s = jnp.sum(x, axis=-1, keepdims=True)
    sq = jnp.sum(x * x, axis=-1, keepdims=True)
    mu = s * inv_d
    var = sq * inv_d - mu * mu
    return (x - mu) * jax.lax.rsqrt(var + eps) * gamma + beta


def _erf_poly(z):
    # Abramowitz & Stegun 7.1.26 rational approximation, |err| <= 1.5e-7.
    # (Matches torch's exact-erf GELU to ~1e-7.)  The divide goes to the EUP.
    a1, a2, a3, a4, a5 = 0.254829592, -0.284496736, 1.421413741, -1.453152027, 1.061405429
    p = 0.3275911
    za = jnp.abs(z)
    t = pl.reciprocal(1.0 + p * za)                      # EUP, not a VPU divide
    poly = t * (a1 + t * (a2 + t * (a3 + t * (a4 + t * a5))))
    y = 1.0 - poly * jnp.exp(-(za * za))
    return jnp.where(z < 0, -y, y)


def _gelu_exact(x):
    return 0.5 * x * (1.0 + _erf_poly(x * 0.7071067811865476))


# ---------------------------------------------------------------------------
# fused encoder-block kernel: grid = (batch, query-tile)
# ---------------------------------------------------------------------------
def _encoder_kernel(x_full_ref, x_q_ref, g1_ref, be1_ref, wq_ref, bq_ref,
                    wkv_ref, bkv_ref, wp_ref, bp_ref, g2_ref, be2_ref,
                    w1_ref, b1_ref, w2_ref, b2_ref,
                    o_ref, kv_ref, cat_ref, *, n_heads, head_dim, compute_dtype):
    cd = compute_dtype
    qi = pl.program_id(1)
    D = x_q_ref.shape[-1]

    # ----- K|V for the whole sequence: computed once per batch element, cached in VMEM -----
    @pl.when(qi == 0)
    def _():
        h_full = _layer_norm(x_full_ref[0], g1_ref[...], be1_ref[...])      # (S, D) f32
        kv = jnp.dot(h_full.astype(cd), wkv_ref[...],
                     preferred_element_type=jnp.float32) + bkv_ref[...]     # (S, 2D) f32
        kv_ref[...] = kv.astype(cd)

    # ----- per-query-tile work -----
    x_q = x_q_ref[0]                                                        # (tq, D) f32
    h_q = _layer_norm(x_q, g1_ref[...], be1_ref[...])
    # Q weights/bias are pre-scaled by 1/sqrt(head_dim) host-side.
    q_all = jnp.dot(h_q.astype(cd), wq_ref[...],
                    preferred_element_type=jnp.float32) + bq_ref[...]       # (tq, D) f32

    # per-head attention; head outputs written into their lane-slice of cat_ref
    for hh in range(n_heads):
        lo = hh * head_dim
        q = q_all[:, lo:lo + head_dim].astype(cd)                           # (tq, hd)
        k = kv_ref[:, lo:lo + head_dim]                                     # (S, hd)
        v = kv_ref[:, D + lo:D + lo + head_dim]                             # (S, hd)

        s = jax.lax.dot_general(q, k, (((1,), (1,)), ((), ())),
                                preferred_element_type=jnp.float32)         # (tq, S)
        m = jnp.max(s, axis=-1, keepdims=True)
        e = jnp.exp(s - m)
        attn = e * pl.reciprocal(jnp.sum(e, axis=-1, keepdims=True))        # exact, EUP

        cat_ref[:, lo:lo + head_dim] = jnp.dot(
            attn.astype(cd), v, preferred_element_type=jnp.float32).astype(cd)

    # single full-depth (K = D) output projection
    attn_out = jnp.dot(cat_ref[...], wp_ref[...],
                       preferred_element_type=jnp.float32) + bp_ref[...]    # (tq, D) f32
    out1 = x_q + attn_out                                                   # residual 1

    # ----- LayerNorm 2 + MLP (Linear -> GELU -> Linear) -----
    h2 = _layer_norm(out1, g2_ref[...], be2_ref[...])
    f1 = jnp.dot(h2.astype(cd), w1_ref[...],
                 preferred_element_type=jnp.float32) + b1_ref[...]          # (tq, 4D)
    a1 = _gelu_exact(f1)
    f2 = jnp.dot(a1.astype(cd), w2_ref[...],
                 preferred_element_type=jnp.float32) + b2_ref[...]          # (tq, D)

    o_ref[0] = (out1 + f2).astype(o_ref.dtype)                              # residual 2


# ---------------------------------------------------------------------------
# wrapper
# ---------------------------------------------------------------------------
def transformer_encoder(x, fp, *, n_heads, tq=None, single_buffer_weights=True):
    """x: (B, S, D) f32. fp: fused params from fuse_params(). Returns (B, S, D)."""
    B, S, D = x.shape
    assert D % n_heads == 0
    hd = D // n_heads
    Dm = fp["w1"].shape[1]
    cd = jnp.dtype(fp["wq"].dtype)
    if tq is None:
        tq = S
    assert S % tq == 0, "sequence length must be divisible by the query-tile size"
    n_q = S // tq

    kernel = functools.partial(_encoder_kernel, n_heads=n_heads, head_dim=hd,
                               compute_dtype=cd)

    def _wspec(shape, single):
        # Weight/bias blocks never change across the grid: single-buffer them.
        if single:
            return pl.BlockSpec(shape, lambda b, q: (0,) * len(shape),
                                pipeline_mode=pl.Buffered(1))
        return pl.BlockSpec(shape, lambda b, q: (0,) * len(shape))

    def _build(single):
        itemsize = cd.itemsize
        w_bytes = (4 * D * D + 2 * D * Dm) * itemsize + (10 * D + Dm) * 4
        if not single:
            w_bytes *= 2                                          # default double-buffering
        act_bytes = (S * 2 * D + tq * D) * itemsize               # kv / concat scratch
        act_bytes += 8 * (S * D + tq * (S + Dm + 4 * D))          # f32 working set, ~2x slack
        io_bytes = 8 * (S * D + 2 * tq * D)                       # x (full + tile) + out, 2-buffered
        vmem_limit = int(min(max(w_bytes + act_bytes + io_bytes + (8 << 20), 32 << 20),
                             64 << 20))                           # v7x physical ceiling

        in_specs = [
            pl.BlockSpec((1, S, D), lambda b, q: (b, 0, 0)),      # x, full sequence (for K/V)
            pl.BlockSpec((1, tq, D), lambda b, q: (b, q, 0)),     # x, query tile
            _wspec((1, D), single), _wspec((1, D), single),       # ln1 gamma / beta
            _wspec((D, D), single), _wspec((1, D), single),       # Wq (pre-scaled), bq
            _wspec((D, 2 * D), single), _wspec((1, 2 * D), single),  # Wkv, bkv
            _wspec((D, D), single), _wspec((1, D), single),       # Wp, bp
            _wspec((1, D), single), _wspec((1, D), single),       # ln2 gamma / beta
            _wspec((D, Dm), single), _wspec((1, Dm), single),     # W fc1, b fc1
            _wspec((Dm, D), single), _wspec((1, D), single),      # W fc2, b fc2
        ]
        return pl.pallas_call(
            kernel,
            out_shape=jax.ShapeDtypeStruct((B, S, D), x.dtype),
            grid=(B, n_q),
            in_specs=in_specs,
            out_specs=pl.BlockSpec((1, tq, D), lambda b, q: (b, q, 0)),
            scratch_shapes=[pltpu.VMEM((S, 2 * D), cd),           # per-batch K|V cache
                            pltpu.VMEM((tq, D), cd)],             # concat of head outputs
            compiler_params=pltpu.CompilerParams(
                dimension_semantics=("parallel", "arbitrary"),
                vmem_limit_bytes=vmem_limit),
        )

    args = (x, x, fp["g1"], fp["be1"], fp["wq"], fp["bq"], fp["wkv"], fp["bkv"],
            fp["wp"], fp["bp"], fp["g2"], fp["be2"], fp["w1"], fp["b1"],
            fp["w2"], fp["b2"])

    if single_buffer_weights:
        try:
            return _build(True)(*args)
        except Exception:
            # pl.Buffered(1) not accepted by this jax/Mosaic version: fall back to the
            # default (double-buffered) weight BlockSpecs.
            pass
    return _build(False)(*args)


# ---------------------------------------------------------------------------
# parameters: module-style init + host-side (one-time) fusion/packing
# ---------------------------------------------------------------------------
def init_params(key, d_model, n_heads, r_mlp=4):
    """Mirrors the PyTorch module's parameters (Linear weights stored pre-transposed)."""
    hd = d_model // n_heads
    d_mlp = d_model * r_mlp
    ks = jax.random.split(key, 14)

    def u(k, shape, fan_in):
        s = 1.0 / math.sqrt(fan_in)
        return jax.random.uniform(k, shape, jnp.float32, -s, s)

    return dict(
        ln1_g=1.0 + 0.1 * jax.random.normal(ks[12], (d_model,), jnp.float32),
        ln1_b=0.1 * jax.random.normal(ks[13], (d_model,), jnp.float32),
        wq=u(ks[0], (n_heads, d_model, hd), d_model),
        wk=u(ks[1], (n_heads, d_model, hd), d_model),
        wv=u(ks[2], (n_heads, d_model, hd), d_model),
        bq=u(ks[3], (n_heads, hd), d_model),
        bk=u(ks[4], (n_heads, hd), d_model),
        bv=u(ks[5], (n_heads, hd), d_model),
        wp=u(ks[6], (d_model, d_model), d_model),
        bp=u(ks[7], (d_model,), d_model),
        ln2_g=jnp.ones((d_model,), jnp.float32),
        ln2_b=jnp.zeros((d_model,), jnp.float32),
        w1=u(ks[8], (d_model, d_mlp), d_model),
        b1=u(ks[9], (d_mlp,), d_model),
        w2=u(ks[10], (d_mlp, d_model), d_mlp),
        b2=u(ks[11], (d_model,), d_mlp),
    )


def fuse_params(p, compute_dtype=jnp.bfloat16):
    """Pack per-head Q into one (D,D) weight (pre-scaled by 1/sqrt(hd)) and K/V into one
    (D,2D) weight, cast MXU operands to compute_dtype (bf16 default). Done once, host-side."""
    H, D, hd = p["wq"].shape
    scale = 1.0 / math.sqrt(hd)
    to_cols = lambda w: jnp.transpose(w, (1, 0, 2)).reshape(D, H * hd)   # head-contiguous cols
    wq = (to_cols(p["wq"]) * scale).astype(compute_dtype)
    bq = (p["bq"].reshape(1, -1) * scale).astype(jnp.float32)
    wkv = jnp.concatenate([to_cols(p["wk"]), to_cols(p["wv"])], axis=1).astype(compute_dtype)
    bkv = jnp.concatenate([p["bk"].reshape(1, -1), p["bv"].reshape(1, -1)],
                          axis=1).astype(jnp.float32)
    return dict(
        g1=p["ln1_g"].reshape(1, D), be1=p["ln1_b"].reshape(1, D),
        wq=wq, bq=bq, wkv=wkv, bkv=bkv,
        wp=p["wp"].astype(compute_dtype), bp=p["bp"].reshape(1, D),
        g2=p["ln2_g"].reshape(1, D), be2=p["ln2_b"].reshape(1, D),
        w1=p["w1"].astype(compute_dtype), b1=p["b1"].reshape(1, -1),
        w2=p["w2"].astype(compute_dtype), b2=p["b2"].reshape(1, -1),
    )


# ---------------------------------------------------------------------------
# pure-JAX reference mirroring the PyTorch module semantics
# ---------------------------------------------------------------------------
def _reference(x, p, eps=1e-5):
    def ln(v, g, b):
        mu = jnp.mean(v, axis=-1, keepdims=True)
        var = jnp.mean((v - mu) ** 2, axis=-1, keepdims=True)
        return (v - mu) / jnp.sqrt(var + eps) * g + b

    H, D, hd = p["wq"].shape
    h = ln(x, p["ln1_g"], p["ln1_b"])
    heads = []
    for i in range(H):
        q = h @ p["wq"][i] + p["bq"][i]
        k = h @ p["wk"][i] + p["bk"][i]
        v = h @ p["wv"][i] + p["bv"][i]
        s = (q @ jnp.swapaxes(k, -2, -1)) / math.sqrt(hd)
        a = jax.nn.softmax(s, axis=-1)
        heads.append(a @ v)
    concat = jnp.concatenate(heads, axis=-1)
    out1 = x + (concat @ p["wp"] + p["bp"])
    h2 = ln(out1, p["ln2_g"], p["ln2_b"])
    m = jax.nn.gelu(h2 @ p["w1"] + p["b1"], approximate=False)  # torch nn.GELU() = exact erf
    m = m @ p["w2"] + p["b2"]
    return out1 + m


def _rel_err(a, b):
    return float(jnp.linalg.norm(a - b) / jnp.linalg.norm(b))


if __name__ == "__main__":
    key = jax.random.PRNGKey(0)
    k1, k2, k3, k4 = jax.random.split(key, 4)

    # --- small config: (B, S, D, H) = (2, 8, 32, 4), single query tile per batch ---
    B, S, d_model, n_heads, r_mlp = 2, 8, 32, 4, 4
    x = jax.random.normal(k1, (B, S, d_model), jnp.float32)
    raw = init_params(k2, d_model, n_heads, r_mlp)
    ref = _reference(x, raw)

    # default fast path: bf16 MXU operands, f32 accumulation
    out_bf16 = jax.block_until_ready(
        transformer_encoder(x, fuse_params(raw), n_heads=n_heads))
    assert out_bf16.shape == (B, S, d_model)
    err_bf16 = _rel_err(out_bf16.astype(jnp.float32), ref)
    assert err_bf16 < 2.5e-2, f"bf16 path mismatch: rel L2 err {err_bf16}"

    # f32 debug path (note: TPU MXU may still use bf16 passes at default precision)
    out_f32 = jax.block_until_ready(
        transformer_encoder(x, fuse_params(raw, jnp.float32), n_heads=n_heads))
    err_f32 = _rel_err(out_f32, ref)
    assert err_f32 < 5e-3, f"f32 path mismatch: rel L2 err {err_f32}"

    # --- exercise the query-tiled path: grid = (B, S // tq) with per-batch KV cache ---
    B2, S2, tq = 2, 64, 16
    x2 = jax.random.normal(k3, (B2, S2, d_model), jnp.float32)
    raw2 = init_params(k4, d_model, n_heads, r_mlp)
    ref2 = _reference(x2, raw2)
    out2 = jax.block_until_ready(
        transformer_encoder(x2, fuse_params(raw2, jnp.float32), n_heads=n_heads, tq=tq))
    err2 = _rel_err(out2, ref2)
    assert err2 < 5e-3, f"tiled f32 path mismatch: rel L2 err {err2}"

    print("KERNEL_OK")
</pallas_src>

<mosaic_0001>
module attributes {stable_mosaic.version = 11 : i64} {
  func.func @_encoder_kernel(%arg0: i32, %arg1: i32, %arg2: memref<1x8x32xf32, #tpu.memory_space<vmem>>, %arg3: memref<1x8x32xf32, #tpu.memory_space<vmem>>, %arg4: memref<1x32xf32, #tpu.memory_space<vmem>>, %arg5: memref<1x32xf32, #tpu.memory_space<vmem>>, %arg6: memref<32x32xbf16, #tpu.memory_space<vmem>>, %arg7: memref<1x32xf32, #tpu.memory_space<vmem>>, %arg8: memref<32x64xbf16, #tpu.memory_space<vmem>>, %arg9: memref<1x64xf32, #tpu.memory_space<vmem>>, %arg10: memref<32x32xbf16, #tpu.memory_space<vmem>>, %arg11: memref<1x32xf32, #tpu.memory_space<vmem>>, %arg12: memref<1x32xf32, #tpu.memory_space<vmem>>, %arg13: memref<1x32xf32, #tpu.memory_space<vmem>>, %arg14: memref<32x128xbf16, #tpu.memory_space<vmem>>, %arg15: memref<1x128xf32, #tpu.memory_space<vmem>>, %arg16: memref<128x32xbf16, #tpu.memory_space<vmem>>, %arg17: memref<1x32xf32, #tpu.memory_space<vmem>>, %arg18: memref<1x8x32xf32, #tpu.memory_space<vmem>>, %arg19: memref<8x64xbf16, #tpu.memory_space<vmem>>, %arg20: memref<8x32xbf16, #tpu.memory_space<vmem>>) attributes {dimension_semantics = [#tpu.dimension_semantics<parallel>, #tpu.dimension_semantics<arbitrary>], iteration_bounds = array<i64: 2, 1>, scalar_prefetch = 0 : i64, scratch_operands = 2 : i64, tpu.core_type = #tpu.core_type<tc>, window_params = [{transform_indices = @transform_0, window_bounds = array<i64: 1, 8, 32>}, {transform_indices = @transform_1, window_bounds = array<i64: 1, 8, 32>}, {pipeline_mode = #tpu.pipeline_mode<synchronous>, transform_indices = @transform_2, window_bounds = array<i64: 1, 32>}, {pipeline_mode = #tpu.pipeline_mode<synchronous>, transform_indices = @transform_3, window_bounds = array<i64: 1, 32>}, {pipeline_mode = #tpu.pipeline_mode<synchronous>, transform_indices = @transform_4, window_bounds = array<i64: 32, 32>}, {pipeline_mode = #tpu.pipeline_mode<synchronous>, transform_indices = @transform_5, window_bounds = array<i64: 1, 32>}, {pipeline_mode = #tpu.pipeline_mode<synchronous>, transform_indices = @transform_6, window_bounds = array<i64: 32, 64>}, {pipeline_mode = #tpu.pipeline_mode<synchronous>, transform_indices = @transform_7, window_bounds = array<i64: 1, 64>}, {pipeline_mode = #tpu.pipeline_mode<synchronous>, transform_indices = @transform_8, window_bounds = array<i64: 32, 32>}, {pipeline_mode = #tpu.pipeline_mode<synchronous>, transform_indices = @transform_9, window_bounds = array<i64: 1, 32>}, {pipeline_mode = #tpu.pipeline_mode<synchronous>, transform_indices = @transform_10, window_bounds = array<i64: 1, 32>}, {pipeline_mode = #tpu.pipeline_mode<synchronous>, transform_indices = @transform_11, window_bounds = array<i64: 1, 32>}, {pipeline_mode = #tpu.pipeline_mode<synchronous>, transform_indices = @transform_12, window_bounds = array<i64: 32, 128>}, {pipeline_mode = #tpu.pipeline_mode<synchronous>, transform_indices = @transform_13, window_bounds = array<i64: 1, 128>}, {pipeline_mode = #tpu.pipeline_mode<synchronous>, transform_indices = @transform_14, window_bounds = array<i64: 128, 32>}, {pipeline_mode = #tpu.pipeline_mode<synchronous>, transform_indices = @transform_15, window_bounds = array<i64: 1, 32>}, {transform_indices = @transform_16, window_bounds = array<i64: 1, 8, 32>}]} {
    %c0_i32 = arith.constant 0 : i32
    %0 = arith.cmpi eq, %arg1, %c0_i32 : i32
    %1 = arith.extui %0 : i1 to i32
    %c0_i32_0 = arith.constant 0 : i32
    %2 = arith.cmpi ne, %1, %c0_i32_0 : i32
    scf.if %2 {
      %c0_92 = arith.constant 0 : index
      %c0_93 = arith.constant 0 : index
      %c0_94 = arith.constant 0 : index
      %197 = vector.load %arg2[%c0_92, %c0_93, %c0_94] : memref<1x8x32xf32, #tpu.memory_space<vmem>>, vector<1x8x32xf32>
      %198 = vector.shape_cast %197 : vector<1x8x32xf32> to vector<8x32xf32>
      %c0_95 = arith.constant 0 : index
      %c0_96 = arith.constant 0 : index
      %199 = vector.load %arg4[%c0_95, %c0_96] : memref<1x32xf32, #tpu.memory_space<vmem>>, vector<1x32xf32>
      %c0_97 = arith.constant 0 : index
      %c0_98 = arith.constant 0 : index
      %200 = vector.load %arg5[%c0_97, %c0_98] : memref<1x32xf32, #tpu.memory_space<vmem>>, vector<1x32xf32>
      %cst_99 = arith.constant dense<0.000000e+00> : vector<8xf32>
      %201 = vector.multi_reduction <add>, %198, %cst_99 [1] : vector<8x32xf32> to vector<8xf32>
      %202 = vector.shape_cast %201 : vector<8xf32> to vector<8x1xf32>
      %203 = arith.mulf %198, %198 : vector<8x32xf32>
      %cst_100 = arith.constant dense<0.000000e+00> : vector<8xf32>
      %204 = vector.multi_reduction <add>, %203, %cst_100 [1] : vector<8x32xf32> to vector<8xf32>
      %205 = vector.shape_cast %204 : vector<8xf32> to vector<8x1xf32>
      %cst_101 = arith.constant 3.125000e-02 : f32
      %206 = vector.broadcast %cst_101 : f32 to vector<8x1xf32>
      %207 = arith.mulf %202, %206 : vector<8x1xf32>
      %cst_102 = arith.constant 3.125000e-02 : f32
      %208 = vector.broadcast %cst_102 : f32 to vector<8x1xf32>
      %209 = arith.mulf %205, %208 : vector<8x1xf32>
      %210 = arith.mulf %207, %207 : vector<8x1xf32>
      %211 = arith.subf %209, %210 : vector<8x1xf32>
      %212 = vector.broadcast %207 : vector<8x1xf32> to vector<8x32xf32>
      %213 = arith.subf %198, %212 : vector<8x32xf32>
      %cst_103 = arith.constant 9.99999974E-6 : f32
      %214 = vector.broadcast %cst_103 : f32 to vector<8x1xf32>
      %215 = arith.addf %211, %214 : vector<8x1xf32>
      %216 = math.rsqrt %215 : vector<8x1xf32>
      %217 = vector.broadcast %216 : vector<8x1xf32> to vector<8x32xf32>
      %218 = arith.mulf %213, %217 : vector<8x32xf32>
      %219 = vector.broadcast %199 : vector<1x32xf32> to vector<8x32xf32>
      %220 = arith.mulf %218, %219 : vector<8x32xf32>
      %221 = vector.broadcast %200 : vector<1x32xf32> to vector<8x32xf32>
      %222 = arith.addf %220, %221 : vector<8x32xf32>
      %223 = arith.truncf %222 : vector<8x32xf32> to vector<8x32xbf16>
      %c0_104 = arith.constant 0 : index
      %c0_105 = arith.constant 0 : index
      %224 = vector.load %arg8[%c0_104, %c0_105] : memref<32x64xbf16, #tpu.memory_space<vmem>>, vector<32x64xbf16>
      %cst_106 = arith.constant dense<0.000000e+00> : vector<8x64xf32>
      %225 = tpu.matmul %223, %224, %cst_106 {dimension_numbers = #tpu.dot_dimension_numbers<[1], [0], [0], [1], [0, 0, 1, 1], [], []>} : vector<8x32xbf16>, vector<32x64xbf16>, vector<8x64xf32> -> vector<8x64xf32>
      %c0_107 = arith.constant 0 : index
      %c0_108 = arith.constant 0 : index
      %226 = vector.load %arg9[%c0_107, %c0_108] : memref<1x64xf32, #tpu.memory_space<vmem>>, vector<1x64xf32>
      %227 = vector.broadcast %226 : vector<1x64xf32> to vector<8x64xf32>
      %228 = arith.addf %225, %227 : vector<8x64xf32>
      %229 = arith.truncf %228 : vector<8x64xf32> to vector<8x64xbf16>
      %c0_109 = arith.constant 0 : index
      %c0_110 = arith.constant 0 : index
      %230 = vector.load %arg19[%c0_109, %c0_110] : memref<8x64xbf16, #tpu.memory_space<vmem>>, vector<8x64xbf16>
      tpu.vector_store %arg19[%c0_109, %c0_110], %229 {strides = array<i32>} : memref<8x64xbf16, #tpu.memory_space<vmem>>, vector<8x64xbf16>,
    } else {
    }
    %c0 = arith.constant 0 : index
    %c0_1 = arith.constant 0 : index
    %c0_2 = arith.constant 0 : index
    %3 = vector.load %arg3[%c0, %c0_1, %c0_2] : memref<1x8x32xf32, #tpu.memory_space<vmem>>, vector<1x8x32xf32>
    %4 = vector.shape_cast %3 : vector<1x8x32xf32> to vector<8x32xf32>
    %c0_3 = arith.constant 0 : index
    %c0_4 = arith.constant 0 : index
    %5 = vector.load %arg4[%c0_3, %c0_4] : memref<1x32xf32, #tpu.memory_space<vmem>>, vector<1x32xf32>
    %c0_5 = arith.constant 0 : index
    %c0_6 = arith.constant 0 : index
    %6 = vector.load %arg5[%c0_5, %c0_6] : memref<1x32xf32, #tpu.memory_space<vmem>>, vector<1x32xf32>
    %cst = arith.constant dense<0.000000e+00> : vector<8xf32>
    %7 = vector.multi_reduction <add>, %4, %cst [1] : vector<8x32xf32> to vector<8xf32>
    %8 = vector.shape_cast %7 : vector<8xf32> to vector<8x1xf32>
    %9 = arith.mulf %4, %4 : vector<8x32xf32>
    %cst_7 = arith.constant dense<0.000000e+00> : vector<8xf32>
    %10 = vector.multi_reduction <add>, %9, %cst_7 [1] : vector<8x32xf32> to vector<8xf32>
    %11 = vector.shape_cast %10 : vector<8xf32> to vector<8x1xf32>
    %cst_8 = arith.constant 3.125000e-02 : f32
    %12 = vector.broadcast %cst_8 : f32 to vector<8x1xf32>
    %13 = arith.mulf %8, %12 : vector<8x1xf32>
    %cst_9 = arith.constant 3.125000e-02 : f32
    %14 = vector.broadcast %cst_9 : f32 to vector<8x1xf32>
    %15 = arith.mulf %11, %14 : vector<8x1xf32>
    %16 = arith.mulf %13, %13 : vector<8x1xf32>
    %17 = arith.subf %15, %16 : vector<8x1xf32>
    %18 = vector.broadcast %13 : vector<8x1xf32> to vector<8x32xf32>
    %19 = arith.subf %4, %18 : vector<8x32xf32>
    %cst_10 = arith.constant 9.99999974E-6 : f32
    %20 = vector.broadcast %cst_10 : f32 to vector<8x1xf32>
    %21 = arith.addf %17, %20 : vector<8x1xf32>
    %22 = math.rsqrt %21 : vector<8x1xf32>
    %23 = vector.broadcast %22 : vector<8x1xf32> to vector<8x32xf32>
    %24 = arith.mulf %19, %23 : vector<8x32xf32>
    %25 = vector.broadcast %5 : vector<1x32xf32> to vector<8x32xf32>
    %26 = arith.mulf %24, %25 : vector<8x32xf32>
    %27 = vector.broadcast %6 : vector<1x32xf32> to vector<8x32xf32>
    %28 = arith.addf %26, %27 : vector<8x32xf32>
    %29 = arith.truncf %28 : vector<8x32xf32> to vector<8x32xbf16>
    %c0_11 = arith.constant 0 : index
    %c0_12 = arith.constant 0 : index
    %30 = vector.load %arg6[%c0_11, %c0_12] : memref<32x32xbf16, #tpu.memory_space<vmem>>, vector<32x32xbf16>
    %cst_13 = arith.constant dense<0.000000e+00> : vector<8x32xf32>
    %31 = tpu.matmul %29, %30, %cst_13 {dimension_numbers = #tpu.dot_dimension_numbers<[1], [0], [0], [1], [0, 0, 1, 1], [], []>} : vector<8x32xbf16>, vector<32x32xbf16>, vector<8x32xf32> -> vector<8x32xf32>
    %c0_14 = arith.constant 0 : index
    %c0_15 = arith.constant 0 : index
    %32 = vector.load %arg7[%c0_14, %c0_15] : memref<1x32xf32, #tpu.memory_space<vmem>>, vector<1x32xf32>
    %33 = vector.broadcast %32 : vector<1x32xf32> to vector<8x32xf32>
    %34 = arith.addf %31, %33 : vector<8x32xf32>
    %35 = vector.extract_strided_slice %34 {offsets = [0, 0], sizes = [8, 8], strides = [1, 1]} : vector<8x32xf32> to vector<8x8xf32>
    %36 = arith.truncf %35 : vector<8x8xf32> to vector<8x8xbf16>
    %c0_16 = arith.constant 0 : index
    %c0_17 = arith.constant 0 : index
    %37 = vector.load %arg19[%c0_16, %c0_17] : memref<8x64xbf16, #tpu.memory_space<vmem>>, vector<8x8xbf16>
    %c0_18 = arith.constant 0 : index
    %c32 = arith.constant 32 : index
    %38 = vector.load %arg19[%c0_18, %c32] : memref<8x64xbf16, #tpu.memory_space<vmem>>, vector<8x8xbf16>
    %cst_19 = arith.constant dense<0.000000e+00> : vector<8x8xf32>
    %39 = tpu.matmul %36, %37, %cst_19 {dimension_numbers = #tpu.dot_dimension_numbers<[1], [1], [0], [0], [0, 0, 1, 0], [], []>} : vector<8x8xbf16>, vector<8x8xbf16>, vector<8x8xf32> -> vector<8x8xf32>
    %cst_20 = arith.constant dense<0xFF800000> : vector<8xf32>
    %40 = vector.multi_reduction <maximumf>, %39, %cst_20 [1] : vector<8x8xf32> to vector<8xf32>
    %41 = vector.shape_cast %40 : vector<8xf32> to vector<8x1xf32>
    %42 = vector.broadcast %41 : vector<8x1xf32> to vector<8x8xf32>
    %43 = arith.subf %39, %42 : vector<8x8xf32>
    %44 = math.exp %43 : vector<8x8xf32>
    %cst_21 = arith.constant dense<0.000000e+00> : vector<8xf32>
    %45 = vector.multi_reduction <add>, %44, %cst_21 [1] : vector<8x8xf32> to vector<8xf32>
    %46 = vector.shape_cast %45 : vector<8xf32> to vector<8x1xf32>
    %47 = tpu.reciprocal %46 : vector<8x1xf32> -> vector<8x1xf32>
    %48 = vector.broadcast %47 : vector<8x1xf32> to vector<8x8xf32>
    %49 = arith.mulf %44, %48 : vector<8x8xf32>
    %50 = arith.truncf %49 : vector<8x8xf32> to vector<8x8xbf16>
    %cst_22 = arith.constant dense<0.000000e+00> : vector<8x8xf32>
    %51 = tpu.matmul %50, %38, %cst_22 {dimension_numbers = #tpu.dot_dimension_numbers<[1], [0], [0], [1], [0, 0, 1, 1], [], []>} : vector<8x8xbf16>, vector<8x8xbf16>, vector<8x8xf32> -> vector<8x8xf32>
    %52 = arith.truncf %51 : vector<8x8xf32> to vector<8x8xbf16>
    %c0_23 = arith.constant 0 : index
    %c0_24 = arith.constant 0 : index
    %53 = vector.load %arg20[%c0_23, %c0_24] : memref<8x32xbf16, #tpu.memory_space<vmem>>, vector<8x8xbf16>
    tpu.vector_store %arg20[%c0_23, %c0_24], %52 {strides = array<i32>} : memref<8x32xbf16, #tpu.memory_space<vmem>>, vector<8x8xbf16>,
    %54 = vector.extract_strided_slice %34 {offsets = [0, 8], sizes = [8, 8], strides = [1, 1]} : vector<8x32xf32> to vector<8x8xf32>
    %55 = arith.truncf %54 : vector<8x8xf32> to vector<8x8xbf16>
    %c0_25 = arith.constant 0 : index
    %c8 = arith.constant 8 : index
    %56 = vector.load %arg19[%c0_25, %c8] : memref<8x64xbf16, #tpu.memory_space<vmem>>, vector<8x8xbf16>
    %c0_26 = arith.constant 0 : index
    %c40 = arith.constant 40 : index
    %57 = vector.load %arg19[%c0_26, %c40] : memref<8x64xbf16, #tpu.memory_space<vmem>>, vector<8x8xbf16>
    %cst_27 = arith.constant dense<0.000000e+00> : vector<8x8xf32>
    %58 = tpu.matmul %55, %56, %cst_27 {dimension_numbers = #tpu.dot_dimension_numbers<[1], [1], [0], [0], [0, 0, 1, 0], [], []>} : vector<8x8xbf16>, vector<8x8xbf16>, vector<8x8xf32> -> vector<8x8xf32>
    %cst_28 = arith.constant dense<0xFF800000> : vector<8xf32>
    %59 = vector.multi_reduction <maximumf>, %58, %cst_28 [1] : vector<8x8xf32> to vector<8xf32>
    %60 = vector.shape_cast %59 : vector<8xf32> to vector<8x1xf32>
    %61 = vector.broadcast %60 : vector<8x1xf32> to vector<8x8xf32>
    %62 = arith.subf %58, %61 : vector<8x8xf32>
    %63 = math.exp %62 : vector<8x8xf32>
    %cst_29 = arith.constant dense<0.000000e+00> : vector<8xf32>
    %64 = vector.multi_reduction <add>, %63, %cst_29 [1] : vector<8x8xf32> to vector<8xf32>
    %65 = vector.shape_cast %64 : vector<8xf32> to vector<8x1xf32>
    %66 = tpu.reciprocal %65 : vector<8x1xf32> -> vector<8x1xf32>
    %67 = vector.broadcast %66 : vector<8x1xf32> to vector<8x8xf32>
    %68 = arith.mulf %63, %67 : vector<8x8xf32>
    %69 = arith.truncf %68 : vector<8x8xf32> to vector<8x8xbf16>
    %cst_30 = arith.constant dense<0.000000e+00> : vector<8x8xf32>
    %70 = tpu.matmul %69, %57, %cst_30 {dimension_numbers = #tpu.dot_dimension_numbers<[1], [0], [0], [1], [0, 0, 1, 1], [], []>} : vector<8x8xbf16>, vector<8x8xbf16>, vector<8x8xf32> -> vector<8x8xf32>
    %71 = arith.truncf %70 : vector<8x8xf32> to vector<8x8xbf16>
    %c0_31 = arith.constant 0 : index
    %c8_32 = arith.constant 8 : index
    %72 = vector.load %arg20[%c0_31, %c8_32] : memref<8x32xbf16, #tpu.memory_space<vmem>>, vector<8x8xbf16>
    tpu.vector_store %arg20[%c0_31, %c8_32], %71 {strides = array<i32>} : memref<8x32xbf16, #tpu.memory_space<vmem>>, vector<8x8xbf16>,
    %73 = vector.extract_strided_slice %34 {offsets = [0, 16], sizes = [8, 8], strides = [1, 1]} : vector<8x32xf32> to vector<8x8xf32>
    %74 = arith.truncf %73 : vector<8x8xf32> to vector<8x8xbf16>
    %c0_33 = arith.constant 0 : index
    %c16 = arith.constant 16 : index
    %75 = vector.load %arg19[%c0_33, %c16] : memref<8x64xbf16, #tpu.memory_space<vmem>>, vector<8x8xbf16>
    %c0_34 = arith.constant 0 : index
    %c48 = arith.constant 48 : index
    %76 = vector.load %arg19[%c0_34, %c48] : memref<8x64xbf16, #tpu.memory_space<vmem>>, vector<8x8xbf16>
    %cst_35 = arith.constant dense<0.000000e+00> : vector<8x8xf32>
    %77 = tpu.matmul %74, %75, %cst_35 {dimension_numbers = #tpu.dot_dimension_numbers<[1], [1], [0], [0], [0, 0, 1, 0], [], []>} : vector<8x8xbf16>, vector<8x8xbf16>, vector<8x8xf32> -> vector<8x8xf32>
    %cst_36 = arith.constant dense<0xFF800000> : vector<8xf32>
    %78 = vector.multi_reduction <maximumf>, %77, %cst_36 [1] : vector<8x8xf32> to vector<8xf32>
    %79 = vector.shape_cast %78 : vector<8xf32> to vector<8x1xf32>
    %80 = vector.broadcast %79 : vector<8x1xf32> to vector<8x8xf32>
    %81 = arith.subf %77, %80 : vector<8x8xf32>
    %82 = math.exp %81 : vector<8x8xf32>
    %cst_37 = arith.constant dense<0.000000e+00> : vector<8xf32>
    %83 = vector.multi_reduction <add>, %82, %cst_37 [1] : vector<8x8xf32> to vector<8xf32>
    %84 = vector.shape_cast %83 : vector<8xf32> to vector<8x1xf32>
    %85 = tpu.reciprocal %84 : vector<8x1xf32> -> vector<8x1xf32>
    %86 = vector.broadcast %85 : vector<8x1xf32> to vector<8x8xf32>
    %87 = arith.mulf %82, %86 : vector<8x8xf32>
    %88 = arith.truncf %87 : vector<8x8xf32> to vector<8x8xbf16>
    %cst_38 = arith.constant dense<0.000000e+00> : vector<8x8xf32>
    %89 = tpu.matmul %88, %76, %cst_38 {dimension_numbers = #tpu.dot_dimension_numbers<[1], [0], [0], [1], [0, 0, 1, 1], [], []>} : vector<8x8xbf16>, vector<8x8xbf16>, vector<8x8xf32> -> vector<8x8xf32>
    %90 = arith.truncf %89 : vector<8x8xf32> to vector<8x8xbf16>
    %c0_39 = arith.constant 0 : index
    %c16_40 = arith.constant 16 : index
    %91 = vector.load %arg20[%c0_39, %c16_40] : memref<8x32xbf16, #tpu.memory_space<vmem>>, vector<8x8xbf16>
    tpu.vector_store %arg20[%c0_39, %c16_40], %90 {strides = array<i32>} : memref<8x32xbf16, #tpu.memory_space<vmem>>, vector<8x8xbf16>,
    %92 = vector.extract_strided_slice %34 {offsets = [0, 24], sizes = [8, 8], strides = [1, 1]} : vector<8x32xf32> to vector<8x8xf32>
    %93 = arith.truncf %92 : vector<8x8xf32> to vector<8x8xbf16>
    %c0_41 = arith.constant 0 : index
    %c24 = arith.constant 24 : index
    %94 = vector.load %arg19[%c0_41, %c24] : memref<8x64xbf16, #tpu.memory_space<vmem>>, vector<8x8xbf16>
    %c0_42 = arith.constant 0 : index
    %c56 = arith.constant 56 : index
    %95 = vector.load %arg19[%c0_42, %c56] : memref<8x64xbf16, #tpu.memory_space<vmem>>, vector<8x8xbf16>
    %cst_43 = arith.constant dense<0.000000e+00> : vector<8x8xf32>
    %96 = tpu.matmul %93, %94, %cst_43 {dimension_numbers = #tpu.dot_dimension_numbers<[1], [1], [0], [0], [0, 0, 1, 0], [], []>} : vector<8x8xbf16>, vector<8x8xbf16>, vector<8x8xf32> -> vector<8x8xf32>
    %cst_44 = arith.constant dense<0xFF800000> : vector<8xf32>
    %97 = vector.multi_reduction <maximumf>, %96, %cst_44 [1] : vector<8x8xf32> to vector<8xf32>
    %98 = vector.shape_cast %97 : vector<8xf32> to vector<8x1xf32>
    %99 = vector.broadcast %98 : vector<8x1xf32> to vector<8x8xf32>
    %100 = arith.subf %96, %99 : vector<8x8xf32>
    %101 = math.exp %100 : vector<8x8xf32>
    %cst_45 = arith.constant dense<0.000000e+00> : vector<8xf32>
    %102 = vector.multi_reduction <add>, %101, %cst_45 [1] : vector<8x8xf32> to vector<8xf32>
    %103 = vector.shape_cast %102 : vector<8xf32> to vector<8x1xf32>
    %104 = tpu.reciprocal %103 : vector<8x1xf32> -> vector<8x1xf32>
    %105 = vector.broadcast %104 : vector<8x1xf32> to vector<8x8xf32>
    %106 = arith.mulf %101, %105 : vector<8x8xf32>
    %107 = arith.truncf %106 : vector<8x8xf32> to vector<8x8xbf16>
    %cst_46 = arith.constant dense<0.000000e+00> : vector<8x8xf32>
    %108 = tpu.matmul %107, %95, %cst_46 {dimension_numbers = #tpu.dot_dimension_numbers<[1], [0], [0], [1], [0, 0, 1, 1], [], []>} : vector<8x8xbf16>, vector<8x8xbf16>, vector<8x8xf32> -> vector<8x8xf32>
    %109 = arith.truncf %108 : vector<8x8xf32> to vector<8x8xbf16>
    %c0_47 = arith.constant 0 : index
    %c24_48 = arith.constant 24 : index
    %110 = vector.load %arg20[%c0_47, %c24_48] : memref<8x32xbf16, #tpu.memory_space<vmem>>, vector<8x8xbf16>
    tpu.vector_store %arg20[%c0_47, %c24_48], %109 {strides = array<i32>} : memref<8x32xbf16, #tpu.memory_space<vmem>>, vector<8x8xbf16>,
    %c0_49 = arith.constant 0 : index
    %c0_50 = arith.constant 0 : index
    %111 = vector.load %arg20[%c0_49, %c0_50] : memref<8x32xbf16, #tpu.memory_space<vmem>>, vector<8x32xbf16>
    %c0_51 = arith.constant 0 : index
    %c0_52 = arith.constant 0 : index
    %112 = vector.load %arg10[%c0_51, %c0_52] : memref<32x32xbf16, #tpu.memory_space<vmem>>, vector<32x32xbf16>
    %cst_53 = arith.constant dense<0.000000e+00> : vector<8x32xf32>
    %113 = tpu.matmul %111, %112, %cst_53 {dimension_numbers = #tpu.dot_dimension_numbers<[1], [0], [0], [1], [0, 0, 1, 1], [], []>} : vector<8x32xbf16>, vector<32x32xbf16>, vector<8x32xf32> -> vector<8x32xf32>
    %c0_54 = arith.constant 0 : index
    %c0_55 = arith.constant 0 : index
    %114 = vector.load %arg11[%c0_54, %c0_55] : memref<1x32xf32, #tpu.memory_space<vmem>>, vector<1x32xf32>
    %115 = vector.broadcast %114 : vector<1x32xf32> to vector<8x32xf32>
    %116 = arith.addf %113, %115 : vector<8x32xf32>
    %117 = arith.addf %4, %116 : vector<8x32xf32>
    %c0_56 = arith.constant 0 : index
    %c0_57 = arith.constant 0 : index
    %118 = vector.load %arg12[%c0_56, %c0_57] : memref<1x32xf32, #tpu.memory_space<vmem>>, vector<1x32xf32>
    %c0_58 = arith.constant 0 : index
    %c0_59 = arith.constant 0 : index
    %119 = vector.load %arg13[%c0_58, %c0_59] : memref<1x32xf32, #tpu.memory_space<vmem>>, vector<1x32xf32>
    %cst_60 = arith.constant dense<0.000000e+00> : vector<8xf32>
    %120 = vector.multi_reduction <add>, %117, %cst_60 [1] : vector<8x32xf32> to vector<8xf32>
    %121 = vector.shape_cast %120 : vector<8xf32> to vector<8x1xf32>
    %122 = arith.mulf %117, %117 : vector<8x32xf32>
    %cst_61 = arith.constant dense<0.000000e+00> : vector<8xf32>
    %123 = vector.multi_reduction <add>, %122, %cst_61 [1] : vector<8x32xf32> to vector<8xf32>
    %124 = vector.shape_cast %123 : vector<8xf32> to vector<8x1xf32>
    %cst_62 = arith.constant 3.125000e-02 : f32
    %125 = vector.broadcast %cst_62 : f32 to vector<8x1xf32>
    %126 = arith.mulf %121, %125 : vector<8x1xf32>
    %cst_63 = arith.constant 3.125000e-02 : f32
    %127 = vector.broadcast %cst_63 : f32 to vector<8x1xf32>
    %128 = arith.mulf %124, %127 : vector<8x1xf32>
    %129 = arith.mulf %126, %126 : vector<8x1xf32>
    %130 = arith.subf %128, %129 : vector<8x1xf32>
    %131 = vector.broadcast %126 : vector<8x1xf32> to vector<8x32xf32>
    %132 = arith.subf %117, %131 : vector<8x32xf32>
    %cst_64 = arith.constant 9.99999974E-6 : f32
    %133 = vector.broadcast %cst_64 : f32 to vector<8x1xf32>
    %134 = arith.addf %130, %133 : vector<8x1xf32>
    %135 = math.rsqrt %134 : vector<8x1xf32>
    %136 = vector.broadcast %135 : vector<8x1xf32> to vector<8x32xf32>
    %137 = arith.mulf %132, %136 : vector<8x32xf32>
    %138 = vector.broadcast %118 : vector<1x32xf32> to vector<8x32xf32>
    %139 = arith.mulf %137, %138 : vector<8x32xf32>
    %140 = vector.broadcast %119 : vector<1x32xf32> to vector<8x32xf32>
    %141 = arith.addf %139, %140 : vector<8x32xf32>
    %142 = arith.truncf %141 : vector<8x32xf32> to vector<8x32xbf16>
    %c0_65 = arith.constant 0 : index
    %c0_66 = arith.constant 0 : index
    %143 = vector.load %arg14[%c0_65, %c0_66] : memref<32x128xbf16, #tpu.memory_space<vmem>>, vector<32x128xbf16>
    %cst_67 = arith.constant dense<0.000000e+00> : vector<8x128xf32>
    %144 = tpu.matmul %142, %143, %cst_67 {dimension_numbers = #tpu.dot_dimension_numbers<[1], [0], [0], [1], [0, 0, 1, 1], [], []>} : vector<8x32xbf16>, vector<32x128xbf16>, vector<8x128xf32> -> vector<8x128xf32>
    %c0_68 = arith.constant 0 : index
    %c0_69 = arith.constant 0 : index
    %145 = vector.load %arg15[%c0_68, %c0_69] : memref<1x128xf32, #tpu.memory_space<vmem>>, vector<1x128xf32>
    %146 = vector.broadcast %145 : vector<1x128xf32> to vector<8x128xf32>
    %147 = arith.addf %144, %146 : vector<8x128xf32>
    %cst_70 = arith.constant 5.000000e-01 : f32
    %148 = vector.broadcast %cst_70 : f32 to vector<8x128xf32>
    %149 = arith.mulf %148, %147 : vector<8x128xf32>
    %cst_71 = arith.constant 0.707106769 : f32
    %150 = vector.broadcast %cst_71 : f32 to vector<8x128xf32>
    %151 = arith.mulf %147, %150 : vector<8x128xf32>
    %152 = math.absf %151 : vector<8x128xf32>
    %cst_72 = arith.constant 0.327591091 : f32
    %153 = vector.broadcast %cst_72 : f32 to vector<8x128xf32>
    %154 = arith.mulf %153, %152 : vector<8x128xf32>
    %cst_73 = arith.constant 1.000000e+00 : f32
    %155 = vector.broadcast %cst_73 : f32 to vector<8x128xf32>
    %156 = arith.addf %155, %154 : vector<8x128xf32>
    %157 = tpu.reciprocal %156 : vector<8x128xf32> -> vector<8x128xf32>
    %cst_74 = arith.constant 1.06140542 : f32
    %158 = vector.broadcast %cst_74 : f32 to vector<8x128xf32>
    %159 = arith.mulf %157, %158 : vector<8x128xf32>
    %cst_75 = arith.constant -1.45315206 : f32
    %160 = vector.broadcast %cst_75 : f32 to vector<8x128xf32>
    %161 = arith.addf %160, %159 : vector<8x128xf32>
    %162 = arith.mulf %157, %161 : vector<8x128xf32>
    %cst_76 = arith.constant 1.42141378 : f32
    %163 = vector.broadcast %cst_76 : f32 to vector<8x128xf32>
    %164 = arith.addf %163, %162 : vector<8x128xf32>
    %165 = arith.mulf %157, %164 : vector<8x128xf32>
    %cst_77 = arith.constant -0.284496725 : f32
    %166 = vector.broadcast %cst_77 : f32 to vector<8x128xf32>
    %167 = arith.addf %166, %165 : vector<8x128xf32>
    %168 = arith.mulf %157, %167 : vector<8x128xf32>
    %cst_78 = arith.constant 0.254829586 : f32
    %169 = vector.broadcast %cst_78 : f32 to vector<8x128xf32>
    %170 = arith.addf %169, %168 : vector<8x128xf32>
    %171 = arith.mulf %157, %170 : vector<8x128xf32>
    %172 = arith.mulf %152, %152 : vector<8x128xf32>
    %cst_79 = arith.constant 0.000000e+00 : f32
    %173 = vector.broadcast %cst_79 : f32 to vector<8x128xf32>
    %174 = arith.subf %173, %172 : vector<8x128xf32>
    %175 = math.exp %174 : vector<8x128xf32>
    %176 = arith.mulf %171, %175 : vector<8x128xf32>
    %cst_80 = arith.constant 1.000000e+00 : f32
    %177 = vector.broadcast %cst_80 : f32 to vector<8x128xf32>
    %178 = arith.subf %177, %176 : vector<8x128xf32>
    %cst_81 = arith.constant 0.000000e+00 : f32
    %179 = vector.broadcast %cst_81 : f32 to vector<8x128xf32>
    %180 = arith.cmpf olt, %151, %179 : vector<8x128xf32>
    %cst_82 = arith.constant 0.000000e+00 : f32
    %181 = vector.broadcast %cst_82 : f32 to vector<8x128xf32>
    %182 = arith.subf %181, %178 : vector<8x128xf32>
    %183 = arith.select %180, %182, %178 : vector<8x128xi1>, vector<8x128xf32>
    %cst_83 = arith.constant 1.000000e+00 : f32
    %184 = vector.broadcast %cst_83 : f32 to vector<8x128xf32>
    %185 = arith.addf %184, %183 : vector<8x128xf32>
    %186 = arith.mulf %149, %185 : vector<8x128xf32>
    %187 = arith.truncf %186 : vector<8x128xf32> to vector<8x128xbf16>
    %c0_84 = arith.constant 0 : index
    %c0_85 = arith.constant 0 : index
    %188 = vector.load %arg16[%c0_84, %c0_85] : memref<128x32xbf16, #tpu.memory_space<vmem>>, vector<128x32xbf16>
    %cst_86 = arith.constant dense<0.000000e+00> : vector<8x32xf32>
    %189 = tpu.matmul %187, %188, %cst_86 {dimension_numbers = #tpu.dot_dimension_numbers<[1], [0], [0], [1], [0, 0, 1, 1], [], []>} : vector<8x128xbf16>, vector<128x32xbf16>, vector<8x32xf32> -> vector<8x32xf32>
    %c0_87 = arith.constant 0 : index
    %c0_88 = arith.constant 0 : index
    %190 = vector.load %arg17[%c0_87, %c0_88] : memref<1x32xf32, #tpu.memory_space<vmem>>, vector<1x32xf32>
    %191 = vector.broadcast %190 : vector<1x32xf32> to vector<8x32xf32>
    %192 = arith.addf %189, %191 : vector<8x32xf32>
    %193 = arith.addf %117, %192 : vector<8x32xf32>
    %c0_89 = arith.constant 0 : index
    %c0_90 = arith.constant 0 : index
    %c0_91 = arith.constant 0 : index
    %194 = vector.load %arg18[%c0_89, %c0_90, %c0_91] : memref<1x8x32xf32, #tpu.memory_space<vmem>>, vector<1x8x32xf32>
    %195 = vector.shape_cast %194 : vector<1x8x32xf32> to vector<8x32xf32>
    %196 = vector.shape_cast %193 : vector<8x32xf32> to vector<1x8x32xf32>
    tpu.vector_store %arg18[%c0_89, %c0_90, %c0_91], %196 {strides = array<i32>} : memref<1x8x32xf32, #tpu.memory_space<vmem>>, vector<1x8x32xf32>,
    return
  }
  func.func @transform_0(%arg0: i32, %arg1: i32) -> (i32, i32, i32) {
    %c0_i32 = arith.constant 0 : i32
    %c0_i32_0 = arith.constant 0 : i32
    %c0_i32_1 = arith.constant 0 : i32
    return %arg0, %c0_i32, %c0_i32_0 : i32, i32, i32
  }
  func.func @transform_1(%arg0: i32, %arg1: i32) -> (i32, i32, i32) {
    %c0_i32 = arith.constant 0 : i32
    %c0_i32_0 = arith.constant 0 : i32
    return %arg0, %arg1, %c0_i32 : i32, i32, i32
  }
  func.func @transform_2(%arg0: i32, %arg1: i32) -> (i32, i32) {
    %c0_i32 = arith.constant 0 : i32
    %c0_i32_0 = arith.constant 0 : i32
    %c0_i32_1 = arith.constant 0 : i32
    return %c0_i32, %c0_i32_0 : i32, i32
  }
  func.func @transform_3(%arg0: i32, %arg1: i32) -> (i32, i32) {
    %c0_i32 = arith.constant 0 : i32
    %c0_i32_0 = arith.constant 0 : i32
    %c0_i32_1 = arith.constant 0 : i32
    return %c0_i32, %c0_i32_0 : i32, i32
  }
  func.func @transform_4(%arg0: i32, %arg1: i32) -> (i32, i32) {
    %c0_i32 = arith.constant 0 : i32
    %c0_i32_0 = arith.constant 0 : i32
    %c0_i32_1 = arith.constant 0 : i32
    return %c0_i32, %c0_i32_0 : i32, i32
  }
  func.func @transform_5(%arg0: i32, %arg1: i32) -> (i32, i32) {
    %c0_i32 = arith.constant 0 : i32
    %c0_i32_0 = arith.constant 0 : i32
    %c0_i32_1 = arith.constant 0 : i32
    return %c0_i32, %c0_i32_0 : i32, i32
  }
  func.func @transform_6(%arg0: i32, %arg1: i32) -> (i32, i32) {
    %c0_i32 = arith.constant 0 : i32
    %c0_i32_0 = arith.constant 0 : i32
    %c0_i32_1 = arith.constant 0 : i32
    return %c0_i32, %c0_i32_0 : i32, i32
  }
  func.func @transform_7(%arg0: i32, %arg1: i32) -> (i32, i32) {
    %c0_i32 = arith.constant 0 : i32
    %c0_i32_0 = arith.constant 0 : i32
    %c0_i32_1 = arith.constant 0 : i32
    return %c0_i32, %c0_i32_0 : i32, i32
  }
  func.func @transform_8(%arg0: i32, %arg1: i32) -> (i32, i32) {
    %c0_i32 = arith.constant 0 : i32
    %c0_i32_0 = arith.constant 0 : i32
    %c0_i32_1 = arith.constant 0 : i32
    return %c0_i32, %c0_i32_0 : i32, i32
  }
  func.func @transform_9(%arg0: i32, %arg1: i32) -> (i32, i32) {
    %c0_i32 = arith.constant 0 : i32
    %c0_i32_0 = arith.constant 0 : i32
    %c0_i32_1 = arith.constant 0 : i32
    return %c0_i32, %c0_i32_0 : i32, i32
  }
  func.func @transform_10(%arg0: i32, %arg1: i32) -> (i32, i32) {
    %c0_i32 = arith.constant 0 : i32
    %c0_i32_0 = arith.constant 0 : i32
    %c0_i32_1 = arith.constant 0 : i32
    return %c0_i32, %c0_i32_0 : i32, i32
  }
  func.func @transform_11(%arg0: i32, %arg1: i32) -> (i32, i32) {
    %c0_i32 = arith.constant 0 : i32
    %c0_i32_0 = arith.constant 0 : i32
    %c0_i32_1 = arith.constant 0 : i32
    return %c0_i32, %c0_i32_0 : i32, i32
  }
  func.func @transform_12(%arg0: i32, %arg1: i32) -> (i32, i32) {
    %c0_i32 = arith.constant 0 : i32
    %c0_i32_0 = arith.constant 0 : i32
    %c0_i32_1 = arith.constant 0 : i32
    return %c0_i32, %c0_i32_0 : i32, i32
  }
  func.func @transform_13(%arg0: i32, %arg1: i32) -> (i32, i32) {
    %c0_i32 = arith.constant 0 : i32
    %c0_i32_0 = arith.constant 0 : i32
    %c0_i32_1 = arith.constant 0 : i32
    return %c0_i32, %c0_i32_0 : i32, i32
  }
  func.func @transform_14(%arg0: i32, %arg1: i32) -> (i32, i32) {
    %c0_i32 = arith.constant 0 : i32
    %c0_i32_0 = arith.constant 0 : i32
    %c0_i32_1 = arith.constant 0 : i32
    return %c0_i32, %c0_i32_0 : i32, i32
  }
  func.func @transform_15(%arg0: i32, %arg1: i32) -> (i32, i32) {
    %c0_i32 = arith.constant 0 : i32
    %c0_i32_0 = arith.constant 0 : i32
    %c0_i32_1 = arith.constant 0 : i32
    return %c0_i32, %c0_i32_0 : i32, i32
  }
  func.func @transform_16(%arg0: i32, %arg1: i32) -> (i32, i32, i32) {
    %c0_i32 = arith.constant 0 : i32
    %c0_i32_0 = arith.constant 0 : i32
    return %arg0, %arg1, %c0_i32 : i32, i32, i32
  }
}

module attributes {stable_mosaic.version = 11 : i64} {
  func.func @_encoder_kernel(%arg0: i32, %arg1: i32, %arg2: memref<1x8x32xf32, #tpu.memory_space<vmem>>, %arg3: memref<1x8x32xf32, #tpu.memory_space<vmem>>, %arg4: memref<1x32xf32, #tpu.memory_space<vmem>>, %arg5: memref<1x32xf32, #tpu.memory_space<vmem>>, %arg6: memref<32x32xbf16, #tpu.memory_space<vmem>>, %arg7: memref<1x32xf32, #tpu.memory_space<vmem>>, %arg8: memref<32x64xbf16, #tpu.memory_space<vmem>>, %arg9: memref<1x64xf32, #tpu.memory_space<vmem>>, %arg10: memref<32x32xbf16, #tpu.memory_space<vmem>>, %arg11: memref<1x32xf32, #tpu.memory_space<vmem>>, %arg12: memref<1x32xf32, #tpu.memory_space<vmem>>, %arg13: memref<1x32xf32, #tpu.memory_space<vmem>>, %arg14: memref<32x128xbf16, #tpu.memory_space<vmem>>, %arg15: memref<1x128xf32, #tpu.memory_space<vmem>>, %arg16: memref<128x32xbf16, #tpu.memory_space<vmem>>, %arg17: memref<1x32xf32, #tpu.memory_space<vmem>>, %arg18: memref<1x8x32xf32, #tpu.memory_space<vmem>>, %arg19: memref<8x64xbf16, #tpu.memory_space<vmem>>, %arg20: memref<8x32xbf16, #tpu.memory_space<vmem>>) attributes {dimension_semantics = [#tpu.dimension_semantics<parallel>, #tpu.dimension_semantics<arbitrary>], iteration_bounds = array<i64: 2, 1>, scalar_prefetch = 0 : i64, scratch_operands = 2 : i64, tpu.core_type = #tpu.core_type<tc>, window_params = [{transform_indices = @transform_0, window_bounds = array<i64: 1, 8, 32>}, {transform_indices = @transform_1, window_bounds = array<i64: 1, 8, 32>}, {pipeline_mode = #tpu.pipeline_mode<synchronous>, transform_indices = @transform_2, window_bounds = array<i64: 1, 32>}, {pipeline_mode = #tpu.pipeline_mode<synchronous>, transform_indices = @transform_3, window_bounds = array<i64: 1, 32>}, {pipeline_mode = #tpu.pipeline_mode<synchronous>, transform_indices = @transform_4, window_bounds = array<i64: 32, 32>}, {pipeline_mode = #tpu.pipeline_mode<synchronous>, transform_indices = @transform_5, window_bounds = array<i64: 1, 32>}, {pipeline_mode = #tpu.pipeline_mode<synchronous>, transform_indices = @transform_6, window_bounds = array<i64: 32, 64>}, {pipeline_mode = #tpu.pipeline_mode<synchronous>, transform_indices = @transform_7, window_bounds = array<i64: 1, 64>}, {pipeline_mode = #tpu.pipeline_mode<synchronous>, transform_indices = @transform_8, window_bounds = array<i64: 32, 32>}, {pipeline_mode = #tpu.pipeline_mode<synchronous>, transform_indices = @transform_9, window_bounds = array<i64: 1, 32>}, {pipeline_mode = #tpu.pipeline_mode<synchronous>, transform_indices = @transform_10, window_bounds = array<i64: 1, 32>}, {pipeline_mode = #tpu.pipeline_mode<synchronous>, transform_indices = @transform_11, window_bounds = array<i64: 1, 32>}, {pipeline_mode = #tpu.pipeline_mode<synchronous>, transform_indices = @transform_12, window_bounds = array<i64: 32, 128>}, {pipeline_mode = #tpu.pipeline_mode<synchronous>, transform_indices = @transform_13, window_bounds = array<i64: 1, 128>}, {pipeline_mode = #tpu.pipeline_mode<synchronous>, transform_indices = @transform_14, window_bounds = array<i64: 128, 32>}, {pipeline_mode = #tpu.pipeline_mode<synchronous>, transform_indices = @transform_15, window_bounds = array<i64: 1, 32>}, {transform_indices = @transform_16, window_bounds = array<i64: 1, 8, 32>}]} {
    %c0_i32 = arith.constant 0 : i32
    %0 = arith.cmpi eq, %arg1, %c0_i32 : i32
    %1 = arith.extui %0 : i1 to i32
    %c0_i32_0 = arith.constant 0 : i32
    %2 = arith.cmpi ne, %1, %c0_i32_0 : i32
    scf.if %2 {
      %c0_92 = arith.constant 0 : index
      %c0_93 = arith.constant 0 : index
      %c0_94 = arith.constant 0 : index
      %197 = vector.load %arg2[%c0_92, %c0_93, %c0_94] : memref<1x8x32xf32, #tpu.memory_space<vmem>>, vector<1x8x32xf32>
      %198 = vector.shape_cast %197 : vector<1x8x32xf32> to vector<8x32xf32>
      %c0_95 = arith.constant 0 : index
      %c0_96 = arith.constant 0 : index
      %199 = vector.load %arg4[%c0_95, %c0_96] : memref<1x32xf32, #tpu.memory_space<vmem>>, vector<1x32xf32>
      %c0_97 = arith.constant 0 : index
      %c0_98 = arith.constant 0 : index
      %200 = vector.load %arg5[%c0_97, %c0_98] : memref<1x32xf32, #tpu.memory_space<vmem>>, vector<1x32xf32>
      %cst_99 = arith.constant dense<0.000000e+00> : vector<8xf32>
      %201 = vector.multi_reduction <add>, %198, %cst_99 [1] : vector<8x32xf32> to vector<8xf32>
      %202 = vector.shape_cast %201 : vector<8xf32> to vector<8x1xf32>
      %203 = arith.mulf %198, %198 : vector<8x32xf32>
      %cst_100 = arith.constant dense<0.000000e+00> : vector<8xf32>
      %204 = vector.multi_reduction <add>, %203, %cst_100 [1] : vector<8x32xf32> to vector<8xf32>
      %205 = vector.shape_cast %204 : vector<8xf32> to vector<8x1xf32>
      %cst_101 = arith.constant 3.125000e-02 : f32
      %206 = vector.broadcast %cst_101 : f32 to vector<8x1xf32>
      %207 = arith.mulf %202, %206 : vector<8x1xf32>
      %cst_102 = arith.constant 3.125000e-02 : f32
      %208 = vector.broadcast %cst_102 : f32 to vector<8x1xf32>
      %209 = arith.mulf %205, %208 : vector<8x1xf32>
      %210 = arith.mulf %207, %207 : vector<8x1xf32>
      %211 = arith.subf %209, %210 : vector<8x1xf32>
      %212 = vector.broadcast %207 : vector<8x1xf32> to vector<8x32xf32>
      %213 = arith.subf %198, %212 : vector<8x32xf32>
      %cst_103 = arith.constant 9.99999974E-6 : f32
      %214 = vector.broadcast %cst_103 : f32 to vector<8x1xf32>
      %215 = arith.addf %211, %214 : vector<8x1xf32>
      %216 = math.rsqrt %215 : vector<8x1xf32>
      %217 = vector.broadcast %216 : vector<8x1xf32> to vector<8x32xf32>
      %218 = arith.mulf %213, %217 : vector<8x32xf32>
      %219 = vector.broadcast %199 : vector<1x32xf32> to vector<8x32xf32>
      %220 = arith.mulf %218, %219 : vector<8x32xf32>
      %221 = vector.broadcast %200 : vector<1x32xf32> to vector<8x32xf32>
      %222 = arith.addf %220, %221 : vector<8x32xf32>
      %223 = arith.truncf %222 : vector<8x32xf32> to vector<8x32xbf16>
      %c0_104 = arith.constant 0 : index
      %c0_105 = arith.constant 0 : index
      %224 = vector.load %arg8[%c0_104, %c0_105] : memref<32x64xbf16, #tpu.memory_space<vmem>>, vector<32x64xbf16>
      %cst_106 = arith.constant dense<0.000000e+00> : vector<8x64xf32>
      %225 = tpu.matmul %223, %224, %cst_106 {dimension_numbers = #tpu.dot_dimension_numbers<[1], [0], [0], [1], [0, 0, 1, 1], [], []>} : vector<8x32xbf16>, vector<32x64xbf16>, vector<8x64xf32> -> vector<8x64xf32>
      %c0_107 = arith.constant 0 : index
      %c0_108 = arith.constant 0 : index
      %226 = vector.load %arg9[%c0_107, %c0_108] : memref<1x64xf32, #tpu.memory_space<vmem>>, vector<1x64xf32>
      %227 = vector.broadcast %226 : vector<1x64xf32> to vector<8x64xf32>
      %228 = arith.addf %225, %227 : vector<8x64xf32>
      %229 = arith.truncf %228 : vector<8x64xf32> to vector<8x64xbf16>
      %c0_109 = arith.constant 0 : index
      %c0_110 = arith.constant 0 : index
      %230 = vector.load %arg19[%c0_109, %c0_110] : memref<8x64xbf16, #tpu.memory_space<vmem>>, vector<8x64xbf16>
      tpu.vector_store %arg19[%c0_109, %c0_110], %229 {strides = array<i32>} : memref<8x64xbf16, #tpu.memory_space<vmem>>, vector<8x64xbf16>,
    } else {
    }
    %c0 = arith.constant 0 : index
    %c0_1 = arith.constant 0 : index
    %c0_2 = arith.constant 0 : index
    %3 = vector.load %arg3[%c0, %c0_1, %c0_2] : memref<1x8x32xf32, #tpu.memory_space<vmem>>, vector<1x8x32xf32>
    %4 = vector.shape_cast %3 : vector<1x8x32xf32> to vector<8x32xf32>
    %c0_3 = arith.constant 0 : index
    %c0_4 = arith.constant 0 : index
    %5 = vector.load %arg4[%c0_3, %c0_4] : memref<1x32xf32, #tpu.memory_space<vmem>>, vector<1x32xf32>
    %c0_5 = arith.constant 0 : index
    %c0_6 = arith.constant 0 : index
    %6 = vector.load %arg5[%c0_5, %c0_6] : memref<1x32xf32, #tpu.memory_space<vmem>>, vector<1x32xf32>
    %cst = arith.constant dense<0.000000e+00> : vector<8xf32>
    %7 = vector.multi_reduction <add>, %4, %cst [1] : vector<8x32xf32> to vector<8xf32>
    %8 = vector.shape_cast %7 : vector<8xf32> to vector<8x1xf32>
    %9 = arith.mulf %4, %4 : vector<8x32xf32>
    %cst_7 = arith.constant dense<0.000000e+00> : vector<8xf32>
    %10 = vector.multi_reduction <add>, %9, %cst_7 [1] : vector<8x32xf32> to vector<8xf32>
    %11 = vector.shape_cast %10 : vector<8xf32> to vector<8x1xf32>
    %cst_8 = arith.constant 3.125000e-02 : f32
    %12 = vector.broadcast %cst_8 : f32 to vector<8x1xf32>
    %13 = arith.mulf %8, %12 : vector<8x1xf32>
    %cst_9 = arith.constant 3.125000e-02 : f32
    %14 = vector.broadcast %cst_9 : f32 to vector<8x1xf32>
    %15 = arith.mulf %11, %14 : vector<8x1xf32>
    %16 = arith.mulf %13, %13 : vector<8x1xf32>
    %17 = arith.subf %15, %16 : vector<8x1xf32>
    %18 = vector.broadcast %13 : vector<8x1xf32> to vector<8x32xf32>
    %19 = arith.subf %4, %18 : vector<8x32xf32>
    %cst_10 = arith.constant 9.99999974E-6 : f32
    %20 = vector.broadcast %cst_10 : f32 to vector<8x1xf32>
    %21 = arith.addf %17, %20 : vector<8x1xf32>
    %22 = math.rsqrt %21 : vector<8x1xf32>
    %23 = vector.broadcast %22 : vector<8x1xf32> to vector<8x32xf32>
    %24 = arith.mulf %19, %23 : vector<8x32xf32>
    %25 = vector.broadcast %5 : vector<1x32xf32> to vector<8x32xf32>
    %26 = arith.mulf %24, %25 : vector<8x32xf32>
    %27 = vector.broadcast %6 : vector<1x32xf32> to vector<8x32xf32>
    %28 = arith.addf %26, %27 : vector<8x32xf32>
    %29 = arith.truncf %28 : vector<8x32xf32> to vector<8x32xbf16>
    %c0_11 = arith.constant 0 : index
    %c0_12 = arith.constant 0 : index
    %30 = vector.load %arg6[%c0_11, %c0_12] : memref<32x32xbf16, #tpu.memory_space<vmem>>, vector<32x32xbf16>
    %cst_13 = arith.constant dense<0.000000e+00> : vector<8x32xf32>
    %31 = tpu.matmul %29, %30, %cst_13 {dimension_numbers = #tpu.dot_dimension_numbers<[1], [0], [0], [1], [0, 0, 1, 1], [], []>} : vector<8x32xbf16>, vector<32x32xbf16>, vector<8x32xf32> -> vector<8x32xf32>
    %c0_14 = arith.constant 0 : index
    %c0_15 = arith.constant 0 : index
    %32 = vector.load %arg7[%c0_14, %c0_15] : memref<1x32xf32, #tpu.memory_space<vmem>>, vector<1x32xf32>
    %33 = vector.broadcast %32 : vector<1x32xf32> to vector<8x32xf32>
    %34 = arith.addf %31, %33 : vector<8x32xf32>
    %35 = vector.extract_strided_slice %34 {offsets = [0, 0], sizes = [8, 8], strides = [1, 1]} : vector<8x32xf32> to vector<8x8xf32>
    %36 = arith.truncf %35 : vector<8x8xf32> to vector<8x8xbf16>
    %c0_16 = arith.constant 0 : index
    %c0_17 = arith.constant 0 : index
    %37 = vector.load %arg19[%c0_16, %c0_17] : memref<8x64xbf16, #tpu.memory_space<vmem>>, vector<8x8xbf16>
    %c0_18 = arith.constant 0 : index
    %c32 = arith.constant 32 : index
    %38 = vector.load %arg19[%c0_18, %c32] : memref<8x64xbf16, #tpu.memory_space<vmem>>, vector<8x8xbf16>
    %cst_19 = arith.constant dense<0.000000e+00> : vector<8x8xf32>
    %39 = tpu.matmul %36, %37, %cst_19 {dimension_numbers = #tpu.dot_dimension_numbers<[1], [1], [0], [0], [0, 0, 1, 0], [], []>} : vector<8x8xbf16>, vector<8x8xbf16>, vector<8x8xf32> -> vector<8x8xf32>
    %cst_20 = arith.constant dense<0xFF800000> : vector<8xf32>
    %40 = vector.multi_reduction <maximumf>, %39, %cst_20 [1] : vector<8x8xf32> to vector<8xf32>
    %41 = vector.shape_cast %40 : vector<8xf32> to vector<8x1xf32>
    %42 = vector.broadcast %41 : vector<8x1xf32> to vector<8x8xf32>
    %43 = arith.subf %39, %42 : vector<8x8xf32>
    %44 = math.exp %43 : vector<8x8xf32>
    %cst_21 = arith.constant dense<0.000000e+00> : vector<8xf32>
    %45 = vector.multi_reduction <add>, %44, %cst_21 [1] : vector<8x8xf32> to vector<8xf32>
    %46 = vector.shape_cast %45 : vector<8xf32> to vector<8x1xf32>
    %47 = tpu.reciprocal %46 : vector<8x1xf32> -> vector<8x1xf32>
    %48 = vector.broadcast %47 : vector<8x1xf32> to vector<8x8xf32>
    %49 = arith.mulf %44, %48 : vector<8x8xf32>
    %50 = arith.truncf %49 : vector<8x8xf32> to vector<8x8xbf16>
    %cst_22 = arith.constant dense<0.000000e+00> : vector<8x8xf32>
    %51 = tpu.matmul %50, %38, %cst_22 {dimension_numbers = #tpu.dot_dimension_numbers<[1], [0], [0], [1], [0, 0, 1, 1], [], []>} : vector<8x8xbf16>, vector<8x8xbf16>, vector<8x8xf32> -> vector<8x8xf32>
    %52 = arith.truncf %51 : vector<8x8xf32> to vector<8x8xbf16>
    %c0_23 = arith.constant 0 : index
    %c0_24 = arith.constant 0 : index
    %53 = vector.load %arg20[%c0_23, %c0_24] : memref<8x32xbf16, #tpu.memory_space<vmem>>, vector<8x8xbf16>
    tpu.vector_store %arg20[%c0_23, %c0_24], %52 {strides = array<i32>} : memref<8x32xbf16, #tpu.memory_space<vmem>>, vector<8x8xbf16>,
    %54 = vector.extract_strided_slice %34 {offsets = [0, 8], sizes = [8, 8], strides = [1, 1]} : vector<8x32xf32> to vector<8x8xf32>
    %55 = arith.truncf %54 : vector<8x8xf32> to vector<8x8xbf16>
    %c0_25 = arith.constant 0 : index
    %c8 = arith.constant 8 : index
    %56 = vector.load %arg19[%c0_25, %c8] : memref<8x64xbf16, #tpu.memory_space<vmem>>, vector<8x8xbf16>
    %c0_26 = arith.constant 0 : index
    %c40 = arith.constant 40 : index
    %57 = vector.load %arg19[%c0_26, %c40] : memref<8x64xbf16, #tpu.memory_space<vmem>>, vector<8x8xbf16>
    %cst_27 = arith.constant dense<0.000000e+00> : vector<8x8xf32>
    %58 = tpu.matmul %55, %56, %cst_27 {dimension_numbers = #tpu.dot_dimension_numbers<[1], [1], [0], [0], [0, 0, 1, 0], [], []>} : vector<8x8xbf16>, vector<8x8xbf16>, vector<8x8xf32> -> vector<8x8xf32>
    %cst_28 = arith.constant dense<0xFF800000> : vector<8xf32>
    %59 = vector.multi_reduction <maximumf>, %58, %cst_28 [1] : vector<8x8xf32> to vector<8xf32>
    %60 = vector.shape_cast %59 : vector<8xf32> to vector<8x1xf32>
    %61 = vector.broadcast %60 : vector<8x1xf32> to vector<8x8xf32>
    %62 = arith.subf %58, %61 : vector<8x8xf32>
    %63 = math.exp %62 : vector<8x8xf32>
    %cst_29 = arith.constant dense<0.000000e+00> : vector<8xf32>
    %64 = vector.multi_reduction <add>, %63, %cst_29 [1] : vector<8x8xf32> to vector<8xf32>
    %65 = vector.shape_cast %64 : vector<8xf32> to vector<8x1xf32>
    %66 = tpu.reciprocal %65 : vector<8x1xf32> -> vector<8x1xf32>
    %67 = vector.broadcast %66 : vector<8x1xf32> to vector<8x8xf32>
    %68 = arith.mulf %63, %67 : vector<8x8xf32>
    %69 = arith.truncf %68 : vector<8x8xf32> to vector<8x8xbf16>
    %cst_30 = arith.constant dense<0.000000e+00> : vector<8x8xf32>
    %70 = tpu.matmul %69, %57, %cst_30 {dimension_numbers = #tpu.dot_dimension_numbers<[1], [0], [0], [1], [0, 0, 1, 1], [], []>} : vector<8x8xbf16>, vector<8x8xbf16>, vector<8x8xf32> -> vector<8x8xf32>
    %71 = arith.truncf %70 : vector<8x8xf32> to vector<8x8xbf16>
    %c0_31 = arith.constant 0 : index
    %c8_32 = arith.constant 8 : index
    %72 = vector.load %arg20[%c0_31, %c8_32] : memref<8x32xbf16, #tpu.memory_space<vmem>>, vector<8x8xbf16>
    tpu.vector_store %arg20[%c0_31, %c8_32], %71 {strides = array<i32>} : memref<8x32xbf16, #tpu.memory_space<vmem>>, vector<8x8xbf16>,
    %73 = vector.extract_strided_slice %34 {offsets = [0, 16], sizes = [8, 8], strides = [1, 1]} : vector<8x32xf32> to vector<8x8xf32>
    %74 = arith.truncf %73 : vector<8x8xf32> to vector<8x8xbf16>
    %c0_33 = arith.constant 0 : index
    %c16 = arith.constant 16 : index
    %75 = vector.load %arg19[%c0_33, %c16] : memref<8x64xbf16, #tpu.memory_space<vmem>>, vector<8x8xbf16>
    %c0_34 = arith.constant 0 : index
    %c48 = arith.constant 48 : index
    %76 = vector.load %arg19[%c0_34, %c48] : memref<8x64xbf16, #tpu.memory_space<vmem>>, vector<8x8xbf16>
    %cst_35 = arith.constant dense<0.000000e+00> : vector<8x8xf32>
    %77 = tpu.matmul %74, %75, %cst_35 {dimension_numbers = #tpu.dot_dimension_numbers<[1], [1], [0], [0], [0, 0, 1, 0], [], []>} : vector<8x8xbf16>, vector<8x8xbf16>, vector<8x8xf32> -> vector<8x8xf32>
    %cst_36 = arith.constant dense<0xFF800000> : vector<8xf32>
    %78 = vector.multi_reduction <maximumf>, %77, %cst_36 [1] : vector<8x8xf32> to vector<8xf32>
    %79 = vector.shape_cast %78 : vector<8xf32> to vector<8x1xf32>
    %80 = vector.broadcast %79 : vector<8x1xf32> to vector<8x8xf32>
    %81 = arith.subf %77, %80 : vector<8x8xf32>
    %82 = math.exp %81 : vector<8x8xf32>
    %cst_37 = arith.constant dense<0.000000e+00> : vector<8xf32>
    %83 = vector.multi_reduction <add>, %82, %cst_37 [1] : vector<8x8xf32> to vector<8xf32>
    %84 = vector.shape_cast %83 : vector<8xf32> to vector<8x1xf32>
    %85 = tpu.reciprocal %84 : vector<8x1xf32> -> vector<8x1xf32>
    %86 = vector.broadcast %85 : vector<8x1xf32> to vector<8x8xf32>
    %87 = arith.mulf %82, %86 : vector<8x8xf32>
    %88 = arith.truncf %87 : vector<8x8xf32> to vector<8x8xbf16>
    %cst_38 = arith.constant dense<0.000000e+00> : vector<8x8xf32>
    %89 = tpu.matmul %88, %76, %cst_38 {dimension_numbers = #tpu.dot_dimension_numbers<[1], [0], [0], [1], [0, 0, 1, 1], [], []>} : vector<8x8xbf16>, vector<8x8xbf16>, vector<8x8xf32> -> vector<8x8xf32>
    %90 = arith.truncf %89 : vector<8x8xf32> to vector<8x8xbf16>
    %c0_39 = arith.constant 0 : index
    %c16_40 = arith.constant 16 : index
    %91 = vector.load %arg20[%c0_39, %c16_40] : memref<8x32xbf16, #tpu.memory_space<vmem>>, vector<8x8xbf16>
    tpu.vector_store %arg20[%c0_39, %c16_40], %90 {strides = array<i32>} : memref<8x32xbf16, #tpu.memory_space<vmem>>, vector<8x8xbf16>,
    %92 = vector.extract_strided_slice %34 {offsets = [0, 24], sizes = [8, 8], strides = [1, 1]} : vector<8x32xf32> to vector<8x8xf32>
    %93 = arith.truncf %92 : vector<8x8xf32> to vector<8x8xbf16>
    %c0_41 = arith.constant 0 : index
    %c24 = arith.constant 24 : index
    %94 = vector.load %arg19[%c0_41, %c24] : memref<8x64xbf16, #tpu.memory_space<vmem>>, vector<8x8xbf16>
    %c0_42 = arith.constant 0 : index
    %c56 = arith.constant 56 : index
    %95 = vector.load %arg19[%c0_42, %c56] : memref<8x64xbf16, #tpu.memory_space<vmem>>, vector<8x8xbf16>
    %cst_43 = arith.constant dense<0.000000e+00> : vector<8x8xf32>
    %96 = tpu.matmul %93, %94, %cst_43 {dimension_numbers = #tpu.dot_dimension_numbers<[1], [1], [0], [0], [0, 0, 1, 0], [], []>} : vector<8x8xbf16>, vector<8x8xbf16>, vector<8x8xf32> -> vector<8x8xf32>
    %cst_44 = arith.constant dense<0xFF800000> : vector<8xf32>
    %97 = vector.multi_reduction <maximumf>, %96, %cst_44 [1] : vector<8x8xf32> to vector<8xf32>
    %98 = vector.shape_cast %97 : vector<8xf32> to vector<8x1xf32>
    %99 = vector.broadcast %98 : vector<8x1xf32> to vector<8x8xf32>
    %100 = arith.subf %96, %99 : vector<8x8xf32>
    %101 = math.exp %100 : vector<8x8xf32>
    %cst_45 = arith.constant dense<0.000000e+00> : vector<8xf32>
    %102 = vector.multi_reduction <add>, %101, %cst_45 [1] : vector<8x8xf32> to vector<8xf32>
    %103 = vector.shape_cast %102 : vector<8xf32> to vector<8x1xf32>
    %104 = tpu.reciprocal %103 : vector<8x1xf32> -> vector<8x1xf32>
    %105 = vector.broadcast %104 : vector<8x1xf32> to vector<8x8xf32>
    %106 = arith.mulf %101, %105 : vector<8x8xf32>
    %107 = arith.truncf %106 : vector<8x8xf32> to vector<8x8xbf16>
    %cst_46 = arith.constant dense<0.000000e+00> : vector<8x8xf32>
    %108 = tpu.matmul %107, %95, %cst_46 {dimension_numbers = #tpu.dot_dimension_numbers<[1], [0], [0], [1], [0, 0, 1, 1], [], []>} : vector<8x8xbf16>, vector<8x8xbf16>, vector<8x8xf32> -> vector<8x8xf32>
    %109 = arith.truncf %108 : vector<8x8xf32> to vector<8x8xbf16>
    %c0_47 = arith.constant 0 : index
    %c24_48 = arith.constant 24 : index
    %110 = vector.load %arg20[%c0_47, %c24_48] : memref<8x32xbf16, #tpu.memory_space<vmem>>, vector<8x8xbf16>
    tpu.vector_store %arg20[%c0_47, %c24_48], %109 {strides = array<i32>} : memref<8x32xbf16, #tpu.memory_space<vmem>>, vector<8x8xbf16>,
    %c0_49 = arith.constant 0 : index
    %c0_50 = arith.constant 0 : index
    %111 = vector.load %arg20[%c0_49, %c0_50] : memref<8x32xbf16, #tpu.memory_space<vmem>>, vector<8x32xbf16>
    %c0_51 = arith.constant 0 : index
    %c0_52 = arith.constant 0 : index
    %112 = vector.load %arg10[%c0_51, %c0_52] : memref<32x32xbf16, #tpu.memory_space<vmem>>, vector<32x32xbf16>
    %cst_53 = arith.constant dense<0.000000e+00> : vector<8x32xf32>
    %113 = tpu.matmul %111, %112, %cst_53 {dimension_numbers = #tpu.dot_dimension_numbers<[1], [0], [0], [1], [0, 0, 1, 1], [], []>} : vector<8x32xbf16>, vector<32x32xbf16>, vector<8x32xf32> -> vector<8x32xf32>
    %c0_54 = arith.constant 0 : index
    %c0_55 = arith.constant 0 : index
    %114 = vector.load %arg11[%c0_54, %c0_55] : memref<1x32xf32, #tpu.memory_space<vmem>>, vector<1x32xf32>
    %115 = vector.broadcast %114 : vector<1x32xf32> to vector<8x32xf32>
    %116 = arith.addf %113, %115 : vector<8x32xf32>
    %117 = arith.addf %4, %116 : vector<8x32xf32>
    %c0_56 = arith.constant 0 : index
    %c0_57 = arith.constant 0 : index
    %118 = vector.load %arg12[%c0_56, %c0_57] : memref<1x32xf32, #tpu.memory_space<vmem>>, vector<1x32xf32>
    %c0_58 = arith.constant 0 : index
    %c0_59 = arith.constant 0 : index
    %119 = vector.load %arg13[%c0_58, %c0_59] : memref<1x32xf32, #tpu.memory_space<vmem>>, vector<1x32xf32>
    %cst_60 = arith.constant dense<0.000000e+00> : vector<8xf32>
    %120 = vector.multi_reduction <add>, %117, %cst_60 [1] : vector<8x32xf32> to vector<8xf32>
    %121 = vector.shape_cast %120 : vector<8xf32> to vector<8x1xf32>
    %122 = arith.mulf %117, %117 : vector<8x32xf32>
    %cst_61 = arith.constant dense<0.000000e+00> : vector<8xf32>
    %123 = vector.multi_reduction <add>, %122, %cst_61 [1] : vector<8x32xf32> to vector<8xf32>
    %124 = vector.shape_cast %123 : vector<8xf32> to vector<8x1xf32>
    %cst_62 = arith.constant 3.125000e-02 : f32
    %125 = vector.broadcast %cst_62 : f32 to vector<8x1xf32>
    %126 = arith.mulf %121, %125 : vector<8x1xf32>
    %cst_63 = arith.constant 3.125000e-02 : f32
    %127 = vector.broadcast %cst_63 : f32 to vector<8x1xf32>
    %128 = arith.mulf %124, %127 : vector<8x1xf32>
    %129 = arith.mulf %126, %126 : vector<8x1xf32>
    %130 = arith.subf %128, %129 : vector<8x1xf32>
    %131 = vector.broadcast %126 : vector<8x1xf32> to vector<8x32xf32>
    %132 = arith.subf %117, %131 : vector<8x32xf32>
    %cst_64 = arith.constant 9.99999974E-6 : f32
    %133 = vector.broadcast %cst_64 : f32 to vector<8x1xf32>
    %134 = arith.addf %130, %133 : vector<8x1xf32>
    %135 = math.rsqrt %134 : vector<8x1xf32>
    %136 = vector.broadcast %135 : vector<8x1xf32> to vector<8x32xf32>
    %137 = arith.mulf %132, %136 : vector<8x32xf32>
    %138 = vector.broadcast %118 : vector<1x32xf32> to vector<8x32xf32>
    %139 = arith.mulf %137, %138 : vector<8x32xf32>
    %140 = vector.broadcast %119 : vector<1x32xf32> to vector<8x32xf32>
    %141 = arith.addf %139, %140 : vector<8x32xf32>
    %142 = arith.truncf %141 : vector<8x32xf32> to vector<8x32xbf16>
    %c0_65 = arith.constant 0 : index
    %c0_66 = arith.constant 0 : index
    %143 = vector.load %arg14[%c0_65, %c0_66] : memref<32x128xbf16, #tpu.memory_space<vmem>>, vector<32x128xbf16>
    %cst_67 = arith.constant dense<0.000000e+00> : vector<8x128xf32>
    %144 = tpu.matmul %142, %143, %cst_67 {dimension_numbers = #tpu.dot_dimension_numbers<[1], [0], [0], [1], [0, 0, 1, 1], [], []>} : vector<8x32xbf16>, vector<32x128xbf16>, vector<8x128xf32> -> vector<8x128xf32>
    %c0_68 = arith.constant 0 : index
    %c0_69 = arith.constant 0 : index
    %145 = vector.load %arg15[%c0_68, %c0_69] : memref<1x128xf32, #tpu.memory_space<vmem>>, vector<1x128xf32>
    %146 = vector.broadcast %145 : vector<1x128xf32> to vector<8x128xf32>
    %147 = arith.addf %144, %146 : vector<8x128xf32>
    %cst_70 = arith.constant 5.000000e-01 : f32
    %148 = vector.broadcast %cst_70 : f32 to vector<8x128xf32>
    %149 = arith.mulf %148, %147 : vector<8x128xf32>
    %cst_71 = arith.constant 0.707106769 : f32
    %150 = vector.broadcast %cst_71 : f32 to vector<8x128xf32>
    %151 = arith.mulf %147, %150 : vector<8x128xf32>
    %152 = math.absf %151 : vector<8x128xf32>
    %cst_72 = arith.constant 0.327591091 : f32
    %153 = vector.broadcast %cst_72 : f32 to vector<8x128xf32>
    %154 = arith.mulf %153, %152 : vector<8x128xf32>
    %cst_73 = arith.constant 1.000000e+00 : f32
    %155 = vector.broadcast %cst_73 : f32 to vector<8x128xf32>
    %156 = arith.addf %155, %154 : vector<8x128xf32>
    %157 = tpu.reciprocal %156 : vector<8x128xf32> -> vector<8x128xf32>
    %cst_74 = arith.constant 1.06140542 : f32
    %158 = vector.broadcast %cst_74 : f32 to vector<8x128xf32>
    %159 = arith.mulf %157, %158 : vector<8x128xf32>
    %cst_75 = arith.constant -1.45315206 : f32
    %160 = vector.broadcast %cst_75 : f32 to vector<8x128xf32>
    %161 = arith.addf %160, %159 : vector<8x128xf32>
    %162 = arith.mulf %157, %161 : vector<8x128xf32>
    %cst_76 = arith.constant 1.42141378 : f32
    %163 = vector.broadcast %cst_76 : f32 to vector<8x128xf32>
    %164 = arith.addf %163, %162 : vector<8x128xf32>
    %165 = arith.mulf %157, %164 : vector<8x128xf32>
    %cst_77 = arith.constant -0.284496725 : f32
    %166 = vector.broadcast %cst_77 : f32 to vector<8x128xf32>
    %167 = arith.addf %166, %165 : vector<8x128xf32>
    %168 = arith.mulf %157, %167 : vector<8x128xf32>
    %cst_78 = arith.constant 0.254829586 : f32
    %169 = vector.broadcast %cst_78 : f32 to vector<8x128xf32>
    %170 = arith.addf %169, %168 : vector<8x128xf32>
    %171 = arith.mulf %157, %170 : vector<8x128xf32>
    %172 = arith.mulf %152, %152 : vector<8x128xf32>
    %cst_79 = arith.constant 0.000000e+00 : f32
    %173 = vector.broadcast %cst_79 : f32 to vector<8x128xf32>
    %174 = arith.subf %173, %172 : vector<8x128xf32>
    %175 = math.exp %174 : vector<8x128xf32>
    %176 = arith.mulf %171, %175 : vector<8x128xf32>
    %cst_80 = arith.constant 1.000000e+00 : f32
    %177 = vector.broadcast %cst_80 : f32 to vector<8x128xf32>
    %178 = arith.subf %177, %176 : vector<8x128xf32>
    %cst_81 = arith.constant 0.000000e+00 : f32
    %179 = vector.broadcast %cst_81 : f32 to vector<8x128xf32>
    %180 = arith.cmpf olt, %151, %179 : vector<8x128xf32>
    %cst_82 = arith.constant 0.000000e+00 : f32
    %181 = vector.broadcast %cst_82 : f32 to vector<8x128xf32>
    %182 = arith.subf %181, %178 : vector<8x128xf32>
    %183 = arith.select %180, %182, %178 : vector<8x128xi1>, vector<8x128xf32>
    %cst_83 = arith.constant 1.000000e+00 : f32
    %184 = vector.broadcast %cst_83 : f32 to vector<8x128xf32>
    %185 = arith.addf %184, %183 : vector<8x128xf32>
    %186 = arith.mulf %149, %185 : vector<8x128xf32>
    %187 = arith.truncf %186 : vector<8x128xf32> to vector<8x128xbf16>
    %c0_84 = arith.constant 0 : index
    %c0_85 = arith.constant 0 : index
    %188 = vector.load %arg16[%c0_84, %c0_85] : memref<128x32xbf16, #tpu.memory_space<vmem>>, vector<128x32xbf16>
    %cst_86 = arith.constant dense<0.000000e+00> : vector<8x32xf32>
    %189 = tpu.matmul %187, %188, %cst_86 {dimension_numbers = #tpu.dot_dimension_numbers<[1], [0], [0], [1], [0, 0, 1, 1], [], []>} : vector<8x128xbf16>, vector<128x32xbf16>, vector<8x32xf32> -> vector<8x32xf32>
    %c0_87 = arith.constant 0 : index
    %c0_88 = arith.constant 0 : index
    %190 = vector.load %arg17[%c0_87, %c0_88] : memref<1x32xf32, #tpu.memory_space<vmem>>, vector<1x32xf32>
    %191 = vector.broadcast %190 : vector<1x32xf32> to vector<8x32xf32>
    %192 = arith.addf %189, %191 : vector<8x32xf32>
    %193 = arith.addf %117, %192 : vector<8x32xf32>
    %c0_89 = arith.constant 0 : index
    %c0_90 = arith.constant 0 : index
    %c0_91 = arith.constant 0 : index
    %194 = vector.load %arg18[%c0_89, %c0_90, %c0_91] : memref<1x8x32xf32, #tpu.memory_space<vmem>>, vector<1x8x32xf32>
    %195 = vector.shape_cast %194 : vector<1x8x32xf32> to vector<8x32xf32>
    %196 = vector.shape_cast %193 : vector<8x32xf32> to vector<1x8x32xf32>
    tpu.vector_store %arg18[%c0_89, %c0_90, %c0_91], %196 {strides = array<i32>} : memref<1x8x32xf32, #tpu.memory_space<vmem>>, vector<1x8x32xf32>,
    return
  }
  func.func @transform_0(%arg0: i32, %arg1: i32) -> (i32, i32, i32) {
    %c0_i32 = arith.constant 0 : i32
    %c0_i32_0 = arith.constant 0 : i32
    %c0_i32_1 = arith.constant 0 : i32
    return %arg0, %c0_i32, %c0_i32_0 : i32, i32, i32
  }
  func.func @transform_1(%arg0: i32, %arg1: i32) -> (i32, i32, i32) {
    %c0_i32 = arith.constant 0 : i32
    %c0_i32_0 = arith.constant 0 : i32
    return %arg0, %arg1, %c0_i32 : i32, i32, i32
  }
  func.func @transform_2(%arg0: i32, %arg1: i32) -> (i32, i32) {
    %c0_i32 = arith.constant 0 : i32
    %c0_i32_0 = arith.constant 0 : i32
    %c0_i32_1 = arith.constant 0 : i32
    return %c0_i32, %c0_i32_0 : i32, i32
  }
  func.func @transform_3(%arg0: i32, %arg1: i32) -> (i32, i32) {
    %c0_i32 = arith.constant 0 : i32
    %c0_i32_0 = arith.constant 0 : i32
    %c0_i32_1 = arith.constant 0 : i32
    return %c0_i32, %c0_i32_0 : i32, i32
  }
  func.func @transform_4(%arg0: i32, %arg1: i32) -> (i32, i32) {
    %c0_i32 = arith.constant 0 : i32
    %c0_i32_0 = arith.constant 0 : i32
    %c0_i32_1 = arith.constant 0 : i32
    return %c0_i32, %c0_i32_0 : i32, i32
  }
  func.func @transform_5(%arg0: i32, %arg1: i32) -> (i32, i32) {
    %c0_i32 = arith.constant 0 : i32
    %c0_i32_0 = arith.constant 0 : i32
    %c0_i32_1 = arith.constant 0 : i32
    return %c0_i32, %c0_i32_0 : i32, i32
  }
  func.func @transform_6(%arg0: i32, %arg1: i32) -> (i32, i32) {
    %c0_i32 = arith.constant 0 : i32
    %c0_i32_0 = arith.constant 0 : i32
    %c0_i32_1 = arith.constant 0 : i32
    return %c0_i32, %c0_i32_0 : i32, i32
  }
  func.func @transform_7(%arg0: i32, %arg1: i32) -> (i32, i32) {
    %c0_i32 = arith.constant 0 : i32
    %c0_i32_0 = arith.constant 0 : i32
    %c0_i32_1 = arith.constant 0 : i32
    return %c0_i32, %c0_i32_0 : i32, i32
  }
  func.func @transform_8(%arg0: i32, %arg1: i32) -> (i32, i32) {
    %c0_i32 = arith.constant 0 : i32
    %c0_i32_0 = arith.constant 0 : i32
    %c0_i32_1 = arith.constant 0 : i32
    return %c0_i32, %c0_i32_0 : i32, i32
  }
  func.func @transform_9(%arg0: i32, %arg1: i32) -> (i32, i32) {
    %c0_i32 = arith.constant 0 : i32
    %c0_i32_0 = arith.constant 0 : i32
    %c0_i32_1 = arith.constant 0 : i32
    return %c0_i32, %c0_i32_0 : i32, i32
  }
  func.func @transform_10(%arg0: i32, %arg1: i32) -> (i32, i32) {
    %c0_i32 = arith.constant 0 : i32
    %c0_i32_0 = arith.constant 0 : i32
    %c0_i32_1 = arith.constant 0 : i32
    return %c0_i32, %c0_i32_0 : i32, i32
  }
  func.func @transform_11(%arg0: i32, %arg1: i32) -> (i32, i32) {
    %c0_i32 = arith.constant 0 : i32
    %c0_i32_0 = arith.constant 0 : i32
    %c0_i32_1 = arith.constant 0 : i32
    return %c0_i32, %c0_i32_0 : i32, i32
  }
  func.func @transform_12(%arg0: i32, %arg1: i32) -> (i32, i32) {
    %c0_i32 = arith.constant 0 : i32
    %c0_i32_0 = arith.constant 0 : i32
    %c0_i32_1 = arith.constant 0 : i32
    return %c0_i32, %c0_i32_0 : i32, i32
  }
  func.func @transform_13(%arg0: i32, %arg1: i32) -> (i32, i32) {
    %c0_i32 = arith.constant 0 : i32
    %c0_i32_0 = arith.constant 0 : i32
    %c0_i32_1 = arith.constant 0 : i32
    return %c0_i32, %c0_i32_0 : i32, i32
  }
  func.func @transform_14(%arg0: i32, %arg1: i32) -> (i32, i32) {
    %c0_i32 = arith.constant 0 : i32
    %c0_i32_0 = arith.constant 0 : i32
    %c0_i32_1 = arith.constant 0 : i32
    return %c0_i32, %c0_i32_0 : i32, i32
  }
  func.func @transform_15(%arg0: i32, %arg1: i32) -> (i32, i32) {
    %c0_i32 = arith.constant 0 : i32
    %c0_i32_0 = arith.constant 0 : i32
    %c0_i32_1 = arith.constant 0 : i32
    return %c0_i32, %c0_i32_0 : i32, i32
  }
  func.func @transform_16(%arg0: i32, %arg1: i32) -> (i32, i32, i32) {
    %c0_i32 = arith.constant 0 : i32
    %c0_i32_0 = arith.constant 0 : i32
    return %arg0, %arg1, %c0_i32 : i32, i32, i32
  }
}

</mosaic_0001>

<bundles_post_ra>
// kernel: tpu_custom_call.1
= control target key start
LH: loop header
LB: loop body
LE: loop exit
PB: predicated region body
PF: predicated region fallthrough
CT: control target
= control target key end

     0   :  { %s2738_s0 = inlined_call_operand.vmem [shape: f32[2,8,32], index: 0, kind: input, shape index: {}]   ;;  %s2739_s1 = inlined_call_operand.vmem [shape: f32[2,8,32], index: 1, kind: input, shape index: {}]   ;;  %s2740_s2 = inlined_call_operand.vmem [shape: f32[1,32], index: 2, kind: input, shape index: {}]   ;;  %s2741_s3 = inlined_call_operand.vmem [shape: f32[1,32], index: 3, kind: input, shape index: {}]   ;;  %s2742_s4 = inlined_call_operand.vmem [shape: bf16[32,32], index: 4, kind: input, shape index: {}]   ;;  %s2743_s5 = inlined_call_operand.hbm [shape: f32[1,32], index: 5, kind: input, shape index: {}]   ;;  %s2744_s6 = inlined_call_operand.vmem [shape: bf16[32,64], index: 6, kind: input, shape index: {}]   ;;  %s2745_s7 = inlined_call_operand.hbm [shape: f32[1,64], index: 7, kind: input, shape index: {}]   ;;  %s2746_s8 = inlined_call_operand.vmem [shape: bf16[32,32], index: 8, kind: input, shape index: {}]   ;;  %s2747_s9 = inlined_call_operand.hbm [shape: f32[1,32], index: 9, kind: input, shape index: {}]   ;;  %s2748_s10 = inlined_call_operand.vmem [shape: f32[1,32], index: 10, kind: input, shape index: {}]   ;;  %s2749_s11 = inlined_call_operand.vmem [shape: f32[1,32], index: 11, kind: input, shape index: {}]   ;;  %s2750_s12 = inlined_call_operand.vmem [shape: bf16[32,128], index: 12, kind: input, shape index: {}]   ;;  %s2751_s13 = inlined_call_operand.vmem [shape: f32[1,128], index: 13, kind: input, shape index: {}]   ;;  %s2752_s14 = inlined_call_operand.vmem [shape: bf16[128,32], index: 14, kind: input, shape index: {}]   ;;  %s2753_s15 = inlined_call_operand.vmem [shape: f32[1,32], index: 15, kind: input, shape index: {}]   ;;  %s2754_s16 = inlined_call_operand.hbm [shape: f32[2,8,32], index: 16, kind: output, shape index: {}]  }
   0x1   :  { %2769 = sst [smem:[#allocation22_spill]] %s2738_s0 }
   0x2   :  { %2770 = sst [smem:[#allocation23_spill]] %s2745_s7 }
   0x3   :  { %2771 = sst [smem:[#allocation24_spill]] %s2753_s15 }
   0x4   :  { %2772 = sst [smem:[#allocation25_spill]] %s2754_s16 }
   0x5   :  { %21 = vsyncpa [#allocation5], 0 }
   0x6   :  { %22 = vsyncpa [#allocation8], 0 }
   0x7   :  { %23 = vsyncpa [#allocation6], 0 }
   0x8   :  { %25 = vsyncpa [#allocation6 + $0x1], 0  ;;  %s2347_s21 = smov 0   ;;  %s2349_s22 = smov 0  }
   0x9   :  { %s2351_s23 = smov 0   ;;  %s2353_s24 = smov 0  }
   0xa   :  { %s2355_s25 = smov 0   ;;  %s2357_s26 = smov 0  }
   0xb LB: > { %2773 = sst [smem:[#allocation14_spill]] %s2224_s21  ;;  %s1726_s27 = sadd.s32 4294967295, %s2244_s26   ;;  %s2244_s26 = sphi %s2357_s26, %s31_s26   ;;  %s2240_s25 = sphi %s2355_s25, %s2803_s25   ;;  %s2236_s24 = sphi %s2353_s24, %s2802_s24   ;;  %s2232_s23 = sphi %s2351_s23, %s2801_s23   ;;  %s2228_s22 = sphi %s2349_s22, %s2805_s22   ;;  %s2224_s21 = sphi %s2347_s21, %s2804_s21  }
   0xc   : > { %2774 = sst [smem:[#allocation15_spill]] %s2232_s23  ;;  %s1727_s28 = sadd.s32 4294967294, %s2244_s26  }
   0xd   : > { %2775 = sst [smem:[#allocation16_spill]] %s2240_s25  ;;  %s43_s29 = sadd.s32 1, %s2240_s25 }
   0xe   : > { %2776 = sst [smem:[#allocation17_spill]] %s2244_s26  ;;  %s400_s30 = sadd.s32 1, %s2232_s23 }
   0xf   : > { %p45_p0 = scmp.ge.s32.totalorder %s43_s29, 2  ;;  %p410_p1 = scmp.ne.s32.totalorder %s2232_s23, %s2228_s22 }
  0x10   : > { %p411_p2 = scmp.eq.s32.totalorder %s1726_s27, 1  ;;  %p416_p3 = scmp.ne.s32.totalorder %s2228_s22, %s2224_s21 }
  0x11   : > { %s2807_s29 = smov (%p45_p0, %s43_s29), 0  ;;  %p417_p5 = scmp.eq.s32.totalorder %s1727_s28, 1 }
  0x12   : > { %2777 = sst [smem:[#allocation18_spill]] %s2807_s29  ;;  %p2387_p4 = por %p411_p2, %p410_p1 }
  0x13   : > { %s395_s17 = ssub.s32 %s2240_s25, %s2807_s29  ;;  %p1728_p6 = scmp.ge.s32.totalorder %s2244_s26, 1 }
  0x14   : > { %s2778_s0 = scalar_select %p2387_p4, 1, 0 }
  0x15   : > { %p398_p7 = scmp.eq.s32.totalorder %s395_s17, 0  ;;  %p2394_p8 = por %p417_p5, %p416_p3 }
  0x16   : > { %2779 = sst [smem:[#allocation19_spill]] %s2778_s0  ;;  %p424_p9 = scmp.lt.s32.totalorder %s2244_s26, 3 }
  0x17   : > { %s2780_s18 = scalar_select %p2394_p8, 1, 0 }
  0x18   : > { %s2400_s19 = scalar_select %p398_p7, %s2232_s23, %s400_s30  }
  0x19   : > { %2781 = sst [smem:[#allocation20_spill]] %s2780_s18  ;;  %p2402_p10 = pnand %p1728_p6, %p424_p9 }
  0x1a   : > { %2782 = sst [smem:[#allocation21_spill]] %s2400_s19  ;;  %p2406_p11 = scmp.eq.s32.totalorder %s1726_s27, 0 }
  0x1b   : > { %s2783_s20 = scalar_select %p2402_p10, 1, 0 }
  0x1c   : > { %s2784_s21 = scalar_select %p2406_p11, 1, 0 }
  0x1d   : > { %p1944_p12 = pneg %p2402_p10  ;;  %s2246_s28 = smov [#allocation7]  }
  0x1e   : > { %s460_s17 = sshll.u32 %s2246_s28, 4  ;;  %s2247_s30 = smov [#allocation4]   ;;  %s461_s17 = int_to_ptr.vmem [resolvable:$true] %s460_s17 }
  0x1f   : > { %p2414_p13 = pnand %p2406_p11, %p1944_p12  ;;  %s446_s25 = sshll.u32 %s2247_s30, 4  ;;  %s2418_s25 = int_to_ptr.vmem [resolvable:$true] %s446_s25 }
  0x20   : > { %s2786_s7 = sld [smem:[#allocation23_spill]] }
  0x21   : > { %p2428_p1 = pneg %p2414_p13 }
  0x26   : > { %s2074_s23 = scalar_lea.hbm %s2786_s7, 16 }
  0x27   : > { %p2075_p0 = scmp.ne.s32.totalorder %s2786_s7, %s2074_s23  ;;  %p2081_p5 = scmp.lt.u32.totalorder %s2074_s23, %s2786_s7 }
  0x29   : > { %p2077_p2 = pnand %p2428_p1, %p2075_p0 }
  0x2b   : > { %p2078_p3 = pneg %p2077_p2 }
  0x2d   : > { %p2083_p6 = pnand %p2081_p5, %p2078_p3 }
  0x2f   : > { %2086 = shalt.err (!%p2083_p6)
}
  0x30   : > { %s2087_s19 = scalar_lea.vmem %s461_s17, 16  ;;  %s2094_s26 = scalar_lea.vmem %s461_s17, 32 }
  0x31   : > { %p2088_p7 = scmp.ne.s32.totalorder %s461_s17, %s2087_s19  ;;  %p2095_p8 = scmp.lt.s32.totalorder %s461_s17, %s461_s17 }
  0x32   : > { %p2096_p4 = scmp.lt.s32.totalorder %s2094_s26, %s2087_s19 }
  0x33   : > { %p2090_p9 = pnand %p2088_p7, %p2428_p1 }
  0x34   : > { %p2097_p11 = por %p2096_p4, %p2095_p8 }
  0x35   : > { %p2091_p12 = pneg %p2090_p9 }
  0x37   : > { %p2098_p10 = pnand %p2097_p11, %p2091_p12 }
  0x39   : > { %2101 = shalt.err (!%p2098_p10)
}
  0x3a   : > { %1950 = dma.hbm_to_vmem [thread:$0]  (!%p2414_p13), %s2786_s7, 16, %s461_s17, [#allocation8]  }
  0x3b   : > { %s2102_s30 = scalar_lea.hbm %s2743_s5, 16 }
  0x3c   : > { %p2103_p0 = scmp.ne.s32.totalorder %s2743_s5, %s2102_s30  ;;  %p2109_p8 = scmp.lt.u32.totalorder %s2102_s30, %s2743_s5 }
  0x3e   : > { %p2105_p2 = pnand %p2103_p0, %p2428_p1 }
  0x40   : > { %p2106_p4 = pneg %p2105_p2 }
  0x42   : > { %p2111_p10 = pnand %p2109_p8, %p2106_p4 }
  0x44   : > { %2114 = shalt.err (!%p2111_p10)
}
  0x45   : > { %s2115_s17 = scalar_lea.vmem %s2418_s25, 16  ;;  %s2122_s15 = scalar_lea.vmem %s2418_s25, 32 }
  0x46   : > { %p2116_p11 = scmp.ne.s32.totalorder %s2418_s25, %s2115_s17  ;;  %p2123_p6 = scmp.lt.s32.totalorder %s2418_s25, %s2418_s25 }
  0x47   : > { %p2124_p7 = scmp.lt.s32.totalorder %s2122_s15, %s2115_s17 }
  0x48   : > { %p2118_p3 = pnand %p2116_p11, %p2428_p1 }
  0x49   : > { %p2125_p9 = por %p2124_p7, %p2123_p6 }
  0x4a   : > { %p2119_p5 = pneg %p2118_p3 }
  0x4c   : > { %p2126_p12 = pnand %p2125_p9, %p2119_p5 }
  0x4e   : > { %2129 = shalt.err (!%p2126_p12)
}
  0x4f   : > { %1947 = dma.hbm_to_vmem [thread:$0]  (!%p2414_p13), %s2743_s5, 16, %s2418_s25, [#allocation5]  }
  0x50   : > { %s2248_s27 = smov [#allocation9]   ;;  %s2130_s19 = scalar_lea.hbm %s2747_s9, 16 }
  0x51   : > { %s474_s16 = sshll.u32 %s2248_s27, 4  ;;  %p2131_p0 = scmp.ne.s32.totalorder %s2747_s9, %s2130_s19  ;;  %s475_s16 = int_to_ptr.vmem [resolvable:$true] %s474_s16 }
  0x52   : > { %p2137_p8 = scmp.lt.u32.totalorder %s2130_s19, %s2747_s9 }
  0x53   : > { %p2133_p2 = pnand %p2131_p0, %p2428_p1 }
  0x55   : > { %p2134_p4 = pneg %p2133_p2 }
  0x57   : > { %p2139_p10 = pnand %p2137_p8, %p2134_p4 }
  0x59   : > { %2142 = shalt.err (!%p2139_p10)
}
  0x5a   : > { %s2143_s25 = scalar_lea.vmem %s475_s16, 16  ;;  %s2150_s0 = scalar_lea.vmem %s475_s16, 32 }
  0x5b   : > { %p2144_p11 = scmp.ne.s32.totalorder %s475_s16, %s2143_s25  ;;  %p2151_p6 = scmp.lt.s32.totalorder %s475_s16, %s475_s16 }
  0x5c   : > { %p2152_p7 = scmp.lt.s32.totalorder %s2150_s0, %s2143_s25 }
  0x5d   : > { %p2146_p3 = pnand %p2144_p11, %p2428_p1 }
  0x5e   : > { %p2153_p9 = por %p2152_p7, %p2151_p6 }
  0x5f   : > { %p2147_p5 = pneg %p2146_p3 }
  0x61   : > { %p2154_p12 = pnand %p2153_p9, %p2147_p5 }
  0x63   : > { %2157 = shalt.err (!%p2154_p12)
}
  0x64   : > { %1953 = dma.hbm_to_vmem [thread:$0]  (!%p2414_p13), %s2747_s9, 16, %s475_s16, [#allocation8]  }
  0x65   : > { %p2788_p0 = scmp.ne.s32.totalorder %s2783_s20, 0 }
  0x66   : > { %p2789_p2 = scmp.ne.s32.totalorder (!%p2788_p0), %s2784_s21, 0 }
  0x67   : > { %522 = sbr.rel (%p2788_p0) target bundleno = 2443 (0x98b), region = 84 }
  0x6e   : > { %2211 = dma.done.wait (%p2789_p2), [#allocation5], 16  }
  0x6f   : > { %2213 = vsyncadd (%p2789_p2), [#allocation5], 4294967280 }
  0x70   : > { %2215 = dma.done.wait (%p2789_p2), [#allocation8], 32  }
  0x71   : > { %2217 = vsyncadd (%p2789_p2), [#allocation8], 4294967264  ;;  %p586_p1 = scmp.lt.s32.totalorder %s2236_s24, 1  ;;  %s2790_s16 = sld [smem:[#allocation22_spill]]  ;;  %vm605_vm0 = vcmask 261120   ;;  %v2028_v8 = vld [vmem:[%s2744_s6] sm:$0xff]  }
  0x72   : > { %v2249_v9 = vmov 0.0   ;;  %v2029_v10 = vld [vmem:[%s2744_s6 + $0x8] sm:$0xff]   ;;  %vm2250_vm1 = vmmov 0   ;;  %v1740_v28 = vld [vmem:[%s2740_s2] ss:$0 sm:$0xff]  ;;  %vm703_vm2 = vcmask 519168  }
  0x73   : > { %s587_s7 = scalar_select %p586_p1, %s2236_s24, 1  ;;  %1830 = vmatprep.subr.bf16.mxu1 %v2249_v9  ;;  %1858 = vmatprep.subr.bf16.mxu0 %v2249_v9  ;;  %v1741_v31 = vld [vmem:[%s2741_s3] ss:$0 sm:$0xff]  ;;  %v2031_v38 = vld [vmem:[%s2742_s4 + $0x8] sm:$0xff]   ;;  %vm807_vm3 = vcmask 64512   ;;  %vm874_vm4 = vcmask 1043456  }
  0x74   : > { %1831 = vmatpush3.bf16.msra.mxu1 %v2028_v8  ;;  %1834 = vmatprep.mubr.msk.bf16.mxu1 %vm2250_vm1, %v2249_v9  ;;  %v2030_v35 = vld [vmem:[%s2742_s4] sm:$0xff]   ;;  %v1742_v41 = vld [vmem:[#allocation7] ss:$0 sm:$0xff]  ;;  %v1748_v48 = vld [vmem:[#allocation4] ss:$0 sm:$0xff]  ;;  %s2252_s30 = smov 112  }
  0x75   : > { %s1738_s29 = sshll.u32 %s587_s7, 3  ;;  %1832 = vmatprep.subr.bf16.mxu1 %v2249_v9  ;;  %1860 = vmatprep.mubr.msk.bf16.mxu0 %vm2250_vm1, %v2249_v9  ;;  %s2253_s19 = smov 104   ;;  %vm919_vm5 = vcmask 60416   ;;  %vm1043_vm6 = vcmask 126016   ;;  %vm1166_vm7 = vcmask 191616   ;;  %vm1289_vm8 = vcmask 257216  }
  0x76   : > { %s596_s26 = scalar_lea.vmem %s2739_s1, %s1738_s29  ;;  %s2255_s21 = smov 80  }
  0x77   : > { %s589_s23 = scalar_lea.vmem %s2790_s16, %s1738_s29  ;;  %v2504_v1 = vld [vmem:[%s596_s26] sm:$0xff]  ;;  %s2254_s26 = smov 88  }
  0x78   : > { %v602_v0 = vld [vmem:[%s589_s23] sm:$0xff]  ;;  %v709_v3 = vsel %vm605_vm0, %v2504_v1, 0.0  ;;  %v712_v5 = vmul.f32 %v2504_v1, %v2504_v1  ;;  %1833 = vmatpush3.bf16.msra.mxu1 %v2029_v10  ;;  %s2251_s23 = smov 120   ;;  %s2256_s17 = smov 96  }
  0x79   : > { %v606_v2 = vsel %vm605_vm0, %v602_v0, 0.0  ;;  %v609_v4 = vmul.f32 %v602_v0, %v602_v0  ;;  %710 = vadd.xlane.f32.xlu1 %v709_v3  ;;  %1838 = vmatprep.subr.bf16.mxu1 %v2249_v9  ;;  %s2257_s15 = smov 72   ;;  %s2258_s25 = smov 8  }
  0x7a   : > { %607 = vadd.xlane.f32.xlu0 %v606_v2  ;;  %v713_v7 = vsel %vm605_vm0, %v712_v5, 0.0  ;;  %s2259_s0 = smov 16   ;;  %s2260_s28 = smov 24  }
  0x7b   : > { %v610_v6 = vsel %vm605_vm0, %v609_v4, 0.0  ;;  %s2791_s29 = sld [smem:[#allocation24_spill]]  ;;  %s1787_s20 = sshll.u32 %s2236_s24, 7 }
  0x7d   : > { %714 = vadd.xlane.f32.xlu1 %v713_v7 }
  0x7e   : > { %611 = vadd.xlane.f32.xlu0 %v610_v6 }
 0x106   : > { %v711_v12 = vpop.xlane.xlu1 %710 }
 0x107   : > { %v608_v11 = vpop.xlane.xlu0 %607  ;;  %v716_v14 = vmul.f32 0.03125, %v711_v12 }
 0x108   : > { %v613_v13 = vmul.f32 0.03125, %v608_v11 }
 0x109   : > { %v718_v15 = vmul.f32 %v716_v14, %v716_v14  ;;  %v720_v26 = vsub.f32 %v2504_v1, %v716_v14 }
 0x10a   : > { %v715_v17 = vpop.xlane.xlu1 %714  ;;  %v615_v18 = vmul.f32 %v613_v13, %v613_v13  ;;  %v617_v25 = vsub.f32 %v602_v0, %v613_v13 }
 0x10b   : > { %v612_v16 = vpop.xlane.xlu0 %611  ;;  %v717_v20 = vmul.f32 0.03125, %v715_v17 }
 0x10c   : > { %v614_v19 = vmul.f32 0.03125, %v612_v16 }
 0x10d   : > { %v719_v22 = vsub.f32 %v717_v20, %v718_v15 }
 0x10e   : > { %v616_v21 = vsub.f32 %v614_v19, %v615_v18 }
 0x10f   : > { %v721_v24 = vadd.f32 1e-05, %v719_v22 }
 0x110   : > { %v618_v23 = vadd.f32 1e-05, %v616_v21 }
 0x112   : > { %2048 = vrsqrt.f32 %v618_v23 }
 0x113   : > { %2050 = vrsqrt.f32 %v721_v24 }
 0x11c   : > { %v2049_v27 = vpop.eup %2048 }
 0x11d   : > { %v2051_v29 = vpop.eup %2050  ;;  %v620_v30 = vmul.f32 %v2049_v27, %v617_v25 }
 0x11e   : > { %v723_v32 = vmul.f32 %v2051_v29, %v720_v26 }
 0x11f   : > { %v627_v33 = vmul.f32 %v1740_v28, %v620_v30 }
 0x120   : > { %v730_v37 = vmul.f32 %v1740_v28, %v723_v32 }
 0x121   : > { %v634_v34 = vadd.f32 %v1741_v31, %v627_v33 }
 0x122   : > { %v737_v39 = vadd.f32 %v1741_v31, %v730_v37 }
 0x123   : > { %v635_v36 = vpack.c.bf16 %v634_v34, %v634_v34 }
 0x124   : > { %v738_v40 = vpack.c.bf16 %v737_v39, %v737_v39 }
 0x125   : > { %1835 = vmatmul.mubr.msk.bf16.vlgmr.msra.gmra.mrb[0].mxu1 %vm605_vm0, %v635_v36 }
 0x126   : > { %1839 = vmatpush3.bf16.msra.mxu1 %v2030_v35  ;;  %1842 = vmatprep.mubr.msk.bf16.mxu1 %vm2250_vm1, %v2249_v9 }
 0x127   : > { %1840 = vmatprep.subr.bf16.mxu1 %v2249_v9 }
 0x12a   : > { %1841 = vmatpush3.bf16.msra.mxu1 %v2031_v38 }
 0x12b   : > { %1846 = vmatprep.subr.bf16.mxu1 %v2249_v9 }
 0x12d   : > { %1843 = vmatmul.mubr.msk.bf16.vlgmr.msra.gmra.mrb[4].mxu1 %vm605_vm0, %v738_v40 }
 0x12e   : > { %1848 = vmatprep.mubr.msk.bf16.mxu1 %vm2250_vm1, %v2249_v9 }
 0x1f8   : > { %v696_v42 = vpop.f32.mrb[0].mxu1 }
 0x1f9   : > { %v697_v43 = vadd.f32 %v1742_v41, %v696_v42  ;;  %v1836_v44 = vpop.f32.mrb[1].mxu1 }
 0x1fa   : > { %v699_v45 = vpop.f32.mrb[2].mxu1 }
 0x1fb   : > { %v702_v46 = vpack.c.bf16 %v697_v43, %v697_v43  ;;  %v1837_v47 = vpop.f32.mrb[3].mxu1 }
 0x1fd   : > { %704 = vst.msk [vmem:[#allocation2] sm:$0xf] %vm703_vm2, %v702_v46 }
 0x200   : > { %v799_v49 = vpop.f32.mrb[4].mxu1 }
 0x201   : > { %v800_v50 = vadd.f32 %v1748_v48, %v799_v49  ;;  %v1844_v51 = vpop.f32.mrb[5].mxu1 }
 0x202   : > { %v802_v52 = vpop.f32.mrb[6].mxu1 }
 0x203   : > { %v805_v53 = vpack.c.bf16 %v800_v50, %v800_v50  ;;  %v1845_v54 = vpop.f32.mrb[7].mxu1 }
 0x204   : > { %v2548_v55 = vld [vmem:[#allocation2] sm:$0xf] }
 0x205   : > { %v2550_v56 = vld [vmem:[#allocation2] ss:$0 sps:$4 sm:$0xff]   ;;  %923 = vrot.lane.b32.xlu1 %v805_v53, %s2251_s23  ;;  %v812_v57 = vsel %vm807_vm3, %v2548_v55, 0  ;;  %v1753_v42 = vcombine.low %v2548_v55, %v2548_v55 }
 0x206   : > { %1847 = vmatpush3.bf16.xpose.msra.mxu1 %v812_v57  ;;  %928 = vrot.lane.b32.xlu0 %v2550_v56, %s2251_s23  ;;  %v2555_v58 = vld [vmem:[#allocation2] ss:$0 sps:$4 sm:$0xff]  }
 0x207   : > { %1852 = vmatprep.subr.bf16.mxu1 %v2249_v9  ;;  %v2558_v59 = vld [vmem:[#allocation2] ss:$0 sps:$4 sm:$0xff]  }
 0x209   : > { %1051 = vrot.lane.b32.xlu1 %v2555_v58, %s2252_s30 }
 0x20a   : > { %1174 = vrot.lane.b32.xlu0 %v2558_v59, %s2253_s19 }
 0x20d   : > { %1046 = vrot.lane.b32.xlu1 %v805_v53, %s2252_s30  ;;  %1849 = vmatmul.mubr.msk.bf16.vlgmr.msra.gmra.mrb[8].mxu1 %vm807_vm3, %v805_v53 }
 0x20e   : > { %1854 = vmatprep.mubr.msk.bf16.mxu1 %vm2250_vm1, %v2249_v9 }
 0x211   : > { %1169 = vrot.lane.b32.xlu1 %v805_v53, %s2253_s19 }
 0x277   : > { %v924_v60 = vpop.permute.xlu1 %923 }
 0x278   : > { %v929_v61 = vpop.permute.xlu0 %928 }
 0x279   : > { %v934_v62 = vsel %vm807_vm3, %v929_v61, 0 }
 0x27a   : > { %1859 = vmatpush3.bf16.xpose.msra.mxu0 %v934_v62 }
 0x27b   : > { %1870 = vmatprep.subr.bf16.mxu0 %v2249_v9  ;;  %v1052_v63 = vpop.permute.xlu1 %1051 }
 0x27c   : > { %v1057_v0 = vsel %vm807_vm3, %v1052_v63, 0  ;;  %v1175_v2 = vpop.permute.xlu0 %1174 }
 0x27d   : > { %v1180_v4 = vsel %vm807_vm3, %v1175_v2, 0 }
 0x27f   : > { %v1047_v3 = vpop.permute.xlu1 %1046 }
 0x281   : > { %1861 = vmatmul.mubr.msk.bf16.vlgmr.msra.gmra.mrb[0].mxu0 %vm807_vm3, %v924_v60 }
 0x282   : > { %1871 = vmatpush3.bf16.xpose.msra.mxu0 %v1057_v0  ;;  %1872 = vmatprep.mubr.msk.bf16.mxu0 %vm2250_vm1, %v2249_v9 }
 0x283   : > { %1882 = vmatprep.subr.bf16.mxu0 %v2249_v9  ;;  %v1170_v5 = vpop.permute.xlu1 %1169 }
 0x289   : > { %1873 = vmatmul.mubr.msk.bf16.vlgmr.msra.gmra.mrb[4].mxu0 %vm807_vm3, %v1047_v3 }
 0x28a   : > { %1883 = vmatpush3.bf16.xpose.msra.mxu0 %v1180_v4  ;;  %1884 = vmatprep.mubr.msk.bf16.mxu0 %vm2250_vm1, %v2249_v9 }
 0x28b   : > { %1894 = vmatprep.subr.bf16.mxu0 %v2249_v9 }
 0x291   : > { %1885 = vmatmul.mubr.msk.bf16.vlgmr.msra.gmra.mrb[8].mxu0 %vm807_vm3, %v1170_v5 }
 0x292   : > { %1898 = vmatprep.mubr.msk.bf16.mxu0 %vm2250_vm1, %v2249_v9 }
 0x2e0   : > { %v848_v6 = vpop.f32.mrb[8].mxu1 }
 0x2e1   : > { %v1850_v7 = vpop.f32.mrb[9].mxu1  ;;  %v854_v8 = vsel %vm807_vm3, %v848_v6, -inf }
 0x2e2   : > { %855 = vmax.xlane.f32.xlu0 %v854_v8  ;;  %v851_v10 = vpop.f32.mrb[10].mxu1 }
 0x2e3   : > { %v1851_v11 = vpop.f32.mrb[11].mxu1 }
 0x354   : > { %v970_v12 = vpop.f32.mrb[0].mxu0 }
 0x355   : > { %v1862_v13 = vpop.f32.mrb[1].mxu0  ;;  %v976_v14 = vsel %vm807_vm3, %v970_v12, -inf }
 0x356   : > { %977 = vmax.xlane.f32.xlu1 %v976_v14  ;;  %v973_v15 = vpop.f32.mrb[2].mxu0 }
 0x357   : > { %v1863_v16 = vpop.f32.mrb[3].mxu0 }
 0x35c   : > { %v1093_v17 = vpop.f32.mrb[4].mxu0 }
 0x35d   : > { %v1874_v18 = vpop.f32.mrb[5].mxu0  ;;  %v1099_v19 = vsel %vm807_vm3, %v1093_v17, -inf }
 0x35e   : > { %v1096_v20 = vpop.f32.mrb[6].mxu0  ;;  %1100 = vmax.xlane.f32.xlu0 %v1099_v19 }
 0x35f   : > { %v1875_v21 = vpop.f32.mrb[7].mxu0 }
 0x364   : > { %v1216_v22 = vpop.f32.mrb[8].mxu0 }
 0x365   : > { %v1886_v23 = vpop.f32.mrb[9].mxu0  ;;  %v1222_v24 = vsel %vm807_vm3, %v1216_v22, -inf }
 0x366   : > { %v1219_v25 = vpop.f32.mrb[10].mxu0  ;;  %1223 = vmax.xlane.f32.xlu0 %v1222_v24 }
 0x367   : > { %v1887_v26 = vpop.f32.mrb[11].mxu0  ;;  %v2036_v25 = vld [vmem:[%s2746_s8] sm:$0xff]  }
 0x368   : > { %1895 = vmatpush3.bf16.msra.mxu0 %v2036_v25  ;;  %v2037_v26 = vld [vmem:[%s2746_s8 + $0x8] sm:$0xff]  }
 0x369   : > { %1896 = vmatprep.subr.bf16.mxu0 %v2249_v9 }
 0x36c   : > { %1897 = vmatpush3.bf16.msra.mxu0 %v2037_v26 }
 0x36d   : > { %1910 = vmatprep.subr.bf16.mxu0 %v2249_v9 }
 0x36f   : > { %v856_v27 = vpop.xlane.xlu0 %855 }
 0x370   : > { %v857_v28 = vsub.f32 %v848_v6, %v856_v27 }
 0x372   : > { %v858_v29 = vmul.f32 1.442695, %v857_v28 }
 0x374   : > { %2052 = vpow2.f32 %v858_v29 }
 0x37e   : > { %v2053_v30 = vpop.eup %2052 }
 0x37f   : > { %v860_v31 = vsel %vm807_vm3, %v2053_v30, 0.0 }
 0x380   : > { %861 = vadd.xlane.f32.xlu0 %v860_v31 }
 0x3e3   : > { %v978_v32 = vpop.xlane.xlu1 %977 }
 0x3e4   : > { %v979_v33 = vsub.f32 %v970_v12, %v978_v32 }
 0x3e6   : > { %v980_v34 = vmul.f32 1.442695, %v979_v33 }
 0x3e8   : > { %2054 = vpow2.f32 %v980_v34 }
 0x3eb   : > { %v1101_v35 = vpop.xlane.xlu0 %1100 }
 0x3ec   : > { %v1102_v36 = vsub.f32 %v1093_v17, %v1101_v35 }
 0x3ee   : > { %v1103_v37 = vmul.f32 1.442695, %v1102_v36  ;;  %v1767_v36 = vld [vmem:[#allocation9] ss:$0 sm:$0xff] }
 0x3f0   : > { %2056 = vpow2.f32 %v1103_v37 }
 0x3f2   : > { %v2055_v38 = vpop.eup %2054 }
 0x3f3   : > { %v982_v39 = vsel %vm807_vm3, %v2055_v38, 0.0  ;;  %v1224_v43 = vpop.xlane.xlu0 %1223 }
 0x3f4   : > { %983 = vadd.xlane.f32.xlu1 %v982_v39  ;;  %v1225_v44 = vsub.f32 %v1216_v22, %v1224_v43 }
 0x3f6   : > { %v1226_v45 = vmul.f32 1.442695, %v1225_v44 }
 0x3f8   : > { %2058 = vpow2.f32 %v1226_v45 }
 0x3fa   : > { %v2057_v40 = vpop.eup %2056 }
 0x3fb   : > { %v1105_v41 = vsel %vm807_vm3, %v2057_v40, 0.0 }
 0x3fc   : > { %1106 = vadd.xlane.f32.xlu0 %v1105_v41 }
 0x402   : > { %v2059_v46 = vpop.eup %2058 }
 0x403   : > { %v1228_v47 = vsel %vm807_vm3, %v2059_v46, 0.0 }
 0x405   : > { %988 = vrot.lane.b32.xlu1 %v2550_v56, %s2254_s26  ;;  %s2793_s26 = sld [smem:[#allocation25_spill]] }
 0x409   : > { %1111 = vrot.lane.b32.xlu1 %v2555_v58, %s2255_s21 }
 0x40b   : > { %s2690_s21 = scalar_lea.hbm %s2793_s26, %s1787_s20 }
 0x40d   : > { %v862_v48 = vpop.xlane.xlu0 %861 }
 0x40e   : > { %2060 = vrcp.f32 %v862_v48 }
 0x412   : > { %869 = vrot.lane.b32.xlu0 %v1753_v42, %s2256_s17  ;;  %s2794_s17 = smov %s2793_s26 }
 0x418   : > { %v2061_v50 = vpop.eup %2060 }
 0x419   : > { %v864_v52 = vmul.f32 %v2061_v50, %v2053_v30 }
 0x41b   : > { %v865_v56 = vpack.c.bf16 %v864_v52, %v864_v52 }
 0x42d   : > { %1229 = vadd.xlane.f32.xlu1 %v1228_v47 }
 0x43e   : > { %1234 = vrot.lane.b32.xlu1 %v2558_v59, %s2257_s15 }
 0x481   : > { %v984_v49 = vpop.xlane.xlu1 %983 }
 0x482   : > { %2062 = vrcp.f32 %v984_v49 }
 0x485   : > { %v989_v55 = vpop.permute.xlu1 %988 }
 0x486   : > { %v994_v58 = vsel %vm874_vm4, %v989_v55, 0 }
 0x489   : > { %v1107_v51 = vpop.xlane.xlu0 %1106  ;;  %v1112_v60 = vpop.permute.xlu1 %1111 }
 0x48a   : > { %2064 = vrcp.f32 %v1107_v51  ;;  %v1117_v63 = vsel %vm874_vm4, %v1112_v60, 0 }
 0x48c   : > { %v2063_v57 = vpop.eup %2062 }
 0x48d   : > { %v870_v53 = vpop.permute.xlu0 %869  ;;  %v986_v59 = vmul.f32 %v2063_v57, %v2055_v38 }
 0x48e   : > { %v876_v54 = vsel %vm874_vm4, %v870_v53, 0 }
 0x48f   : > { %1853 = vmatpush3.bf16.msra.mxu1 %v876_v54  ;;  %v987_v61 = vpack.c.bf16 %v986_v59, %v986_v59 }
 0x490   : > { %1864 = vmatprep.subr.bf16.mxu1 %v2249_v9 }
 0x492   : > { %1855 = vmatmul.mubr.msk.bf16.vlgmr.msra.gmra.mrb[12].mxu1 %vm807_vm3, %v865_v56  ;;  %v1771_v56 = vld [vmem:[%s2748_s10] ss:$0 sm:$0xff] }
 0x493   : > { %1865 = vmatpush3.bf16.msra.mxu1 %v994_v58  ;;  %1866 = vmatprep.mubr.msk.bf16.mxu1 %vm2250_vm1, %v2249_v9  ;;  %v1772_v58 = vld [vmem:[%s2749_s11] ss:$0 sm:$0xff] }
 0x494   : > { %1876 = vmatprep.subr.bf16.mxu1 %v2249_v9  ;;  %v2065_v62 = vpop.eup %2064 }
 0x495   : > { %v1109_v0 = vmul.f32 %v2065_v62, %v2057_v40  ;;  %v2040_v62 = vld [vmem:[%s2752_s14] sm:$0xff]  }
 0x497   : > { %v1110_v2 = vpack.c.bf16 %v1109_v0, %v1109_v0  ;;  %v2042_v0 = vld [vmem:[%s2752_s14 + $0x10] sm:$0xff]  }
 0x49a   : > { %1867 = vmatmul.mubr.msk.bf16.vlgmr.msra.gmra.mrb[16].mxu1 %vm807_vm3, %v987_v61 }
 0x49b   : > { %1877 = vmatpush3.bf16.msra.mxu1 %v1117_v63  ;;  %1878 = vmatprep.mubr.msk.bf16.mxu1 %vm2250_vm1, %v2249_v9  ;;  %v2041_v63 = vld [vmem:[%s2752_s14 + $0x8] sm:$0xff]  }
 0x49c   : > { %1888 = vmatprep.subr.bf16.mxu1 %v2249_v9 }
 0x4a2   : > { %1879 = vmatmul.mubr.msk.bf16.vlgmr.msra.gmra.mrb[20].mxu1 %vm807_vm3, %v1110_v2  ;;  %v2043_v2 = vld [vmem:[%s2752_s14 + $0x18] sm:$0xff]  }
 0x4a3   : > { %1890 = vmatprep.mubr.msk.bf16.mxu1 %vm2250_vm1, %v2249_v9 }
 0x4ba   : > { %v1230_v3 = vpop.xlane.xlu1 %1229 }
 0x4bb   : > { %2066 = vrcp.f32 %v1230_v3  ;;  %v2044_v3 = vld [vmem:[%s2752_s14 + $0x20] sm:$0xff]  }
 0x4be   : > { %v1235_v4 = vpop.permute.xlu1 %1234 }
 0x4bf   : > { %v1240_v5 = vsel %vm874_vm4, %v1235_v4, 0  ;;  %v2045_v4 = vld [vmem:[%s2752_s14 + $0x28] sm:$0xff]  }
 0x4c0   : > { %1889 = vmatpush3.bf16.msra.mxu1 %v1240_v5  ;;  %v2046_v5 = vld [vmem:[%s2752_s14 + $0x30] sm:$0xff]  }
 0x4c1   : > { %1902 = vmatprep.subr.bf16.mxu1 %v2249_v9 }
 0x4c5   : > { %v2067_v6 = vpop.eup %2066 }
 0x4c6   : > { %v1232_v7 = vmul.f32 %v2067_v6, %v2059_v46  ;;  %v2038_v46 = vld [vmem:[%s2750_s12] sm:$0xff]   ;;  %v2047_v6 = vld [vmem:[%s2752_s14 + $0x38] sm:$0xff]  }
 0x4c8   : > { %v1233_v8 = vpack.c.bf16 %v1232_v7, %v1232_v7  ;;  %v1773_v7 = vld [vmem:[%s2751_s13] ss:$0 sm:$0xff] }
 0x4ca   : > { %1891 = vmatmul.mubr.msk.bf16.vlgmr.msra.gmra.mrb[24].mxu1 %vm807_vm3, %v1233_v8 }
 0x4cb   : > { %1906 = vmatprep.mubr.msk.bf16.mxu1 %vm2250_vm1, %v2249_v9  ;;  %1903 = vmatpush3.bf16.msra.mxu1 %v2038_v46 }
 0x4cc   : > { %1904 = vmatprep.subr.bf16.mxu1 %v2249_v9 }
 0x565   : > { %v912_v10 = vpop.f32.mrb[12].mxu1 }
 0x566   : > { %v918_v11 = vpack.c.bf16 %v912_v10, %v912_v10  ;;  %v1856_v12 = vpop.f32.mrb[13].mxu1 }
 0x567   : > { %v915_v13 = vpop.f32.mrb[14].mxu1 }
 0x568   : > { %920 = vst.msk [vmem:[#allocation3] sm:$0xf] %vm919_vm5, %v918_v11  ;;  %v1857_v14 = vpop.f32.mrb[15].mxu1 }
 0x56d   : > { %v1030_v15 = vpop.f32.mrb[16].mxu1 }
 0x56e   : > { %v1790_v16 = vpack.c.bf16 %v1030_v15, %v1030_v15  ;;  %v1868_v17 = vpop.f32.mrb[17].mxu1 }
 0x56f   : > { %v1033_v18 = vpop.f32.mrb[18].mxu1 }
 0x570   : > { %1040 = vrot.lane.b32.xlu0 %v1790_v16, %s2258_s25  ;;  %v1869_v19 = vpop.f32.mrb[19].mxu1  ;;  %s2261_s25 = smov [#allocation10]  }
 0x575   : > { %v1153_v20 = vpop.f32.mrb[20].mxu1 }
 0x576   : > { %v1791_v21 = vpack.c.bf16 %v1153_v20, %v1153_v20  ;;  %v1880_v22 = vpop.f32.mrb[21].mxu1 }
 0x577   : > { %v1156_v23 = vpop.f32.mrb[22].mxu1 }
 0x578   : > { %1163 = vrot.lane.b32.xlu1 %v1791_v21, %s2259_s0  ;;  %v1881_v24 = vpop.f32.mrb[23].mxu1  ;;  %s583_s0 = sand.u32 1, %s2228_s22  }
 0x579   : > { %s1737_s18 = sshll.u32 %s583_s0, 3  ;;  %s1598_s24 = scalar_lea.sflag [#allocation6], %s583_s0 }
 0x57a   : > { %s585_s16 = scalar_lea.vmem [#allocation10], %s1737_s18  ;;  %s2162_s18 = sshll.u32 %s2261_s25, 4  ;;  %s2163_s18 = int_to_ptr.vmem [resolvable:$false] %s2162_s18 }
 0x57b   : > { %s1612_s23 = sshll.u32 %s585_s16, 4  ;;  %s2164_s27 = scalar_lea.vmem %s2163_s18, 256  ;;  %s2692_s23 = int_to_ptr.vmem [resolvable:$true] %s1612_s23 }
 0x57c   : > { %s2158_s15 = scalar_lea.vmem %s2692_s23, 128  ;;  %p2165_p11 = scmp.lt.s32.totalorder %s2692_s23, %s2163_s18 }
 0x57d   : > { %p2159_p13 = scmp.ne.s32.totalorder %s2692_s23, %s2158_s15  ;;  %p2166_p3 = scmp.lt.s32.totalorder %s2164_s27, %s2158_s15 }
 0x57f   : > { %p2167_p5 = por %p2166_p3, %p2165_p11 }
 0x59d   : > { %v1276_v27 = vpop.f32.mrb[24].mxu1 }
 0x59e   : > { %v1792_v28 = vpack.c.bf16 %v1276_v27, %v1276_v27  ;;  %v1892_v29 = vpop.f32.mrb[25].mxu1 }
 0x59f   : > { %v1279_v30 = vpop.f32.mrb[26].mxu1 }
 0x5a0   : > { %1286 = vrot.lane.b32.xlu0 %v1792_v28, %s2260_s28  ;;  %v1893_v31 = vpop.f32.mrb[27].mxu1  ;;  %s2792_s28 = sld [smem:[#allocation19_spill]] }
 0x5a6   : > { %p2795_p4 = scmp.ne.s32.totalorder %s2792_s28, 0 }
 0x5a8   : > { %p2160_p8 = pnand %p2159_p13, %p2795_p4 }
 0x5aa   : > { %p2161_p10 = pneg %p2160_p8 }
 0x5ac   : > { %p2168_p6 = pnand %p2167_p5, %p2161_p10 }
 0x5e2   : > { %v1041_v32 = vpop.permute.xlu0 %1040 }
 0x5e3   : > { %1044 = vst.msk [vmem:[#allocation3] sm:$0xf] %vm1043_vm6, %v1041_v32 }
 0x5ea   : > { %v1164_v33 = vpop.permute.xlu1 %1163 }
 0x5eb   : > { %1167 = vst.msk [vmem:[#allocation3] sm:$0xf] %vm1166_vm7, %v1164_v33 }
 0x612   : > { %v1287_v34 = vpop.permute.xlu0 %1286 }
 0x613   : > { %1290 = vst.msk [vmem:[#allocation3] sm:$0xf] %vm1289_vm8, %v1287_v34 }
 0x61a   : > { %v1291_v35 = vld [vmem:[#allocation3] sm:$0xf] }
 0x61b   : > { %1899 = vmatmul.mubr.msk.bf16.vlgmr.msra.gmra.mrb[12].mxu0 %vm605_vm0, %v1291_v35 }
 0x61c   : > { %1926 = vmatprep.mubr.msk.bf16.mxu0 %vm2250_vm1, %v2249_v9  ;;  %1911 = vmatpush3.bf16.msra.mxu0 %v2040_v62 }
 0x61d   : > { %1912 = vmatprep.subr.bf16.mxu0 %v2249_v9 }
 0x620   : > { %1913 = vmatpush3.bf16.msra.mxu0 %v2041_v63 }
 0x621   : > { %1914 = vmatprep.subr.bf16.mxu0 %v2249_v9 }
 0x624   : > { %1915 = vmatpush3.bf16.msra.mxu0 %v2042_v0 }
 0x625   : > { %1916 = vmatprep.subr.bf16.mxu0 %v2249_v9 }
 0x628   : > { %1917 = vmatpush3.bf16.msra.mxu0 %v2043_v2 }
 0x629   : > { %1918 = vmatprep.subr.bf16.mxu0 %v2249_v9 }
 0x62c   : > { %1919 = vmatpush3.bf16.msra.mxu0 %v2044_v3 }
 0x62d   : > { %1920 = vmatprep.subr.bf16.mxu0 %v2249_v9 }
 0x630   : > { %1921 = vmatpush3.bf16.msra.mxu0 %v2045_v4 }
 0x631   : > { %1922 = vmatprep.subr.bf16.mxu0 %v2249_v9 }
 0x634   : > { %1923 = vmatpush3.bf16.msra.mxu0 %v2046_v5 }
 0x635   : > { %1924 = vmatprep.subr.bf16.mxu0 %v2249_v9 }
 0x638   : > { %1925 = vmatpush3.bf16.msra.mxu0 %v2047_v6 }
 0x6ee   : > { %v1352_v37 = vpop.f32.mrb[12].mxu0 }
 0x6ef   : > { %v1353_v38 = vadd.f32 %v1767_v36, %v1352_v37  ;;  %v1900_v39 = vpop.f32.mrb[13].mxu0 }
 0x6f0   : > { %v1355_v40 = vpop.f32.mrb[14].mxu0  ;;  %v1777_v39 = vld [vmem:[%s2791_s29] ss:$0 sm:$0xff] }
 0x6f1   : > { %v2625_v41 = vadd.f32 %v1353_v38, %v2504_v1  ;;  %v1901_v42 = vpop.f32.mrb[15].mxu0  ;;  %v2039_v1 = vld [vmem:[%s2750_s12 + $0x8] sm:$0xff]  }
 0x6f2   : > { %1905 = vmatpush3.bf16.msra.mxu1 %v2039_v1 }
 0x6f3   : > { %v1361_v43 = vsel %vm605_vm0, %v2625_v41, 0.0  ;;  %v1364_v44 = vmul.f32 %v2625_v41, %v2625_v41 }
 0x6f4   : > { %1362 = vadd.xlane.f32.xlu1 %v1361_v43 }
 0x6f5   : > { %v1365_v45 = vsel %vm605_vm0, %v1364_v44, 0.0 }
 0x6f6   : > { %1366 = vadd.xlane.f32.xlu0 %v1365_v45 }
 0x781   : > { %v1363_v47 = vpop.xlane.xlu1 %1362 }
 0x782   : > { %v1368_v48 = vmul.f32 0.03125, %v1363_v47 }
 0x783   : > { %v1367_v49 = vpop.xlane.xlu0 %1366 }
 0x784   : > { %v1370_v50 = vmul.f32 %v1368_v48, %v1368_v48  ;;  %v1369_v51 = vmul.f32 0.03125, %v1367_v49  ;;  %v1372_v54 = vsub.f32 %v2625_v41, %v1368_v48 }
 0x786   : > { %v1371_v52 = vsub.f32 %v1369_v51, %v1370_v50 }
 0x788   : > { %v1373_v53 = vadd.f32 1e-05, %v1371_v52 }
 0x78a   : > { %2068 = vrsqrt.f32 %v1373_v53 }
 0x794   : > { %v2069_v55 = vpop.eup %2068 }
 0x795   : > { %v1375_v57 = vmul.f32 %v2069_v55, %v1372_v54 }
 0x797   : > { %v1382_v59 = vmul.f32 %v1771_v56, %v1375_v57 }
 0x799   : > { %v1389_v60 = vadd.f32 %v1772_v58, %v1382_v59 }
 0x79b   : > { %v1390_v61 = vpack.c.bf16 %v1389_v60, %v1389_v60 }
 0x79d   : > { %1907 = vmatmul.mubr.msk.bf16.vlgmr.msra.gmra.mrb[28].mxu1 %vm605_vm0, %v1390_v61 }
 0x870   : > { %v1451_v8 = vpop.f32.mrb[28].mxu1 }
 0x871   : > { %v1452_v10 = vadd.f32 %v1773_v7, %v1451_v8  ;;  %v1908_v11 = vpop.f32.mrb[29].mxu1 }
 0x872   : > { %v1454_v12 = vpop.f32.mrb[30].mxu1 }
 0x873   : > { %v1458_v13 = vmul.f32 0.70710677, %v1452_v10  ;;  %v1909_v14 = vpop.f32.mrb[31].mxu1  ;;  %v1457_v35 = vmul.f32 0.5, %v1452_v10 }
 0x875   : > { %v1459_v15 = vand.u32 2147483647, %v1458_v13  ;;  %vm1478_vm9 = vcmp.lt.f32.partialorder %v1458_v13, 0.0 }
 0x877   : > { %v1460_v16 = vmul.f32 0.3275911, %v1459_v15  ;;  %v1472_v9 = vmul.f32 %v1459_v15, %v1459_v15 }
 0x879   : > { %v1461_v17 = vadd.f32 1.0, %v1460_v16  ;;  %v1473_v19 = vsub.f32 0.0, %v1472_v9 }
 0x87b   : > { %2070 = vrcp.f32 %v1461_v17  ;;  %v1474_v22 = vmul.f32 1.442695, %v1473_v19 }
 0x87d   : > { %2072 = vpow2.f32 %v1474_v22 }
 0x885   : > { %v2071_v18 = vpop.eup %2070 }
 0x886   : > { %v1463_v20 = vmul.f32 1.0614054, %v2071_v18 }
 0x887   : > { %v2073_v30 = vpop.eup %2072 }
 0x888   : > { %v1464_v21 = vadd.f32 -1.4531521, %v1463_v20 }
 0x88a   : > { %v1465_v23 = vmul.f32 %v2071_v18, %v1464_v21 }
 0x88c   : > { %v1466_v24 = vadd.f32 1.4214138, %v1465_v23 }
 0x88e   : > { %v1467_v25 = vmul.f32 %v2071_v18, %v1466_v24 }
 0x890   : > { %v1468_v26 = vadd.f32 -0.28449672, %v1467_v25 }
 0x892   : > { %v1469_v27 = vmul.f32 %v2071_v18, %v1468_v26 }
 0x894   : > { %v1470_v28 = vadd.f32 0.2548296, %v1469_v27 }
 0x896   : > { %v1471_v29 = vmul.f32 %v2071_v18, %v1470_v28 }
 0x898   : > { %v1476_v31 = vmul.f32 %v2073_v30, %v1471_v29 }
 0x89a   : > { %v1477_v32 = vsub.f32 1.0, %v1476_v31 }
 0x89c   : > { %v1479_v33 = vsub.f32 0.0, %v1477_v32 }
 0x89e   : > { %v1480_v34 = vsel %vm1478_vm9, %v1479_v33, %v1477_v32 }
 0x89f   : > { %v1481_v36 = vadd.f32 1.0, %v1480_v34 }
 0x8a1   : > { %v1482_v37 = vmul.f32 %v1481_v36, %v1457_v35 }
 0x8a3   : > { %v1483_v38 = vpack.c.bf16 %v1482_v37, %v1482_v37 }
 0x8a5   : > { %1927 = vmatmul.mubr.bf16.vlgmr.msra.gmra.mrb[16].mxu0 %v1483_v38 }
 0x978   : > { %v1589_v40 = vpop.f32.mrb[16].mxu0 }
 0x979   : > { %v1590_v42 = vadd.f32 %v1777_v39, %v1589_v40  ;;  %v1928_v43 = vpop.f32.mrb[17].mxu0 }
 0x97a   : > { %v1592_v44 = vpop.f32.mrb[18].mxu0 }
 0x97b   : > { %v1595_v45 = vadd.f32 %v1590_v42, %v2625_v41  ;;  %v1929_v46 = vpop.f32.mrb[19].mxu0 }
 0x97d   : > { %1596 = vst.msk [vmem:[%s585_s16] sm:$0xff] %vm605_vm0, %v1595_v45 }
 0x97e   : > { %2171 = shalt.err (!%p2168_p6)
}
 0x97f   : > { %s2172_s0 = scalar_lea.hbm %s2690_s21, 128  ;;  %s2176_s20 = scalar_lea.hbm %s2794_s17, 256 }
 0x980   : > { %p2173_p7 = scmp.ne.s32.totalorder %s2690_s21, %s2172_s0  ;;  %p2177_p0 = scmp.lt.u32.totalorder %s2690_s21, %s2794_s17 }
 0x981   : > { %p2178_p2 = scmp.lt.u32.totalorder %s2176_s20, %s2172_s0  ;;  %p2180_p13 = scmp.lt.u32.totalorder %s2172_s0, %s2690_s21 }
 0x982   : > { %p2174_p9 = pnand %p2173_p7, %p2795_p4 }
 0x983   : > { %p2179_p1 = por %p2178_p2, %p2177_p0 }
 0x984   : > { %p2175_p12 = pneg %p2174_p9 }
 0x985   : > { %p2181_p8 = por %p2180_p13, %p2179_p1 }
 0x987   : > { %p2182_p10 = pnand %p2181_p8, %p2175_p12 }
 0x989   : > { %2185 = shalt.err (!%p2182_p10)
}
 0x98a   : > { %1942 = dma.vmem_to_hbm [thread:$0]  (%p2795_p4), %s2692_s23, 128, %s2690_s21, %s1598_s24  }
 0x98b PF: > { %s2796_s19 = sld [smem:[#allocation17_spill]]  ;;  %s2797_s26 = sld [smem:[#allocation14_spill]] }
 0x98c   : > { %s2798_s15 = sld [smem:[#allocation20_spill]] }
 0x991   : > { %p1964_p11 = scmp.ge.s32.totalorder %s2796_s19, 2  ;;  %s1624_s25 = sand.u32 1, %s2797_s26  }
 0x992   : > { %p2799_p3 = scmp.ne.s32.totalorder %s2798_s15, 0  ;;  %s1625_s18 = scalar_lea.sflag [#allocation6], %s1624_s25 }
 0x994   : > { %p1955_p5 = pnand %p1964_p11, %p2799_p3 }
 0x996   : > { %2219 = dma.done.wait (!%p1955_p5), %s1625_s18, 128  }
 0x997   : > { %2221 = vsyncadd (!%p1955_p5), %s1625_s18, 4294967168  ;;  %s31_s26 = sadd.s32 1, %s2796_s19   ;;  %s2800_s27 = sld [smem:[#allocation15_spill]] }
 0x998   : > { %p28_p6 = scmp.ge.s32.totalorder %s31_s26, 4   ;;  %s2801_s23 = sld [smem:[#allocation21_spill]] }
 0x999   : > { %s2802_s24 = sld [smem:[#allocation16_spill]]  ;;  %s2803_s25 = sld [smem:[#allocation18_spill]] }
 0x99a   : > { %s2804_s21 = smov %s2228_s22  ;;  %30 = sbr.rel (!%p28_p6) target bundleno = 11 (0xb), region = 139 }
 0x99d   : > { %s2805_s22 = smov %s2800_s27 }
 0x9a1   :  { %1630 = vsyncpa [#allocation5], 1 }
 0x9a2   :  { %1632 = vsyncpa [#allocation5 + $0x1], 1 }
 0x9a3   :  { %1633 = vsyncpa [#allocation8], 1 }
 0x9a4   :  { %1634 = vsyncpa [#allocation6], 1 }
 0x9a5   :  { %1636 = vsyncpa [#allocation6 + $0x1], 1 }

// kernel: tpu_custom_call.1
= control target key start
LH: loop header
LB: loop body
LE: loop exit
PB: predicated region body
PF: predicated region fallthrough
CT: control target
= control target key end

     0   :  { %s2738_s0 = inlined_call_operand.vmem [shape: f32[2,8,32], index: 0, kind: input, shape index: {}]   ;;  %s2739_s1 = inlined_call_operand.vmem [shape: f32[2,8,32], index: 1, kind: input, shape index: {}]   ;;  %s2740_s2 = inlined_call_operand.vmem [shape: f32[1,32], index: 2, kind: input, shape index: {}]   ;;  %s2741_s3 = inlined_call_operand.vmem [shape: f32[1,32], index: 3, kind: input, shape index: {}]   ;;  %s2742_s4 = inlined_call_operand.vmem [shape: bf16[32,32], index: 4, kind: input, shape index: {}]   ;;  %s2743_s5 = inlined_call_operand.hbm [shape: f32[1,32], index: 5, kind: input, shape index: {}]   ;;  %s2744_s6 = inlined_call_operand.vmem [shape: bf16[32,64], index: 6, kind: input, shape index: {}]   ;;  %s2745_s7 = inlined_call_operand.hbm [shape: f32[1,64], index: 7, kind: input, shape index: {}]   ;;  %s2746_s8 = inlined_call_operand.vmem [shape: bf16[32,32], index: 8, kind: input, shape index: {}]   ;;  %s2747_s9 = inlined_call_operand.hbm [shape: f32[1,32], index: 9, kind: input, shape index: {}]   ;;  %s2748_s10 = inlined_call_operand.vmem [shape: f32[1,32], index: 10, kind: input, shape index: {}]   ;;  %s2749_s11 = inlined_call_operand.vmem [shape: f32[1,32], index: 11, kind: input, shape index: {}]   ;;  %s2750_s12 = inlined_call_operand.vmem [shape: bf16[32,128], index: 12, kind: input, shape index: {}]   ;;  %s2751_s13 = inlined_call_operand.vmem [shape: f32[1,128], index: 13, kind: input, shape index: {}]   ;;  %s2752_s14 = inlined_call_operand.vmem [shape: bf16[128,32], index: 14, kind: input, shape index: {}]   ;;  %s2753_s15 = inlined_call_operand.vmem [shape: f32[1,32], index: 15, kind: input, shape index: {}]   ;;  %s2754_s16 = inlined_call_operand.hbm [shape: f32[2,8,32], index: 16, kind: output, shape index: {}]  }
   0x1   :  { %2769 = sst [smem:[#allocation22_spill]] %s2738_s0 }
   0x2   :  { %2770 = sst [smem:[#allocation23_spill]] %s2745_s7 }
   0x3   :  { %2771 = sst [smem:[#allocation24_spill]] %s2753_s15 }
   0x4   :  { %2772 = sst [smem:[#allocation25_spill]] %s2754_s16 }
   0x5   :  { %21 = vsyncpa [#allocation5], 0 }
   0x6   :  { %22 = vsyncpa [#allocation8], 0 }
   0x7   :  { %23 = vsyncpa [#allocation6], 0 }
   0x8   :  { %25 = vsyncpa [#allocation6 + $0x1], 0  ;;  %s2347_s21 = smov 0   ;;  %s2349_s22 = smov 0  }
   0x9   :  { %s2351_s23 = smov 0   ;;  %s2353_s24 = smov 0  }
   0xa   :  { %s2355_s25 = smov 0   ;;  %s2357_s26 = smov 0  }
   0xb LB: > { %2773 = sst [smem:[#allocation14_spill]] %s2224_s21  ;;  %s1726_s27 = sadd.s32 4294967295, %s2244_s26   ;;  %s2244_s26 = sphi %s2357_s26, %s31_s26   ;;  %s2240_s25 = sphi %s2355_s25, %s2803_s25   ;;  %s2236_s24 = sphi %s2353_s24, %s2802_s24   ;;  %s2232_s23 = sphi %s2351_s23, %s2801_s23   ;;  %s2228_s22 = sphi %s2349_s22, %s2805_s22   ;;  %s2224_s21 = sphi %s2347_s21, %s2804_s21  }
   0xc   : > { %2774 = sst [smem:[#allocation15_spill]] %s2232_s23  ;;  %s1727_s28 = sadd.s32 4294967294, %s2244_s26  }
   0xd   : > { %2775 = sst [smem:[#allocation16_spill]] %s2240_s25  ;;  %s43_s29 = sadd.s32 1, %s2240_s25 }
   0xe   : > { %2776 = sst [smem:[#allocation17_spill]] %s2244_s26  ;;  %s400_s30 = sadd.s32 1, %s2232_s23 }
   0xf   : > { %p45_p0 = scmp.ge.s32.totalorder %s43_s29, 2  ;;  %p410_p1 = scmp.ne.s32.totalorder %s2232_s23, %s2228_s22 }
  0x10   : > { %p411_p2 = scmp.eq.s32.totalorder %s1726_s27, 1  ;;  %p416_p3 = scmp.ne.s32.totalorder %s2228_s22, %s2224_s21 }
  0x11   : > { %s2807_s29 = smov (%p45_p0, %s43_s29), 0  ;;  %p417_p5 = scmp.eq.s32.totalorder %s1727_s28, 1 }
  0x12   : > { %2777 = sst [smem:[#allocation18_spill]] %s2807_s29  ;;  %p2387_p4 = por %p411_p2, %p410_p1 }
  0x13   : > { %s395_s17 = ssub.s32 %s2240_s25, %s2807_s29  ;;  %p1728_p6 = scmp.ge.s32.totalorder %s2244_s26, 1 }
  0x14   : > { %s2778_s0 = scalar_select %p2387_p4, 1, 0 }
  0x15   : > { %p398_p7 = scmp.eq.s32.totalorder %s395_s17, 0  ;;  %p2394_p8 = por %p417_p5, %p416_p3 }
  0x16   : > { %2779 = sst [smem:[#allocation19_spill]] %s2778_s0  ;;  %p424_p9 = scmp.lt.s32.totalorder %s2244_s26, 3 }
  0x17   : > { %s2780_s18 = scalar_select %p2394_p8, 1, 0 }
  0x18   : > { %s2400_s19 = scalar_select %p398_p7, %s2232_s23, %s400_s30  }
  0x19   : > { %2781 = sst [smem:[#allocation20_spill]] %s2780_s18  ;;  %p2402_p10 = pnand %p1728_p6, %p424_p9 }
  0x1a   : > { %2782 = sst [smem:[#allocation21_spill]] %s2400_s19  ;;  %p2406_p11 = scmp.eq.s32.totalorder %s1726_s27, 0 }
  0x1b   : > { %s2783_s20 = scalar_select %p2402_p10, 1, 0 }
  0x1c   : > { %s2784_s21 = scalar_select %p2406_p11, 1, 0 }
  0x1d   : > { %p1944_p12 = pneg %p2402_p10  ;;  %s2246_s28 = smov [#allocation7]  }
  0x1e   : > { %s460_s17 = sshll.u32 %s2246_s28, 4  ;;  %s2247_s30 = smov [#allocation4]   ;;  %s461_s17 = int_to_ptr.vmem [resolvable:$true] %s460_s17 }
  0x1f   : > { %p2414_p13 = pnand %p2406_p11, %p1944_p12  ;;  %s446_s25 = sshll.u32 %s2247_s30, 4  ;;  %s2418_s25 = int_to_ptr.vmem [resolvable:$true] %s446_s25 }
  0x20   : > { %s2786_s7 = sld [smem:[#allocation23_spill]] }
  0x21   : > { %p2428_p1 = pneg %p2414_p13 }
  0x26   : > { %s2074_s23 = scalar_lea.hbm %s2786_s7, 16 }
  0x27   : > { %p2075_p0 = scmp.ne.s32.totalorder %s2786_s7, %s2074_s23  ;;  %p2081_p5 = scmp.lt.u32.totalorder %s2074_s23, %s2786_s7 }
  0x29   : > { %p2077_p2 = pnand %p2428_p1, %p2075_p0 }
  0x2b   : > { %p2078_p3 = pneg %p2077_p2 }
  0x2d   : > { %p2083_p6 = pnand %p2081_p5, %p2078_p3 }
  0x2f   : > { %2086 = shalt.err (!%p2083_p6)
}
  0x30   : > { %s2087_s19 = scalar_lea.vmem %s461_s17, 16  ;;  %s2094_s26 = scalar_lea.vmem %s461_s17, 32 }
  0x31   : > { %p2088_p7 = scmp.ne.s32.totalorder %s461_s17, %s2087_s19  ;;  %p2095_p8 = scmp.lt.s32.totalorder %s461_s17, %s461_s17 }
  0x32   : > { %p2096_p4 = scmp.lt.s32.totalorder %s2094_s26, %s2087_s19 }
  0x33   : > { %p2090_p9 = pnand %p2088_p7, %p2428_p1 }
  0x34   : > { %p2097_p11 = por %p2096_p4, %p2095_p8 }
  0x35   : > { %p2091_p12 = pneg %p2090_p9 }
  0x37   : > { %p2098_p10 = pnand %p2097_p11, %p2091_p12 }
  0x39   : > { %2101 = shalt.err (!%p2098_p10)
}
  0x3a   : > { %1950 = dma.hbm_to_vmem [thread:$0]  (!%p2414_p13), %s2786_s7, 16, %s461_s17, [#allocation8]  }
  0x3b   : > { %s2102_s30 = scalar_lea.hbm %s2743_s5, 16 }
  0x3c   : > { %p2103_p0 = scmp.ne.s32.totalorder %s2743_s5, %s2102_s30  ;;  %p2109_p8 = scmp.lt.u32.totalorder %s2102_s30, %s2743_s5 }
  0x3e   : > { %p2105_p2 = pnand %p2103_p0, %p2428_p1 }
  0x40   : > { %p2106_p4 = pneg %p2105_p2 }
  0x42   : > { %p2111_p10 = pnand %p2109_p8, %p2106_p4 }
  0x44   : > { %2114 = shalt.err (!%p2111_p10)
}
  0x45   : > { %s2115_s17 = scalar_lea.vmem %s2418_s25, 16  ;;  %s2122_s15 = scalar_lea.vmem %s2418_s25, 32 }
  0x46   : > { %p2116_p11 = scmp.ne.s32.totalorder %s2418_s25, %s2115_s17  ;;  %p2123_p6 = scmp.lt.s32.totalorder %s2418_s25, %s2418_s25 }
  0x47   : > { %p2124_p7 = scmp.lt.s32.totalorder %s2122_s15, %s2115_s17 }
  0x48   : > { %p2118_p3 = pnand %p2116_p11, %p2428_p1 }
  0x49   : > { %p2125_p9 = por %p2124_p7, %p2123_p6 }
  0x4a   : > { %p2119_p5 = pneg %p2118_p3 }
  0x4c   : > { %p2126_p12 = pnand %p2125_p9, %p2119_p5 }
  0x4e   : > { %2129 = shalt.err (!%p2126_p12)
}
  0x4f   : > { %1947 = dma.hbm_to_vmem [thread:$0]  (!%p2414_p13), %s2743_s5, 16, %s2418_s25, [#allocation5]  }
  0x50   : > { %s2248_s27 = smov [#allocation9]   ;;  %s2130_s19 = scalar_lea.hbm %s2747_s9, 16 }
  0x51   : > { %s474_s16 = sshll.u32 %s2248_s27, 4  ;;  %p2131_p0 = scmp.ne.s32.totalorder %s2747_s9, %s2130_s19  ;;  %s475_s16 = int_to_ptr.vmem [resolvable:$true] %s474_s16 }
  0x52   : > { %p2137_p8 = scmp.lt.u32.totalorder %s2130_s19, %s2747_s9 }
  0x53   : > { %p2133_p2 = pnand %p2131_p0, %p2428_p1 }
  0x55   : > { %p2134_p4 = pneg %p2133_p2 }
  0x57   : > { %p2139_p10 = pnand %p2137_p8, %p2134_p4 }
  0x59   : > { %2142 = shalt.err (!%p2139_p10)
}
  0x5a   : > { %s2143_s25 = scalar_lea.vmem %s475_s16, 16  ;;  %s2150_s0 = scalar_lea.vmem %s475_s16, 32 }
  0x5b   : > { %p2144_p11 = scmp.ne.s32.totalorder %s475_s16, %s2143_s25  ;;  %p2151_p6 = scmp.lt.s32.totalorder %s475_s16, %s475_s16 }
  0x5c   : > { %p2152_p7 = scmp.lt.s32.totalorder %s2150_s0, %s2143_s25 }
  0x5d   : > { %p2146_p3 = pnand %p2144_p11, %p2428_p1 }
  0x5e   : > { %p2153_p9 = por %p2152_p7, %p2151_p6 }
  0x5f   : > { %p2147_p5 = pneg %p2146_p3 }
  0x61   : > { %p2154_p12 = pnand %p2153_p9, %p2147_p5 }
  0x63   : > { %2157 = shalt.err (!%p2154_p12)
}
  0x64   : > { %1953 = dma.hbm_to_vmem [thread:$0]  (!%p2414_p13), %s2747_s9, 16, %s475_s16, [#allocation8]  }
  0x65   : > { %p2788_p0 = scmp.ne.s32.totalorder %s2783_s20, 0 }
  0x66   : > { %p2789_p2 = scmp.ne.s32.totalorder (!%p2788_p0), %s2784_s21, 0 }
  0x67   : > { %522 = sbr.rel (%p2788_p0) target bundleno = 2443 (0x98b), region = 84 }
  0x6e   : > { %2211 = dma.done.wait (%p2789_p2), [#allocation5], 16  }
  0x6f   : > { %2213 = vsyncadd (%p2789_p2), [#allocation5], 4294967280 }
  0x70   : > { %2215 = dma.done.wait (%p2789_p2), [#allocation8], 32  }
  0x71   : > { %2217 = vsyncadd (%p2789_p2), [#allocation8], 4294967264  ;;  %p586_p1 = scmp.lt.s32.totalorder %s2236_s24, 1  ;;  %s2790_s16 = sld [smem:[#allocation22_spill]]  ;;  %vm605_vm0 = vcmask 261120   ;;  %v2028_v8 = vld [vmem:[%s2744_s6] sm:$0xff]  }
  0x72   : > { %v2249_v9 = vmov 0.0   ;;  %v2029_v10 = vld [vmem:[%s2744_s6 + $0x8] sm:$0xff]   ;;  %vm2250_vm1 = vmmov 0   ;;  %v1740_v28 = vld [vmem:[%s2740_s2] ss:$0 sm:$0xff]  ;;  %vm703_vm2 = vcmask 519168  }
  0x73   : > { %s587_s7 = scalar_select %p586_p1, %s2236_s24, 1  ;;  %1830 = vmatprep.subr.bf16.mxu1 %v2249_v9  ;;  %1858 = vmatprep.subr.bf16.mxu0 %v2249_v9  ;;  %v1741_v31 = vld [vmem:[%s2741_s3] ss:$0 sm:$0xff]  ;;  %v2031_v38 = vld [vmem:[%s2742_s4 + $0x8] sm:$0xff]   ;;  %vm807_vm3 = vcmask 64512   ;;  %vm874_vm4 = vcmask 1043456  }
  0x74   : > { %1831 = vmatpush3.bf16.msra.mxu1 %v2028_v8  ;;  %1834 = vmatprep.mubr.msk.bf16.mxu1 %vm2250_vm1, %v2249_v9  ;;  %v2030_v35 = vld [vmem:[%s2742_s4] sm:$0xff]   ;;  %v1742_v41 = vld [vmem:[#allocation7] ss:$0 sm:$0xff]  ;;  %v1748_v48 = vld [vmem:[#allocation4] ss:$0 sm:$0xff]  ;;  %s2252_s30 = smov 112  }
  0x75   : > { %s1738_s29 = sshll.u32 %s587_s7, 3  ;;  %1832 = vmatprep.subr.bf16.mxu1 %v2249_v9  ;;  %1860 = vmatprep.mubr.msk.bf16.mxu0 %vm2250_vm1, %v2249_v9  ;;  %s2253_s19 = smov 104   ;;  %vm919_vm5 = vcmask 60416   ;;  %vm1043_vm6 = vcmask 126016   ;;  %vm1166_vm7 = vcmask 191616   ;;  %vm1289_vm8 = vcmask 257216  }
  0x76   : > { %s596_s26 = scalar_lea.vmem %s2739_s1, %s1738_s29  ;;  %s2255_s21 = smov 80  }
  0x77   : > { %s589_s23 = scalar_lea.vmem %s2790_s16, %s1738_s29  ;;  %v2504_v1 = vld [vmem:[%s596_s26] sm:$0xff]  ;;  %s2254_s26 = smov 88  }
  0x78   : > { %v602_v0 = vld [vmem:[%s589_s23] sm:$0xff]  ;;  %v709_v3 = vsel %vm605_vm0, %v2504_v1, 0.0  ;;  %v712_v5 = vmul.f32 %v2504_v1, %v2504_v1  ;;  %1833 = vmatpush3.bf16.msra.mxu1 %v2029_v10  ;;  %s2251_s23 = smov 120   ;;  %s2256_s17 = smov 96  }
  0x79   : > { %v606_v2 = vsel %vm605_vm0, %v602_v0, 0.0  ;;  %v609_v4 = vmul.f32 %v602_v0, %v602_v0  ;;  %710 = vadd.xlane.f32.xlu1 %v709_v3  ;;  %1838 = vmatprep.subr.bf16.mxu1 %v2249_v9  ;;  %s2257_s15 = smov 72   ;;  %s2258_s25 = smov 8  }
  0x7a   : > { %607 = vadd.xlane.f32.xlu0 %v606_v2  ;;  %v713_v7 = vsel %vm605_vm0, %v712_v5, 0.0  ;;  %s2259_s0 = smov 16   ;;  %s2260_s28 = smov 24  }
  0x7b   : > { %v610_v6 = vsel %vm605_vm0, %v609_v4, 0.0  ;;  %s2791_s29 = sld [smem:[#allocation24_spill]]  ;;  %s1787_s20 = sshll.u32 %s2236_s24, 7 }
  0x7d   : > { %714 = vadd.xlane.f32.xlu1 %v713_v7 }
  0x7e   : > { %611 = vadd.xlane.f32.xlu0 %v610_v6 }
 0x106   : > { %v711_v12 = vpop.xlane.xlu1 %710 }
 0x107   : > { %v608_v11 = vpop.xlane.xlu0 %607  ;;  %v716_v14 = vmul.f32 0.03125, %v711_v12 }
 0x108   : > { %v613_v13 = vmul.f32 0.03125, %v608_v11 }
 0x109   : > { %v718_v15 = vmul.f32 %v716_v14, %v716_v14  ;;  %v720_v26 = vsub.f32 %v2504_v1, %v716_v14 }
 0x10a   : > { %v715_v17 = vpop.xlane.xlu1 %714  ;;  %v615_v18 = vmul.f32 %v613_v13, %v613_v13  ;;  %v617_v25 = vsub.f32 %v602_v0, %v613_v13 }
 0x10b   : > { %v612_v16 = vpop.xlane.xlu0 %611  ;;  %v717_v20 = vmul.f32 0.03125, %v715_v17 }
 0x10c   : > { %v614_v19 = vmul.f32 0.03125, %v612_v16 }
 0x10d   : > { %v719_v22 = vsub.f32 %v717_v20, %v718_v15 }
 0x10e   : > { %v616_v21 = vsub.f32 %v614_v19, %v615_v18 }
 0x10f   : > { %v721_v24 = vadd.f32 1e-05, %v719_v22 }
 0x110   : > { %v618_v23 = vadd.f32 1e-05, %v616_v21 }
 0x112   : > { %2048 = vrsqrt.f32 %v618_v23 }
 0x113   : > { %2050 = vrsqrt.f32 %v721_v24 }
 0x11c   : > { %v2049_v27 = vpop.eup %2048 }
 0x11d   : > { %v2051_v29 = vpop.eup %2050  ;;  %v620_v30 = vmul.f32 %v2049_v27, %v617_v25 }
 0x11e   : > { %v723_v32 = vmul.f32 %v2051_v29, %v720_v26 }
 0x11f   : > { %v627_v33 = vmul.f32 %v1740_v28, %v620_v30 }
 0x120   : > { %v730_v37 = vmul.f32 %v1740_v28, %v723_v32 }
 0x121   : > { %v634_v34 = vadd.f32 %v1741_v31, %v627_v33 }
 0x122   : > { %v737_v39 = vadd.f32 %v1741_v31, %v730_v37 }
 0x123   : > { %v635_v36 = vpack.c.bf16 %v634_v34, %v634_v34 }
 0x124   : > { %v738_v40 = vpack.c.bf16 %v737_v39, %v737_v39 }
 0x125   : > { %1835 = vmatmul.mubr.msk.bf16.vlgmr.msra.gmra.mrb[0].mxu1 %vm605_vm0, %v635_v36 }
 0x126   : > { %1839 = vmatpush3.bf16.msra.mxu1 %v2030_v35  ;;  %1842 = vmatprep.mubr.msk.bf16.mxu1 %vm2250_vm1, %v2249_v9 }
 0x127   : > { %1840 = vmatprep.subr.bf16.mxu1 %v2249_v9 }
 0x12a   : > { %1841 = vmatpush3.bf16.msra.mxu1 %v2031_v38 }
 0x12b   : > { %1846 = vmatprep.subr.bf16.mxu1 %v2249_v9 }
 0x12d   : > { %1843 = vmatmul.mubr.msk.bf16.vlgmr.msra.gmra.mrb[4].mxu1 %vm605_vm0, %v738_v40 }
 0x12e   : > { %1848 = vmatprep.mubr.msk.bf16.mxu1 %vm2250_vm1, %v2249_v9 }
 0x1f8   : > { %v696_v42 = vpop.f32.mrb[0].mxu1 }
 0x1f9   : > { %v697_v43 = vadd.f32 %v1742_v41, %v696_v42  ;;  %v1836_v44 = vpop.f32.mrb[1].mxu1 }
 0x1fa   : > { %v699_v45 = vpop.f32.mrb[2].mxu1 }
 0x1fb   : > { %v702_v46 = vpack.c.bf16 %v697_v43, %v697_v43  ;;  %v1837_v47 = vpop.f32.mrb[3].mxu1 }
 0x1fd   : > { %704 = vst.msk [vmem:[#allocation2] sm:$0xf] %vm703_vm2, %v702_v46 }
 0x200   : > { %v799_v49 = vpop.f32.mrb[4].mxu1 }
 0x201   : > { %v800_v50 = vadd.f32 %v1748_v48, %v799_v49  ;;  %v1844_v51 = vpop.f32.mrb[5].mxu1 }
 0x202   : > { %v802_v52 = vpop.f32.mrb[6].mxu1 }
 0x203   : > { %v805_v53 = vpack.c.bf16 %v800_v50, %v800_v50  ;;  %v1845_v54 = vpop.f32.mrb[7].mxu1 }
 0x204   : > { %v2548_v55 = vld [vmem:[#allocation2] sm:$0xf] }
 0x205   : > { %v2550_v56 = vld [vmem:[#allocation2] ss:$0 sps:$4 sm:$0xff]   ;;  %923 = vrot.lane.b32.xlu1 %v805_v53, %s2251_s23  ;;  %v812_v57 = vsel %vm807_vm3, %v2548_v55, 0  ;;  %v1753_v42 = vcombine.low %v2548_v55, %v2548_v55 }
 0x206   : > { %1847 = vmatpush3.bf16.xpose.msra.mxu1 %v812_v57  ;;  %928 = vrot.lane.b32.xlu0 %v2550_v56, %s2251_s23  ;;  %v2555_v58 = vld [vmem:[#allocation2] ss:$0 sps:$4 sm:$0xff]  }
 0x207   : > { %1852 = vmatprep.subr.bf16.mxu1 %v2249_v9  ;;  %v2558_v59 = vld [vmem:[#allocation2] ss:$0 sps:$4 sm:$0xff]  }
 0x209   : > { %1051 = vrot.lane.b32.xlu1 %v2555_v58, %s2252_s30 }
 0x20a   : > { %1174 = vrot.lane.b32.xlu0 %v2558_v59, %s2253_s19 }
 0x20d   : > { %1046 = vrot.lane.b32.xlu1 %v805_v53, %s2252_s30  ;;  %1849 = vmatmul.mubr.msk.bf16.vlgmr.msra.gmra.mrb[8].mxu1 %vm807_vm3, %v805_v53 }
 0x20e   : > { %1854 = vmatprep.mubr.msk.bf16.mxu1 %vm2250_vm1, %v2249_v9 }
 0x211   : > { %1169 = vrot.lane.b32.xlu1 %v805_v53, %s2253_s19 }
 0x277   : > { %v924_v60 = vpop.permute.xlu1 %923 }
 0x278   : > { %v929_v61 = vpop.permute.xlu0 %928 }
 0x279   : > { %v934_v62 = vsel %vm807_vm3, %v929_v61, 0 }
 0x27a   : > { %1859 = vmatpush3.bf16.xpose.msra.mxu0 %v934_v62 }
 0x27b   : > { %1870 = vmatprep.subr.bf16.mxu0 %v2249_v9  ;;  %v1052_v63 = vpop.permute.xlu1 %1051 }
 0x27c   : > { %v1057_v0 = vsel %vm807_vm3, %v1052_v63, 0  ;;  %v1175_v2 = vpop.permute.xlu0 %1174 }
 0x27d   : > { %v1180_v4 = vsel %vm807_vm3, %v1175_v2, 0 }
 0x27f   : > { %v1047_v3 = vpop.permute.xlu1 %1046 }
 0x281   : > { %1861 = vmatmul.mubr.msk.bf16.vlgmr.msra.gmra.mrb[0].mxu0 %vm807_vm3, %v924_v60 }
 0x282   : > { %1871 = vmatpush3.bf16.xpose.msra.mxu0 %v1057_v0  ;;  %1872 = vmatprep.mubr.msk.bf16.mxu0 %vm2250_vm1, %v2249_v9 }
 0x283   : > { %1882 = vmatprep.subr.bf16.mxu0 %v2249_v9  ;;  %v1170_v5 = vpop.permute.xlu1 %1169 }
 0x289   : > { %1873 = vmatmul.mubr.msk.bf16.vlgmr.msra.gmra.mrb[4].mxu0 %vm807_vm3, %v1047_v3 }
 0x28a   : > { %1883 = vmatpush3.bf16.xpose.msra.mxu0 %v1180_v4  ;;  %1884 = vmatprep.mubr.msk.bf16.mxu0 %vm2250_vm1, %v2249_v9 }
 0x28b   : > { %1894 = vmatprep.subr.bf16.mxu0 %v2249_v9 }
 0x291   : > { %1885 = vmatmul.mubr.msk.bf16.vlgmr.msra.gmra.mrb[8].mxu0 %vm807_vm3, %v1170_v5 }
 0x292   : > { %1898 = vmatprep.mubr.msk.bf16.mxu0 %vm2250_vm1, %v2249_v9 }
 0x2e0   : > { %v848_v6 = vpop.f32.mrb[8].mxu1 }
 0x2e1   : > { %v1850_v7 = vpop.f32.mrb[9].mxu1  ;;  %v854_v8 = vsel %vm807_vm3, %v848_v6, -inf }
 0x2e2   : > { %855 = vmax.xlane.f32.xlu0 %v854_v8  ;;  %v851_v10 = vpop.f32.mrb[10].mxu1 }
 0x2e3   : > { %v1851_v11 = vpop.f32.mrb[11].mxu1 }
 0x354   : > { %v970_v12 = vpop.f32.mrb[0].mxu0 }
 0x355   : > { %v1862_v13 = vpop.f32.mrb[1].mxu0  ;;  %v976_v14 = vsel %vm807_vm3, %v970_v12, -inf }
 0x356   : > { %977 = vmax.xlane.f32.xlu1 %v976_v14  ;;  %v973_v15 = vpop.f32.mrb[2].mxu0 }
 0x357   : > { %v1863_v16 = vpop.f32.mrb[3].mxu0 }
 0x35c   : > { %v1093_v17 = vpop.f32.mrb[4].mxu0 }
 0x35d   : > { %v1874_v18 = vpop.f32.mrb[5].mxu0  ;;  %v1099_v19 = vsel %vm807_vm3, %v1093_v17, -inf }
 0x35e   : > { %v1096_v20 = vpop.f32.mrb[6].mxu0  ;;  %1100 = vmax.xlane.f32.xlu0 %v1099_v19 }
 0x35f   : > { %v1875_v21 = vpop.f32.mrb[7].mxu0 }
 0x364   : > { %v1216_v22 = vpop.f32.mrb[8].mxu0 }
 0x365   : > { %v1886_v23 = vpop.f32.mrb[9].mxu0  ;;  %v1222_v24 = vsel %vm807_vm3, %v1216_v22, -inf }
 0x366   : > { %v1219_v25 = vpop.f32.mrb[10].mxu0  ;;  %1223 = vmax.xlane.f32.xlu0 %v1222_v24 }
 0x367   : > { %v1887_v26 = vpop.f32.mrb[11].mxu0  ;;  %v2036_v25 = vld [vmem:[%s2746_s8] sm:$0xff]  }
 0x368   : > { %1895 = vmatpush3.bf16.msra.mxu0 %v2036_v25  ;;  %v2037_v26 = vld [vmem:[%s2746_s8 + $0x8] sm:$0xff]  }
 0x369   : > { %1896 = vmatprep.subr.bf16.mxu0 %v2249_v9 }
 0x36c   : > { %1897 = vmatpush3.bf16.msra.mxu0 %v2037_v26 }
 0x36d   : > { %1910 = vmatprep.subr.bf16.mxu0 %v2249_v9 }
 0x36f   : > { %v856_v27 = vpop.xlane.xlu0 %855 }
 0x370   : > { %v857_v28 = vsub.f32 %v848_v6, %v856_v27 }
 0x372   : > { %v858_v29 = vmul.f32 1.442695, %v857_v28 }
 0x374   : > { %2052 = vpow2.f32 %v858_v29 }
 0x37e   : > { %v2053_v30 = vpop.eup %2052 }
 0x37f   : > { %v860_v31 = vsel %vm807_vm3, %v2053_v30, 0.0 }
 0x380   : > { %861 = vadd.xlane.f32.xlu0 %v860_v31 }
 0x3e3   : > { %v978_v32 = vpop.xlane.xlu1 %977 }
 0x3e4   : > { %v979_v33 = vsub.f32 %v970_v12, %v978_v32 }
 0x3e6   : > { %v980_v34 = vmul.f32 1.442695, %v979_v33 }
 0x3e8   : > { %2054 = vpow2.f32 %v980_v34 }
 0x3eb   : > { %v1101_v35 = vpop.xlane.xlu0 %1100 }
 0x3ec   : > { %v1102_v36 = vsub.f32 %v1093_v17, %v1101_v35 }
 0x3ee   : > { %v1103_v37 = vmul.f32 1.442695, %v1102_v36  ;;  %v1767_v36 = vld [vmem:[#allocation9] ss:$0 sm:$0xff] }
 0x3f0   : > { %2056 = vpow2.f32 %v1103_v37 }
 0x3f2   : > { %v2055_v38 = vpop.eup %2054 }
 0x3f3   : > { %v982_v39 = vsel %vm807_vm3, %v2055_v38, 0.0  ;;  %v1224_v43 = vpop.xlane.xlu0 %1223 }
 0x3f4   : > { %983 = vadd.xlane.f32.xlu1 %v982_v39  ;;  %v1225_v44 = vsub.f32 %v1216_v22, %v1224_v43 }
 0x3f6   : > { %v1226_v45 = vmul.f32 1.442695, %v1225_v44 }
 0x3f8   : > { %2058 = vpow2.f32 %v1226_v45 }
 0x3fa   : > { %v2057_v40 = vpop.eup %2056 }
 0x3fb   : > { %v1105_v41 = vsel %vm807_vm3, %v2057_v40, 0.0 }
 0x3fc   : > { %1106 = vadd.xlane.f32.xlu0 %v1105_v41 }
 0x402   : > { %v2059_v46 = vpop.eup %2058 }
 0x403   : > { %v1228_v47 = vsel %vm807_vm3, %v2059_v46, 0.0 }
 0x405   : > { %988 = vrot.lane.b32.xlu1 %v2550_v56, %s2254_s26  ;;  %s2793_s26 = sld [smem:[#allocation25_spill]] }
 0x409   : > { %1111 = vrot.lane.b32.xlu1 %v2555_v58, %s2255_s21 }
 0x40b   : > { %s2690_s21 = scalar_lea.hbm %s2793_s26, %s1787_s20 }
 0x40d   : > { %v862_v48 = vpop.xlane.xlu0 %861 }
 0x40e   : > { %2060 = vrcp.f32 %v862_v48 }
 0x412   : > { %869 = vrot.lane.b32.xlu0 %v1753_v42, %s2256_s17  ;;  %s2794_s17 = smov %s2793_s26 }
 0x418   : > { %v2061_v50 = vpop.eup %2060 }
 0x419   : > { %v864_v52 = vmul.f32 %v2061_v50, %v2053_v30 }
 0x41b   : > { %v865_v56 = vpack.c.bf16 %v864_v52, %v864_v52 }
 0x42d   : > { %1229 = vadd.xlane.f32.xlu1 %v1228_v47 }
 0x43e   : > { %1234 = vrot.lane.b32.xlu1 %v2558_v59, %s2257_s15 }
 0x481   : > { %v984_v49 = vpop.xlane.xlu1 %983 }
 0x482   : > { %2062 = vrcp.f32 %v984_v49 }
 0x485   : > { %v989_v55 = vpop.permute.xlu1 %988 }
 0x486   : > { %v994_v58 = vsel %vm874_vm4, %v989_v55, 0 }
 0x489   : > { %v1107_v51 = vpop.xlane.xlu0 %1106  ;;  %v1112_v60 = vpop.permute.xlu1 %1111 }
 0x48a   : > { %2064 = vrcp.f32 %v1107_v51  ;;  %v1117_v63 = vsel %vm874_vm4, %v1112_v60, 0 }
 0x48c   : > { %v2063_v57 = vpop.eup %2062 }
 0x48d   : > { %v870_v53 = vpop.permute.xlu0 %869  ;;  %v986_v59 = vmul.f32 %v2063_v57, %v2055_v38 }
 0x48e   : > { %v876_v54 = vsel %vm874_vm4, %v870_v53, 0 }
 0x48f   : > { %1853 = vmatpush3.bf16.msra.mxu1 %v876_v54  ;;  %v987_v61 = vpack.c.bf16 %v986_v59, %v986_v59 }
 0x490   : > { %1864 = vmatprep.subr.bf16.mxu1 %v2249_v9 }
 0x492   : > { %1855 = vmatmul.mubr.msk.bf16.vlgmr.msra.gmra.mrb[12].mxu1 %vm807_vm3, %v865_v56  ;;  %v1771_v56 = vld [vmem:[%s2748_s10] ss:$0 sm:$0xff] }
 0x493   : > { %1865 = vmatpush3.bf16.msra.mxu1 %v994_v58  ;;  %1866 = vmatprep.mubr.msk.bf16.mxu1 %vm2250_vm1, %v2249_v9  ;;  %v1772_v58 = vld [vmem:[%s2749_s11] ss:$0 sm:$0xff] }
 0x494   : > { %1876 = vmatprep.subr.bf16.mxu1 %v2249_v9  ;;  %v2065_v62 = vpop.eup %2064 }
 0x495   : > { %v1109_v0 = vmul.f32 %v2065_v62, %v2057_v40  ;;  %v2040_v62 = vld [vmem:[%s2752_s14] sm:$0xff]  }
 0x497   : > { %v1110_v2 = vpack.c.bf16 %v1109_v0, %v1109_v0  ;;  %v2042_v0 = vld [vmem:[%s2752_s14 + $0x10] sm:$0xff]  }
 0x49a   : > { %1867 = vmatmul.mubr.msk.bf16.vlgmr.msra.gmra.mrb[16].mxu1 %vm807_vm3, %v987_v61 }
 0x49b   : > { %1877 = vmatpush3.bf16.msra.mxu1 %v1117_v63  ;;  %1878 = vmatprep.mubr.msk.bf16.mxu1 %vm2250_vm1, %v2249_v9  ;;  %v2041_v63 = vld [vmem:[%s2752_s14 + $0x8] sm:$0xff]  }
 0x49c   : > { %1888 = vmatprep.subr.bf16.mxu1 %v2249_v9 }
 0x4a2   : > { %1879 = vmatmul.mubr.msk.bf16.vlgmr.msra.gmra.mrb[20].mxu1 %vm807_vm3, %v1110_v2  ;;  %v2043_v2 = vld [vmem:[%s2752_s14 + $0x18] sm:$0xff]  }
 0x4a3   : > { %1890 = vmatprep.mubr.msk.bf16.mxu1 %vm2250_vm1, %v2249_v9 }
 0x4ba   : > { %v1230_v3 = vpop.xlane.xlu1 %1229 }
 0x4bb   : > { %2066 = vrcp.f32 %v1230_v3  ;;  %v2044_v3 = vld [vmem:[%s2752_s14 + $0x20] sm:$0xff]  }
 0x4be   : > { %v1235_v4 = vpop.permute.xlu1 %1234 }
 0x4bf   : > { %v1240_v5 = vsel %vm874_vm4, %v1235_v4, 0  ;;  %v2045_v4 = vld [vmem:[%s2752_s14 + $0x28] sm:$0xff]  }
 0x4c0   : > { %1889 = vmatpush3.bf16.msra.mxu1 %v1240_v5  ;;  %v2046_v5 = vld [vmem:[%s2752_s14 + $0x30] sm:$0xff]  }
 0x4c1   : > { %1902 = vmatprep.subr.bf16.mxu1 %v2249_v9 }
 0x4c5   : > { %v2067_v6 = vpop.eup %2066 }
 0x4c6   : > { %v1232_v7 = vmul.f32 %v2067_v6, %v2059_v46  ;;  %v2038_v46 = vld [vmem:[%s2750_s12] sm:$0xff]   ;;  %v2047_v6 = vld [vmem:[%s2752_s14 + $0x38] sm:$0xff]  }
 0x4c8   : > { %v1233_v8 = vpack.c.bf16 %v1232_v7, %v1232_v7  ;;  %v1773_v7 = vld [vmem:[%s2751_s13] ss:$0 sm:$0xff] }
 0x4ca   : > { %1891 = vmatmul.mubr.msk.bf16.vlgmr.msra.gmra.mrb[24].mxu1 %vm807_vm3, %v1233_v8 }
 0x4cb   : > { %1906 = vmatprep.mubr.msk.bf16.mxu1 %vm2250_vm1, %v2249_v9  ;;  %1903 = vmatpush3.bf16.msra.mxu1 %v2038_v46 }
 0x4cc   : > { %1904 = vmatprep.subr.bf16.mxu1 %v2249_v9 }
 0x565   : > { %v912_v10 = vpop.f32.mrb[12].mxu1 }
 0x566   : > { %v918_v11 = vpack.c.bf16 %v912_v10, %v912_v10  ;;  %v1856_v12 = vpop.f32.mrb[13].mxu1 }
 0x567   : > { %v915_v13 = vpop.f32.mrb[14].mxu1 }
 0x568   : > { %920 = vst.msk [vmem:[#allocation3] sm:$0xf] %vm919_vm5, %v918_v11  ;;  %v1857_v14 = vpop.f32.mrb[15].mxu1 }
 0x56d   : > { %v1030_v15 = vpop.f32.mrb[16].mxu1 }
 0x56e   : > { %v1790_v16 = vpack.c.bf16 %v1030_v15, %v1030_v15  ;;  %v1868_v17 = vpop.f32.mrb[17].mxu1 }
 0x56f   : > { %v1033_v18 = vpop.f32.mrb[18].mxu1 }
 0x570   : > { %1040 = vrot.lane.b32.xlu0 %v1790_v16, %s2258_s25  ;;  %v1869_v19 = vpop.f32.mrb[19].mxu1  ;;  %s2261_s25 = smov [#allocation10]  }
 0x575   : > { %v1153_v20 = vpop.f32.mrb[20].mxu1 }
 0x576   : > { %v1791_v21 = vpack.c.bf16 %v1153_v20, %v1153_v20  ;;  %v1880_v22 = vpop.f32.mrb[21].mxu1 }
 0x577   : > { %v1156_v23 = vpop.f32.mrb[22].mxu1 }
 0x578   : > { %1163 = vrot.lane.b32.xlu1 %v1791_v21, %s2259_s0  ;;  %v1881_v24 = vpop.f32.mrb[23].mxu1  ;;  %s583_s0 = sand.u32 1, %s2228_s22  }
 0x579   : > { %s1737_s18 = sshll.u32 %s583_s0, 3  ;;  %s1598_s24 = scalar_lea.sflag [#allocation6], %s583_s0 }
 0x57a   : > { %s585_s16 = scalar_lea.vmem [#allocation10], %s1737_s18  ;;  %s2162_s18 = sshll.u32 %s2261_s25, 4  ;;  %s2163_s18 = int_to_ptr.vmem [resolvable:$false] %s2162_s18 }
 0x57b   : > { %s1612_s23 = sshll.u32 %s585_s16, 4  ;;  %s2164_s27 = scalar_lea.vmem %s2163_s18, 256  ;;  %s2692_s23 = int_to_ptr.vmem [resolvable:$true] %s1612_s23 }
 0x57c   : > { %s2158_s15 = scalar_lea.vmem %s2692_s23, 128  ;;  %p2165_p11 = scmp.lt.s32.totalorder %s2692_s23, %s2163_s18 }
 0x57d   : > { %p2159_p13 = scmp.ne.s32.totalorder %s2692_s23, %s2158_s15  ;;  %p2166_p3 = scmp.lt.s32.totalorder %s2164_s27, %s2158_s15 }
 0x57f   : > { %p2167_p5 = por %p2166_p3, %p2165_p11 }
 0x59d   : > { %v1276_v27 = vpop.f32.mrb[24].mxu1 }
 0x59e   : > { %v1792_v28 = vpack.c.bf16 %v1276_v27, %v1276_v27  ;;  %v1892_v29 = vpop.f32.mrb[25].mxu1 }
 0x59f   : > { %v1279_v30 = vpop.f32.mrb[26].mxu1 }
 0x5a0   : > { %1286 = vrot.lane.b32.xlu0 %v1792_v28, %s2260_s28  ;;  %v1893_v31 = vpop.f32.mrb[27].mxu1  ;;  %s2792_s28 = sld [smem:[#allocation19_spill]] }
 0x5a6   : > { %p2795_p4 = scmp.ne.s32.totalorder %s2792_s28, 0 }
 0x5a8   : > { %p2160_p8 = pnand %p2159_p13, %p2795_p4 }
 0x5aa   : > { %p2161_p10 = pneg %p2160_p8 }
 0x5ac   : > { %p2168_p6 = pnand %p2167_p5, %p2161_p10 }
 0x5e2   : > { %v1041_v32 = vpop.permute.xlu0 %1040 }
 0x5e3   : > { %1044 = vst.msk [vmem:[#allocation3] sm:$0xf] %vm1043_vm6, %v1041_v32 }
 0x5ea   : > { %v1164_v33 = vpop.permute.xlu1 %1163 }
 0x5eb   : > { %1167 = vst.msk [vmem:[#allocation3] sm:$0xf] %vm1166_vm7, %v1164_v33 }
 0x612   : > { %v1287_v34 = vpop.permute.xlu0 %1286 }
 0x613   : > { %1290 = vst.msk [vmem:[#allocation3] sm:$0xf] %vm1289_vm8, %v1287_v34 }
 0x61a   : > { %v1291_v35 = vld [vmem:[#allocation3] sm:$0xf] }
 0x61b   : > { %1899 = vmatmul.mubr.msk.bf16.vlgmr.msra.gmra.mrb[12].mxu0 %vm605_vm0, %v1291_v35 }
 0x61c   : > { %1926 = vmatprep.mubr.msk.bf16.mxu0 %vm2250_vm1, %v2249_v9  ;;  %1911 = vmatpush3.bf16.msra.mxu0 %v2040_v62 }
 0x61d   : > { %1912 = vmatprep.subr.bf16.mxu0 %v2249_v9 }
 0x620   : > { %1913 = vmatpush3.bf16.msra.mxu0 %v2041_v63 }
 0x621   : > { %1914 = vmatprep.subr.bf16.mxu0 %v2249_v9 }
 0x624   : > { %1915 = vmatpush3.bf16.msra.mxu0 %v2042_v0 }
 0x625   : > { %1916 = vmatprep.subr.bf16.mxu0 %v2249_v9 }
 0x628   : > { %1917 = vmatpush3.bf16.msra.mxu0 %v2043_v2 }
 0x629   : > { %1918 = vmatprep.subr.bf16.mxu0 %v2249_v9 }
 0x62c   : > { %1919 = vmatpush3.bf16.msra.mxu0 %v2044_v3 }
 0x62d   : > { %1920 = vmatprep.subr.bf16.mxu0 %v2249_v9 }
 0x630   : > { %1921 = vmatpush3.bf16.msra.mxu0 %v2045_v4 }
 0x631   : > { %1922 = vmatprep.subr.bf16.mxu0 %v2249_v9 }
 0x634   : > { %1923 = vmatpush3.bf16.msra.mxu0 %v2046_v5 }
 0x635   : > { %1924 = vmatprep.subr.bf16.mxu0 %v2249_v9 }
 0x638   : > { %1925 = vmatpush3.bf16.msra.mxu0 %v2047_v6 }
 0x6ee   : > { %v1352_v37 = vpop.f32.mrb[12].mxu0 }
 0x6ef   : > { %v1353_v38 = vadd.f32 %v1767_v36, %v1352_v37  ;;  %v1900_v39 = vpop.f32.mrb[13].mxu0 }
 0x6f0   : > { %v1355_v40 = vpop.f32.mrb[14].mxu0  ;;  %v1777_v39 = vld [vmem:[%s2791_s29] ss:$0 sm:$0xff] }
 0x6f1   : > { %v2625_v41 = vadd.f32 %v1353_v38, %v2504_v1  ;;  %v1901_v42 = vpop.f32.mrb[15].mxu0  ;;  %v2039_v1 = vld [vmem:[%s2750_s12 + $0x8] sm:$0xff]  }
 0x6f2   : > { %1905 = vmatpush3.bf16.msra.mxu1 %v2039_v1 }
 0x6f3   : > { %v1361_v43 = vsel %vm605_vm0, %v2625_v41, 0.0  ;;  %v1364_v44 = vmul.f32 %v2625_v41, %v2625_v41 }
 0x6f4   : > { %1362 = vadd.xlane.f32.xlu1 %v1361_v43 }
 0x6f5   : > { %v1365_v45 = vsel %vm605_vm0, %v1364_v44, 0.0 }
 0x6f6   : > { %1366 = vadd.xlane.f32.xlu0 %v1365_v45 }
 0x781   : > { %v1363_v47 = vpop.xlane.xlu1 %1362 }
 0x782   : > { %v1368_v48 = vmul.f32 0.03125, %v1363_v47 }
 0x783   : > { %v1367_v49 = vpop.xlane.xlu0 %1366 }
 0x784   : > { %v1370_v50 = vmul.f32 %v1368_v48, %v1368_v48  ;;  %v1369_v51 = vmul.f32 0.03125, %v1367_v49  ;;  %v1372_v54 = vsub.f32 %v2625_v41, %v1368_v48 }
 0x786   : > { %v1371_v52 = vsub.f32 %v1369_v51, %v1370_v50 }
 0x788   : > { %v1373_v53 = vadd.f32 1e-05, %v1371_v52 }
 0x78a   : > { %2068 = vrsqrt.f32 %v1373_v53 }
 0x794   : > { %v2069_v55 = vpop.eup %2068 }
 0x795   : > { %v1375_v57 = vmul.f32 %v2069_v55, %v1372_v54 }
 0x797   : > { %v1382_v59 = vmul.f32 %v1771_v56, %v1375_v57 }
 0x799   : > { %v1389_v60 = vadd.f32 %v1772_v58, %v1382_v59 }
 0x79b   : > { %v1390_v61 = vpack.c.bf16 %v1389_v60, %v1389_v60 }
 0x79d   : > { %1907 = vmatmul.mubr.msk.bf16.vlgmr.msra.gmra.mrb[28].mxu1 %vm605_vm0, %v1390_v61 }
 0x870   : > { %v1451_v8 = vpop.f32.mrb[28].mxu1 }
 0x871   : > { %v1452_v10 = vadd.f32 %v1773_v7, %v1451_v8  ;;  %v1908_v11 = vpop.f32.mrb[29].mxu1 }
 0x872   : > { %v1454_v12 = vpop.f32.mrb[30].mxu1 }
 0x873   : > { %v1458_v13 = vmul.f32 0.70710677, %v1452_v10  ;;  %v1909_v14 = vpop.f32.mrb[31].mxu1  ;;  %v1457_v35 = vmul.f32 0.5, %v1452_v10 }
 0x875   : > { %v1459_v15 = vand.u32 2147483647, %v1458_v13  ;;  %vm1478_vm9 = vcmp.lt.f32.partialorder %v1458_v13, 0.0 }
 0x877   : > { %v1460_v16 = vmul.f32 0.3275911, %v1459_v15  ;;  %v1472_v9 = vmul.f32 %v1459_v15, %v1459_v15 }
 0x879   : > { %v1461_v17 = vadd.f32 1.0, %v1460_v16  ;;  %v1473_v19 = vsub.f32 0.0, %v1472_v9 }
 0x87b   : > { %2070 = vrcp.f32 %v1461_v17  ;;  %v1474_v22 = vmul.f32 1.442695, %v1473_v19 }
 0x87d   : > { %2072 = vpow2.f32 %v1474_v22 }
 0x885   : > { %v2071_v18 = vpop.eup %2070 }
 0x886   : > { %v1463_v20 = vmul.f32 1.0614054, %v2071_v18 }
 0x887   : > { %v2073_v30 = vpop.eup %2072 }
 0x888   : > { %v1464_v21 = vadd.f32 -1.4531521, %v1463_v20 }
 0x88a   : > { %v1465_v23 = vmul.f32 %v2071_v18, %v1464_v21 }
 0x88c   : > { %v1466_v24 = vadd.f32 1.4214138, %v1465_v23 }
 0x88e   : > { %v1467_v25 = vmul.f32 %v2071_v18, %v1466_v24 }
 0x890   : > { %v1468_v26 = vadd.f32 -0.28449672, %v1467_v25 }
 0x892   : > { %v1469_v27 = vmul.f32 %v2071_v18, %v1468_v26 }
 0x894   : > { %v1470_v28 = vadd.f32 0.2548296, %v1469_v27 }
 0x896   : > { %v1471_v29 = vmul.f32 %v2071_v18, %v1470_v28 }
 0x898   : > { %v1476_v31 = vmul.f32 %v2073_v30, %v1471_v29 }
 0x89a   : > { %v1477_v32 = vsub.f32 1.0, %v1476_v31 }
 0x89c   : > { %v1479_v33 = vsub.f32 0.0, %v1477_v32 }
 0x89e   : > { %v1480_v34 = vsel %vm1478_vm9, %v1479_v33, %v1477_v32 }
 0x89f   : > { %v1481_v36 = vadd.f32 1.0, %v1480_v34 }
 0x8a1   : > { %v1482_v37 = vmul.f32 %v1481_v36, %v1457_v35 }
 0x8a3   : > { %v1483_v38 = vpack.c.bf16 %v1482_v37, %v1482_v37 }
 0x8a5   : > { %1927 = vmatmul.mubr.bf16.vlgmr.msra.gmra.mrb[16].mxu0 %v1483_v38 }
 0x978   : > { %v1589_v40 = vpop.f32.mrb[16].mxu0 }
 0x979   : > { %v1590_v42 = vadd.f32 %v1777_v39, %v1589_v40  ;;  %v1928_v43 = vpop.f32.mrb[17].mxu0 }
 0x97a   : > { %v1592_v44 = vpop.f32.mrb[18].mxu0 }
 0x97b   : > { %v1595_v45 = vadd.f32 %v1590_v42, %v2625_v41  ;;  %v1929_v46 = vpop.f32.mrb[19].mxu0 }
 0x97d   : > { %1596 = vst.msk [vmem:[%s585_s16] sm:$0xff] %vm605_vm0, %v1595_v45 }
 0x97e   : > { %2171 = shalt.err (!%p2168_p6)
}
 0x97f   : > { %s2172_s0 = scalar_lea.hbm %s2690_s21, 128  ;;  %s2176_s20 = scalar_lea.hbm %s2794_s17, 256 }
 0x980   : > { %p2173_p7 = scmp.ne.s32.totalorder %s2690_s21, %s2172_s0  ;;  %p2177_p0 = scmp.lt.u32.totalorder %s2690_s21, %s2794_s17 }
 0x981   : > { %p2178_p2 = scmp.lt.u32.totalorder %s2176_s20, %s2172_s0  ;;  %p2180_p13 = scmp.lt.u32.totalorder %s2172_s0, %s2690_s21 }
 0x982   : > { %p2174_p9 = pnand %p2173_p7, %p2795_p4 }
 0x983   : > { %p2179_p1 = por %p2178_p2, %p2177_p0 }
 0x984   : > { %p2175_p12 = pneg %p2174_p9 }
 0x985   : > { %p2181_p8 = por %p2180_p13, %p2179_p1 }
 0x987   : > { %p2182_p10 = pnand %p2181_p8, %p2175_p12 }
 0x989   : > { %2185 = shalt.err (!%p2182_p10)
}
 0x98a   : > { %1942 = dma.vmem_to_hbm [thread:$0]  (%p2795_p4), %s2692_s23, 128, %s2690_s21, %s1598_s24  }
 0x98b PF: > { %s2796_s19 = sld [smem:[#allocation17_spill]]  ;;  %s2797_s26 = sld [smem:[#allocation14_spill]] }
 0x98c   : > { %s2798_s15 = sld [smem:[#allocation20_spill]] }
 0x991   : > { %p1964_p11 = scmp.ge.s32.totalorder %s2796_s19, 2  ;;  %s1624_s25 = sand.u32 1, %s2797_s26  }
 0x992   : > { %p2799_p3 = scmp.ne.s32.totalorder %s2798_s15, 0  ;;  %s1625_s18 = scalar_lea.sflag [#allocation6], %s1624_s25 }
 0x994   : > { %p1955_p5 = pnand %p1964_p11, %p2799_p3 }
 0x996   : > { %2219 = dma.done.wait (!%p1955_p5), %s1625_s18, 128  }
 0x997   : > { %2221 = vsyncadd (!%p1955_p5), %s1625_s18, 4294967168  ;;  %s31_s26 = sadd.s32 1, %s2796_s19   ;;  %s2800_s27 = sld [smem:[#allocation15_spill]] }
 0x998   : > { %p28_p6 = scmp.ge.s32.totalorder %s31_s26, 4   ;;  %s2801_s23 = sld [smem:[#allocation21_spill]] }
 0x999   : > { %s2802_s24 = sld [smem:[#allocation16_spill]]  ;;  %s2803_s25 = sld [smem:[#allocation18_spill]] }
 0x99a   : > { %s2804_s21 = smov %s2228_s22  ;;  %30 = sbr.rel (!%p28_p6) target bundleno = 11 (0xb), region = 139 }
 0x99d   : > { %s2805_s22 = smov %s2800_s27 }
 0x9a1   :  { %1630 = vsyncpa [#allocation5], 1 }
 0x9a2   :  { %1632 = vsyncpa [#allocation5 + $0x1], 1 }
 0x9a3   :  { %1633 = vsyncpa [#allocation8], 1 }
 0x9a4   :  { %1634 = vsyncpa [#allocation6], 1 }
 0x9a5   :  { %1636 = vsyncpa [#allocation6 + $0x1], 1 }

</bundles_post_ra>
